<compile_context>
chip_gen: v7x
topology: tpu7x:2x2x1
jax: 0.10.0
libtpu: 0.0.40
codegen_flags: <defaults>
</compile_context>

<pallas_src>
import functools
import math

import numpy as np
import jax
import jax.numpy as jnp
from jax.experimental import pallas as pl
from jax.experimental.pallas import tpu as pltpu

C = 4                       # in_planes
K = 4                       # kernel_size of the lifting convs
PAD_L = K // 2              # ReflectionPad left/top pad (right/bottom pad is K//2 - 1)
HID = 2 * C                 # hidden width of the P/U nets (size_hidden=2)
PACK_W = K * C + 2 + HID    # packed per-net params: w1(16) | b1(1) | w2(8) | b2(1) = 26
REGU_DETAILS = 0.1
REGU_APPROX = 0.1
BN_EPS = 1e-5
MAX_LANE_BLOCK = 16384      # lanes per grid step (per-step VMEM stays a few MiB)


def _pick_lane_block(n, row_len):
    """Lane-block size: multiple of row_len (conv rows never straddle a block), dividing n
    exactly, 128-aligned when the slab allows it, grown toward MAX_LANE_BLOCK (single-step
    execution is allowed -- grid overhead dominates at these footprints)."""
    base = row_len * 128 // math.gcd(row_len, 128)
    if n % base == 0:
        blk = base
        while blk * 2 <= MAX_LANE_BLOCK and n % (blk * 2) == 0:
            blk *= 2
        return blk
    # ragged slab: largest divisor of n that is a multiple of row_len and <= MAX_LANE_BLOCK
    # (sub-128 lane blocks -> masked stores, but VMEM stays bounded even on v7x's 64 MiB).
    best = row_len
    d = 1
    while d * d <= n:
        if n % d == 0:
            for cand in (d, n // d):
                if cand % row_len == 0 and cand <= MAX_LANE_BLOCK and cand > best:
                    best = cand
        d += 1
    return best


# ----------------------------------------------------------------------------
# Pallas kernels
# ----------------------------------------------------------------------------
def _reflect_taps(x, left_masks, right_masks, row_len):
    """K reflection-padded conv taps of a channel-major slab, built in-kernel.

    x: (C, blk); the lane axis flattens conv rows of length `row_len` (conv axis fastest,
    blk % row_len == 0).  tap[t][c, n] == x[c, reflect(w + t - PAD_L)] with w the
    within-row position.  XLU lane rotates + masked fixes on the <=2 boundary columns per
    tap; circular-roll wrap-around only ever lands on columns the fixes overwrite.
    The boundary masks are precomputed once by the caller and reused for both U and P.
    """
    n_lanes = x.shape[1]
    cache = {}

    def shifted(off):                 # value at flat lane position n + off
        if off not in cache:
            cache[off] = x if off == 0 else pltpu.roll(x, shift=(-off) % n_lanes, axis=1)
        return cache[off]

    taps = []
    for t_idx in range(K):
        off = t_idx - PAD_L
        tap = shifted(off)
        if off < 0:                   # left reflection: first -off columns of each row
            for wb in range(-off):
                refl = -(wb + off)
                tap = jnp.where(left_masks[wb], shifted(refl - wb), tap)
        elif off > 0:                 # right reflection: last off columns of each row
            for j in range(off):
                wb = row_len - 1 - j
                refl = 2 * (row_len - 1) - (wb + off)
                tap = jnp.where(right_masks[j], shifted(refl - wb), tap)
        taps.append(tap)
    return taps


def _lifting_kernel(even_ref, odd_ref, params_ref, c_ref, d_ref, stats_ref, *, row_len):
    """Fused 1-D LiftingScheme (modified form): c = even + U(odd); d = odd - P(c).

    Channel-major (1, C, blk) blocks keep every vreg/store lane-dense.  The two tiny conv
    layers (HID x K*C and C x HID) are unrolled VPU broadcast-FMAs (MXU would be <1%
    utilised at C=4/HID=8); tanh runs on the EUP.  Also emits per-block partial sums
    [sum c, sum c^2, sum d, sum |d|] per channel for BN statistics / regularisation.
    """
    even = even_ref[0]                               # (C, blk)
    odd = odd_ref[0]
    wp = params_ref[0]                               # (2, HID, PACK_W): [U, P] packed nets

    blk = even.shape[1]
    lane_pos = jax.lax.broadcasted_iota(jnp.int32, (C, blk), 1) % row_len
    left_masks = [lane_pos == wb for wb in range(PAD_L)]                     # pos==0, pos==1
    right_masks = [lane_pos == (row_len - 1 - j) for j in range(K - 1 - PAD_L)]

    def pu_net(x, wnet):
        w1 = wnet[:, :K * C]                          # (HID, K*C)
        b1 = wnet[:, K * C:K * C + 1]                 # (HID, 1)
        w2 = wnet[:C, K * C + 1:K * C + 1 + HID]      # (C, HID)
        b2 = wnet[:C, K * C + 1 + HID:PACK_W]         # (C, 1)
        taps = _reflect_taps(x, left_masks, right_masks, row_len)
        h = jnp.zeros((HID, blk), jnp.float32)
        for t_idx in range(K):                        # Conv2d(C -> 2C, K taps), reflection pad
            tap = taps[t_idx]
            for cc in range(C):
                col = t_idx * C + cc
                h = h + w1[:, col:col + 1] * tap[cc:cc + 1, :]
        h = jnp.maximum(h + b1, 0.0)                  # ReLU
        y = jnp.zeros((C, blk), jnp.float32)
        for j in range(HID):                          # Conv2d(2C -> C, 1x1)
            y = y + w2[:, j:j + 1] * h[j:j + 1, :]
        return jnp.tanh(y + b2)                       # Tanh

    c = even + pu_net(odd, wp[0])                     # update:  c = even + U(odd)
    d = odd - pu_net(c, wp[1])                        # predict: d = odd - P(c)

    c_ref[...] = c[None]
    d_ref[...] = d[None]
    stats_ref[...] = jnp.concatenate(                 # per-block, per-channel partial sums
        [jnp.sum(c, axis=1, keepdims=True),
         jnp.sum(c * c, axis=1, keepdims=True),
         jnp.sum(d, axis=1, keepdims=True),
         jnp.sum(jnp.abs(d), axis=1, keepdims=True)], axis=1)[None, None]


def lifting_pallas(even, odd, packed, row_len):
    """Fused 1-D lifting on (S, C, N) channel-major slabs (S = independent branches, each
    with its own packed weight set).  Returns (c, d, stats) with stats (S, nblocks, C, 4)."""
    s, c_, n = even.shape
    assert c_ == C
    assert row_len >= PAD_L + 1, "reflection pad needs conv rows of length >= K//2 + 1"
    assert n % row_len == 0, "lane count must be a whole number of conv rows"
    blk = _pick_lane_block(n, row_len)
    assert blk % row_len == 0 and n % blk == 0
    nb = n // blk

    slab = pl.BlockSpec((1, C, blk), lambda b, i: (b, 0, i))
    wspec = pl.BlockSpec((1, 2, HID, PACK_W), lambda b, i: (b, 0, 0, 0))
    stats_spec = pl.BlockSpec((1, 1, C, 4), lambda b, i: (b, i, 0, 0))

    return pl.pallas_call(
        functools.partial(_lifting_kernel, row_len=row_len),
        out_shape=(jax.ShapeDtypeStruct((s, C, n), jnp.float32),
                   jax.ShapeDtypeStruct((s, C, n), jnp.float32),
                   jax.ShapeDtypeStruct((s, nb, C, 4), jnp.float32)),
        grid=(s, nb),
        in_specs=[slab, slab, wspec],
        out_specs=(slab, slab, stats_spec),
        compiler_params=pltpu.CompilerParams(
            dimension_semantics=("parallel", "parallel")),
    )(even, odd, packed)


def _bn_relu_kernel(x_ref, scale_ref, shift_ref, o_ref):
    o_ref[...] = jnp.maximum(x_ref[0] * scale_ref[...] + shift_ref[...], 0.0)


def bn_relu_apply_pallas(cv, scale, shift):
    """Normalise+ReLU of the LL slab (branch 0 of cv, shape (2, C, N)) with precomputed
    per-channel scale/shift.  Branch selection happens in the BlockSpec index_map, so no
    XLA-side slice copy of LL is materialised."""
    s, c_, n = cv.shape
    blk = _pick_lane_block(n, 1)
    nb = n // blk
    return pl.pallas_call(
        _bn_relu_kernel,
        out_shape=jax.ShapeDtypeStruct((c_, n), jnp.float32),
        grid=(nb,),
        in_specs=[pl.BlockSpec((1, c_, blk), lambda i: (0, 0, i)),
                  pl.BlockSpec((c_, 1), lambda i: (0, 0)),
                  pl.BlockSpec((c_, 1), lambda i: (0, 0))],
        out_specs=pl.BlockSpec((c_, blk), lambda i: (0, i)),
        compiler_params=pltpu.CompilerParams(dimension_semantics=("parallel",)),
    )(cv, scale, shift)


# ----------------------------------------------------------------------------
# Weight packing (11 per-call inputs -> 3)
# ----------------------------------------------------------------------------
def _pack_net(net):
    w1, b1, w2, b2 = net                                # (HID,KC), (HID,1), (C,HID), (C,1)
    p = jnp.zeros((HID, PACK_W), jnp.float32)
    p = p.at[:, :K * C].set(w1)
    p = p.at[:, K * C:K * C + 1].set(b1)
    p = p.at[:C, K * C + 1:K * C + 1 + HID].set(w2)
    p = p.at[:C, K * C + 1 + HID:PACK_W].set(b2)
    return p


def _pack_level(level):
    return jnp.stack([_pack_net(level["U"]), _pack_net(level["P"])])   # (2, HID, PACK_W)


# ----------------------------------------------------------------------------
# Full forward (Pallas)
# ----------------------------------------------------------------------------
def level_dawn_forward(x_nchw, params):
    x = x_nchw.astype(jnp.float32)
    b, c_, h, w = x.shape
    h2, w2 = h // 2, w // 2
    n1 = b * h * w2
    nv = b * w2 * h2

    wp_h = _pack_level(params["level1"])[None]                             # (1,2,HID,26)
    wp_v = jnp.stack([_pack_level(params["level2_1"]),
                      _pack_level(params["level2_2"])])                    # (2,2,HID,26)

    # ---- horizontal lifting: channel-major, W fastest ----
    # TODO(synk): the even/odd deinterleave and the vertical transpose below are still XLA
    # layout glue; moving them in-kernel (strided lane reads / +-W2 rolls) is the remaining
    # HBM-traffic optimisation and is intentionally not attempted here.
    xc = jnp.transpose(x, (1, 0, 2, 3))                                    # (C,B,H,W)
    even_h = xc[..., 0::2].reshape(1, c_, n1)
    odd_h = xc[..., 1::2].reshape(1, c_, n1)
    c1, d1, stats_h = lifting_pallas(even_h, odd_h, wp_h, w2)

    # ---- both vertical liftings fused into one call (branch 0 = c -> LL,LH; 1 = d -> HL,HH)
    cd = jnp.concatenate([c1, d1], axis=0)                                 # (2,C,n1)
    t = jnp.transpose(cd.reshape(2, c_, b, h, w2), (0, 1, 2, 4, 3))        # (2,C,B,W2,H)
    even_v = t[..., 0::2].reshape(2, c_, nv)
    odd_v = t[..., 1::2].reshape(2, c_, nv)
    cv, dv, stats_v = lifting_pallas(even_v, odd_v, wp_v, h2)
    # cv[0]=LL, dv[0]=LH, cv[1]=HL, dv[1]=HH

    # ---- BN statistics + regularisation scalar from the fused per-block partial sums ----
    sh = jnp.sum(stats_h, axis=(0, 1))          # (C,4): [sum c, sum c^2, sum d, sum |d|]
    sv = jnp.sum(stats_v, axis=1)               # (2,C,4)
    mean_c = jnp.sum(sh[:, 0]) / (c_ * n1)
    mean_d = jnp.sum(sh[:, 2]) / (c_ * n1)
    mean_abs_d = jnp.sum(sh[:, 3]) / (c_ * n1)
    mean_ll = jnp.sum(sv[0, :, 0]) / (c_ * nv)
    mean_abs_lh = jnp.sum(sv[0, :, 3]) / (c_ * nv)
    mean_hl = jnp.sum(sv[1, :, 0]) / (c_ * nv)
    mean_abs_hh = jnp.sum(sv[1, :, 3]) / (c_ * nv)

    rd = REGU_DETAILS * (mean_abs_d + mean_abs_lh + mean_abs_hh)
    rc = (REGU_APPROX * jnp.abs(mean_c - mean_ll)       # torch.dist(c.mean(),  LL.mean())
          + REGU_APPROX * jnp.abs(mean_ll - mean_c)     # torch.dist(LL.mean(), c.mean())
          + REGU_APPROX * jnp.abs(mean_hl - mean_d))    # torch.dist(HL.mean(), d.mean())
    r = rd + rc

    # training-mode BatchNorm2d (biased batch variance) + ReLU on LL (disable_conv bottleneck)
    # TODO(synk): BatchNorm running-statistic updates (training-state bookkeeping) not modeled.
    ll_mean = sv[0, :, 0] / nv
    ll_var = sv[0, :, 1] / nv - ll_mean * ll_mean
    scale = (params["bn_gamma"] * jax.lax.rsqrt(ll_var + BN_EPS)).reshape(c_, 1)
    shift = (params["bn_beta"] - ll_mean * scale[:, 0]).reshape(c_, 1)
    out_flat = bn_relu_apply_pallas(cv, scale, shift)                      # (C, nv)

    # ---- back to NCHW ----
    out = jnp.transpose(out_flat.reshape(c_, b, w2, h2), (1, 0, 3, 2))     # (B,C,H2,W2)
    det = jnp.stack([dv[0], cv[1], dv[1]])                                 # LH, HL, HH
    details = jnp.transpose(det.reshape(3, c_, b, w2, h2),
                            (2, 0, 1, 4, 3)).reshape(b, 3 * c_, h2, w2)
    return out, r, details


# ----------------------------------------------------------------------------
# Pure-JAX reference (independent reflection-pad im2col + HIGHEST-precision dots)
# ----------------------------------------------------------------------------
def _pu_ref(x_flat, row_len, net):
    w1, b1, w2, b2 = net
    c_, n = x_flat.shape
    rows = x_flat.reshape(c_, n // row_len, row_len)
    xp = jnp.pad(rows, ((0, 0), (0, 0), (PAD_L, K - 1 - PAD_L)), mode="reflect")
    cols = jnp.concatenate([xp[:, :, t:t + row_len] for t in range(K)], axis=0).reshape(K * c_, n)
    hp = jax.lax.Precision.HIGHEST
    hidden = jnp.maximum(jnp.dot(w1, cols, precision=hp) + b1, 0.0)
    return jnp.tanh(jnp.dot(w2, hidden, precision=hp) + b2)


def level_dawn_forward_ref(x_nchw, params):
    x = x_nchw.astype(jnp.float32)
    b, c_, h, w = x.shape
    h2, w2 = h // 2, w // 2

    xc = jnp.transpose(x, (1, 0, 2, 3))
    even = xc[..., 0::2].reshape(c_, b * h * w2)
    odd = xc[..., 1::2].reshape(c_, b * h * w2)
    c_flat = even + _pu_ref(odd, w2, params["level1"]["U"])
    d_flat = odd - _pu_ref(c_flat, w2, params["level1"]["P"])

    def split_h(flat):
        t = jnp.transpose(flat.reshape(c_, b, h, w2), (0, 1, 3, 2))
        return (t[..., 0::2].reshape(c_, b * w2 * h2), t[..., 1::2].reshape(c_, b * w2 * h2))

    ec, oc = split_h(c_flat)
    ll = ec + _pu_ref(oc, h2, params["level2_1"]["U"])
    lh = oc - _pu_ref(ll, h2, params["level2_1"]["P"])
    ed, od = split_h(d_flat)
    hl = ed + _pu_ref(od, h2, params["level2_2"]["U"])
    hh = od - _pu_ref(hl, h2, params["level2_2"]["P"])

    rd = REGU_DETAILS * (jnp.mean(jnp.abs(d_flat)) + jnp.mean(jnp.abs(lh)) + jnp.mean(jnp.abs(hh)))
    rc = (REGU_APPROX * jnp.abs(jnp.mean(c_flat) - jnp.mean(ll))
          + REGU_APPROX * jnp.abs(jnp.mean(ll) - jnp.mean(c_flat))
          + REGU_APPROX * jnp.abs(jnp.mean(hl) - jnp.mean(d_flat)))
    r = rd + rc

    mean = jnp.mean(ll, axis=1, keepdims=True)
    var = jnp.mean(jnp.square(ll - mean), axis=1, keepdims=True)
    y = ((ll - mean) * jax.lax.rsqrt(var + BN_EPS) * params["bn_gamma"].reshape(-1, 1)
         + params["bn_beta"].reshape(-1, 1))
    out_flat = jnp.maximum(y, 0.0)

    def to_nchw(flat):
        return jnp.transpose(flat.reshape(c_, b, w2, h2), (1, 0, 3, 2))

    details = jnp.concatenate([to_nchw(lh), to_nchw(hl), to_nchw(hh)], axis=1)
    return to_nchw(out_flat), r, details


# ----------------------------------------------------------------------------
# Deterministic parameter init (PyTorch Conv2d shapes, flattened channel-major)
# ----------------------------------------------------------------------------
def _init_pu_net(key, horizontal):
    ka, kb, kc, kd = jax.random.split(key, 4)
    if horizontal:
        w1 = 0.1 * jax.random.normal(ka, (HID, C, 1, K), jnp.float32)    # Conv2d(C, 2C, (1,K))
        w1_flat = jnp.transpose(w1[:, :, 0, :], (0, 2, 1)).reshape(HID, K * C)
    else:
        w1 = 0.1 * jax.random.normal(ka, (HID, C, K, 1), jnp.float32)    # Conv2d(C, 2C, (K,1))
        w1_flat = jnp.transpose(w1[:, :, :, 0], (0, 2, 1)).reshape(HID, K * C)
    b1 = 0.05 * jax.random.normal(kb, (HID,), jnp.float32)
    w2 = 0.1 * jax.random.normal(kc, (C, HID, 1, 1), jnp.float32)        # Conv2d(2C, C, 1x1)
    b2 = 0.05 * jax.random.normal(kd, (C,), jnp.float32)
    # channel-major flattening: w1_flat[o, t*C + c] = conv_w[o, c, tap t]; biases as columns
    return (w1_flat, b1.reshape(HID, 1), w2[:, :, 0, 0], b2.reshape(C, 1))


def _init_lifting(key, horizontal):
    kp, ku = jax.random.split(key)
    return {"P": _init_pu_net(kp, horizontal), "U": _init_pu_net(ku, horizontal)}


def init_params(key):
    k1, k2, k3 = jax.random.split(key, 3)
    return {
        "level1": _init_lifting(k1, horizontal=True),
        "level2_1": _init_lifting(k2, horizontal=False),
        "level2_2": _init_lifting(k3, horizontal=False),
        "bn_gamma": jnp.ones((C,), jnp.float32),     # BatchNorm2d default init
        "bn_beta": jnp.zeros((C,), jnp.float32),
    }


# ----------------------------------------------------------------------------
if __name__ == "__main__":
    key = jax.random.PRNGKey(0)
    kx, kp = jax.random.split(key)
    x = jax.random.normal(kx, (2, C, 16, 16), jnp.float32)   # NCHW like the PyTorch module
    params = init_params(kp)

    fwd = jax.jit(level_dawn_forward)
    out, r, details = fwd(x, params)
    jax.block_until_ready((out, r, details))

    assert out.shape == (2, C, 8, 8), out.shape
    assert details.shape == (2, 3 * C, 8, 8), details.shape
    assert r.shape == (), r.shape

    out_ref, r_ref, det_ref = level_dawn_forward_ref(x, params)
    np.testing.assert_allclose(np.asarray(out), np.asarray(out_ref), rtol=1e-4, atol=1e-4)
    np.testing.assert_allclose(np.asarray(details), np.asarray(det_ref), rtol=1e-4, atol=1e-4)
    np.testing.assert_allclose(float(r), float(r_ref), rtol=1e-4, atol=1e-4)

    print("KERNEL_OK")
</pallas_src>

<mosaic_0001>
module attributes {stable_mosaic.version = 11 : i64} {
  func.func @_lifting_kernel(%arg0: i32, %arg1: i32, %arg2: memref<1x4x256xf32, #tpu.memory_space<vmem>>, %arg3: memref<1x4x256xf32, #tpu.memory_space<vmem>>, %arg4: memref<1x2x8x26xf32, #tpu.memory_space<vmem>>, %arg5: memref<1x4x256xf32, #tpu.memory_space<vmem>>, %arg6: memref<1x4x256xf32, #tpu.memory_space<vmem>>, %arg7: memref<1x1x4x4xf32, #tpu.memory_space<vmem>>) attributes {dimension_semantics = [#tpu.dimension_semantics<parallel>, #tpu.dimension_semantics<parallel>], iteration_bounds = array<i64: 1, 1>, scalar_prefetch = 0 : i64, scratch_operands = 0 : i64, tpu.core_type = #tpu.core_type<tc>, window_params = [{transform_indices = @transform_0, window_bounds = array<i64: 1, 4, 256>}, {transform_indices = @transform_1, window_bounds = array<i64: 1, 4, 256>}, {transform_indices = @transform_2, window_bounds = array<i64: 1, 2, 8, 26>}, {transform_indices = @transform_3, window_bounds = array<i64: 1, 4, 256>}, {transform_indices = @transform_4, window_bounds = array<i64: 1, 4, 256>}, {transform_indices = @transform_5, window_bounds = array<i64: 1, 1, 4, 4>}]} {
    %c0 = arith.constant 0 : index
    %c0_0 = arith.constant 0 : index
    %c0_1 = arith.constant 0 : index
    %0 = vector.load %arg2[%c0, %c0_0, %c0_1] : memref<1x4x256xf32, #tpu.memory_space<vmem>>, vector<1x4x256xf32>
    %1 = vector.shape_cast %0 : vector<1x4x256xf32> to vector<4x256xf32>
    %c0_2 = arith.constant 0 : index
    %c0_3 = arith.constant 0 : index
    %c0_4 = arith.constant 0 : index
    %2 = vector.load %arg3[%c0_2, %c0_3, %c0_4] : memref<1x4x256xf32, #tpu.memory_space<vmem>>, vector<1x4x256xf32>
    %3 = vector.shape_cast %2 : vector<1x4x256xf32> to vector<4x256xf32>
    %c0_5 = arith.constant 0 : index
    %c0_6 = arith.constant 0 : index
    %c0_7 = arith.constant 0 : index
    %c0_8 = arith.constant 0 : index
    %4 = vector.load %arg4[%c0_5, %c0_6, %c0_7, %c0_8] : memref<1x2x8x26xf32, #tpu.memory_space<vmem>>, vector<1x2x8x26xf32>
    %5 = vector.shape_cast %4 : vector<1x2x8x26xf32> to vector<2x8x26xf32>
    %6 = tpu.iota {dimensions = array<i32: 1>} : vector<4x256xi32>
    %c8_i32 = arith.constant 8 : i32
    %c0_i32 = arith.constant 0 : i32
    %7 = arith.cmpi eq, %c8_i32, %c0_i32 : i32
    %c1_i32 = arith.constant 1 : i32
    %8 = arith.select %7, %c1_i32, %c8_i32 : i32
    %9 = vector.broadcast %8 : i32 to vector<4x256xi32>
    %10 = arith.remsi %6, %9 : vector<4x256xi32>
    %c0_i32_9 = arith.constant 0 : i32
    %11 = vector.broadcast %c0_i32_9 : i32 to vector<4x256xi32>
    %12 = arith.cmpi ne, %10, %11 : vector<4x256xi32>
    %c0_i32_10 = arith.constant 0 : i32
    %13 = vector.broadcast %c0_i32_10 : i32 to vector<4x256xi32>
    %14 = arith.cmpi slt, %10, %13 : vector<4x256xi32>
    %c0_i32_11 = arith.constant 0 : i32
    %15 = arith.cmpi slt, %8, %c0_i32_11 : i32
    %16 = vector.broadcast %15 : i1 to vector<4x256xi1>
    %17 = vector.broadcast %16 : vector<4x256xi1> to vector<4x256xi1>
    %18 = arith.xori %14, %17 : vector<4x256xi1>
    %19 = arith.andi %18, %12 : vector<4x256xi1>
    %20 = vector.broadcast %8 : i32 to vector<4x256xi32>
    %21 = arith.addi %10, %20 : vector<4x256xi32>
    %22 = arith.select %19, %21, %10 : vector<4x256xi1>, vector<4x256xi32>
    %c0_i32_12 = arith.constant 0 : i32
    %23 = vector.broadcast %c0_i32_12 : i32 to vector<4x256xi32>
    %24 = arith.cmpi eq, %22, %23 : vector<4x256xi32>
    %c1_i32_13 = arith.constant 1 : i32
    %25 = vector.broadcast %c1_i32_13 : i32 to vector<4x256xi32>
    %26 = arith.cmpi eq, %22, %25 : vector<4x256xi32>
    %c7_i32 = arith.constant 7 : i32
    %27 = vector.broadcast %c7_i32 : i32 to vector<4x256xi32>
    %28 = arith.cmpi eq, %22, %27 : vector<4x256xi32>
    %29 = vector.extract_strided_slice %5 {offsets = [0, 0, 0], sizes = [1, 8, 26], strides = [1, 1, 1]} : vector<2x8x26xf32> to vector<1x8x26xf32>
    %30 = vector.shape_cast %29 : vector<1x8x26xf32> to vector<8x26xf32>
    %31 = vector.extract_strided_slice %30 {offsets = [0, 0], sizes = [8, 16], strides = [1, 1]} : vector<8x26xf32> to vector<8x16xf32>
    %32 = vector.extract_strided_slice %30 {offsets = [0, 16], sizes = [8, 1], strides = [1, 1]} : vector<8x26xf32> to vector<8x1xf32>
    %33 = vector.extract_strided_slice %30 {offsets = [0, 17], sizes = [4, 8], strides = [1, 1]} : vector<8x26xf32> to vector<4x8xf32>
    %34 = vector.extract_strided_slice %30 {offsets = [0, 25], sizes = [4, 1], strides = [1, 1]} : vector<8x26xf32> to vector<4x1xf32>
    %c2_i32 = arith.constant 2 : i32
    %35 = tpu.dynamic_rotate %3 by %c2_i32 dim 1 : vector<4x256xf32>, i32 -> vector<4x256xf32>
    %c254_i32 = arith.constant 254 : i32
    %36 = tpu.dynamic_rotate %3 by %c254_i32 dim 1 : vector<4x256xf32>, i32 -> vector<4x256xf32>
    %37 = arith.select %24, %36, %35 : vector<4x256xi1>, vector<4x256xf32>
    %38 = arith.select %26, %3, %37 : vector<4x256xi1>, vector<4x256xf32>
    %c1_i32_14 = arith.constant 1 : i32
    %39 = tpu.dynamic_rotate %3 by %c1_i32_14 dim 1 : vector<4x256xf32>, i32 -> vector<4x256xf32>
    %c255_i32 = arith.constant 255 : i32
    %40 = tpu.dynamic_rotate %3 by %c255_i32 dim 1 : vector<4x256xf32>, i32 -> vector<4x256xf32>
    %41 = arith.select %24, %40, %39 : vector<4x256xi1>, vector<4x256xf32>
    %42 = arith.select %28, %39, %40 : vector<4x256xi1>, vector<4x256xf32>
    %cst = arith.constant 0.000000e+00 : f32
    %43 = vector.broadcast %cst : f32 to vector<8x256xf32>
    %44 = vector.extract_strided_slice %31 {offsets = [0, 0], sizes = [8, 1], strides = [1, 1]} : vector<8x16xf32> to vector<8x1xf32>
    %45 = vector.extract_strided_slice %38 {offsets = [0, 0], sizes = [1, 256], strides = [1, 1]} : vector<4x256xf32> to vector<1x256xf32>
    %46 = vector.broadcast %44 : vector<8x1xf32> to vector<8x256xf32>
    %47 = vector.broadcast %45 : vector<1x256xf32> to vector<8x256xf32>
    %48 = arith.mulf %46, %47 : vector<8x256xf32>
    %49 = arith.addf %43, %48 : vector<8x256xf32>
    %50 = vector.extract_strided_slice %31 {offsets = [0, 1], sizes = [8, 1], strides = [1, 1]} : vector<8x16xf32> to vector<8x1xf32>
    %51 = vector.extract_strided_slice %38 {offsets = [1, 0], sizes = [1, 256], strides = [1, 1]} : vector<4x256xf32> to vector<1x256xf32>
    %52 = vector.broadcast %50 : vector<8x1xf32> to vector<8x256xf32>
    %53 = vector.broadcast %51 : vector<1x256xf32> to vector<8x256xf32>
    %54 = arith.mulf %52, %53 : vector<8x256xf32>
    %55 = arith.addf %49, %54 : vector<8x256xf32>
    %56 = vector.extract_strided_slice %31 {offsets = [0, 2], sizes = [8, 1], strides = [1, 1]} : vector<8x16xf32> to vector<8x1xf32>
    %57 = vector.extract_strided_slice %38 {offsets = [2, 0], sizes = [1, 256], strides = [1, 1]} : vector<4x256xf32> to vector<1x256xf32>
    %58 = vector.broadcast %56 : vector<8x1xf32> to vector<8x256xf32>
    %59 = vector.broadcast %57 : vector<1x256xf32> to vector<8x256xf32>
    %60 = arith.mulf %58, %59 : vector<8x256xf32>
    %61 = arith.addf %55, %60 : vector<8x256xf32>
    %62 = vector.extract_strided_slice %31 {offsets = [0, 3], sizes = [8, 1], strides = [1, 1]} : vector<8x16xf32> to vector<8x1xf32>
    %63 = vector.extract_strided_slice %38 {offsets = [3, 0], sizes = [1, 256], strides = [1, 1]} : vector<4x256xf32> to vector<1x256xf32>
    %64 = vector.broadcast %62 : vector<8x1xf32> to vector<8x256xf32>
    %65 = vector.broadcast %63 : vector<1x256xf32> to vector<8x256xf32>
    %66 = arith.mulf %64, %65 : vector<8x256xf32>
    %67 = arith.addf %61, %66 : vector<8x256xf32>
    %68 = vector.extract_strided_slice %31 {offsets = [0, 4], sizes = [8, 1], strides = [1, 1]} : vector<8x16xf32> to vector<8x1xf32>
    %69 = vector.extract_strided_slice %41 {offsets = [0, 0], sizes = [1, 256], strides = [1, 1]} : vector<4x256xf32> to vector<1x256xf32>
    %70 = vector.broadcast %68 : vector<8x1xf32> to vector<8x256xf32>
    %71 = vector.broadcast %69 : vector<1x256xf32> to vector<8x256xf32>
    %72 = arith.mulf %70, %71 : vector<8x256xf32>
    %73 = arith.addf %67, %72 : vector<8x256xf32>
    %74 = vector.extract_strided_slice %31 {offsets = [0, 5], sizes = [8, 1], strides = [1, 1]} : vector<8x16xf32> to vector<8x1xf32>
    %75 = vector.extract_strided_slice %41 {offsets = [1, 0], sizes = [1, 256], strides = [1, 1]} : vector<4x256xf32> to vector<1x256xf32>
    %76 = vector.broadcast %74 : vector<8x1xf32> to vector<8x256xf32>
    %77 = vector.broadcast %75 : vector<1x256xf32> to vector<8x256xf32>
    %78 = arith.mulf %76, %77 : vector<8x256xf32>
    %79 = arith.addf %73, %78 : vector<8x256xf32>
    %80 = vector.extract_strided_slice %31 {offsets = [0, 6], sizes = [8, 1], strides = [1, 1]} : vector<8x16xf32> to vector<8x1xf32>
    %81 = vector.extract_strided_slice %41 {offsets = [2, 0], sizes = [1, 256], strides = [1, 1]} : vector<4x256xf32> to vector<1x256xf32>
    %82 = vector.broadcast %80 : vector<8x1xf32> to vector<8x256xf32>
    %83 = vector.broadcast %81 : vector<1x256xf32> to vector<8x256xf32>
    %84 = arith.mulf %82, %83 : vector<8x256xf32>
    %85 = arith.addf %79, %84 : vector<8x256xf32>
    %86 = vector.extract_strided_slice %31 {offsets = [0, 7], sizes = [8, 1], strides = [1, 1]} : vector<8x16xf32> to vector<8x1xf32>
    %87 = vector.extract_strided_slice %41 {offsets = [3, 0], sizes = [1, 256], strides = [1, 1]} : vector<4x256xf32> to vector<1x256xf32>
    %88 = vector.broadcast %86 : vector<8x1xf32> to vector<8x256xf32>
    %89 = vector.broadcast %87 : vector<1x256xf32> to vector<8x256xf32>
    %90 = arith.mulf %88, %89 : vector<8x256xf32>
    %91 = arith.addf %85, %90 : vector<8x256xf32>
    %92 = vector.extract_strided_slice %31 {offsets = [0, 8], sizes = [8, 1], strides = [1, 1]} : vector<8x16xf32> to vector<8x1xf32>
    %93 = vector.extract_strided_slice %3 {offsets = [0, 0], sizes = [1, 256], strides = [1, 1]} : vector<4x256xf32> to vector<1x256xf32>
    %94 = vector.broadcast %92 : vector<8x1xf32> to vector<8x256xf32>
    %95 = vector.broadcast %93 : vector<1x256xf32> to vector<8x256xf32>
    %96 = arith.mulf %94, %95 : vector<8x256xf32>
    %97 = arith.addf %91, %96 : vector<8x256xf32>
    %98 = vector.extract_strided_slice %31 {offsets = [0, 9], sizes = [8, 1], strides = [1, 1]} : vector<8x16xf32> to vector<8x1xf32>
    %99 = vector.extract_strided_slice %3 {offsets = [1, 0], sizes = [1, 256], strides = [1, 1]} : vector<4x256xf32> to vector<1x256xf32>
    %100 = vector.broadcast %98 : vector<8x1xf32> to vector<8x256xf32>
    %101 = vector.broadcast %99 : vector<1x256xf32> to vector<8x256xf32>
    %102 = arith.mulf %100, %101 : vector<8x256xf32>
    %103 = arith.addf %97, %102 : vector<8x256xf32>
    %104 = vector.extract_strided_slice %31 {offsets = [0, 10], sizes = [8, 1], strides = [1, 1]} : vector<8x16xf32> to vector<8x1xf32>
    %105 = vector.extract_strided_slice %3 {offsets = [2, 0], sizes = [1, 256], strides = [1, 1]} : vector<4x256xf32> to vector<1x256xf32>
    %106 = vector.broadcast %104 : vector<8x1xf32> to vector<8x256xf32>
    %107 = vector.broadcast %105 : vector<1x256xf32> to vector<8x256xf32>
    %108 = arith.mulf %106, %107 : vector<8x256xf32>
    %109 = arith.addf %103, %108 : vector<8x256xf32>
    %110 = vector.extract_strided_slice %31 {offsets = [0, 11], sizes = [8, 1], strides = [1, 1]} : vector<8x16xf32> to vector<8x1xf32>
    %111 = vector.extract_strided_slice %3 {offsets = [3, 0], sizes = [1, 256], strides = [1, 1]} : vector<4x256xf32> to vector<1x256xf32>
    %112 = vector.broadcast %110 : vector<8x1xf32> to vector<8x256xf32>
    %113 = vector.broadcast %111 : vector<1x256xf32> to vector<8x256xf32>
    %114 = arith.mulf %112, %113 : vector<8x256xf32>
    %115 = arith.addf %109, %114 : vector<8x256xf32>
    %116 = vector.extract_strided_slice %31 {offsets = [0, 12], sizes = [8, 1], strides = [1, 1]} : vector<8x16xf32> to vector<8x1xf32>
    %117 = vector.extract_strided_slice %42 {offsets = [0, 0], sizes = [1, 256], strides = [1, 1]} : vector<4x256xf32> to vector<1x256xf32>
    %118 = vector.broadcast %116 : vector<8x1xf32> to vector<8x256xf32>
    %119 = vector.broadcast %117 : vector<1x256xf32> to vector<8x256xf32>
    %120 = arith.mulf %118, %119 : vector<8x256xf32>
    %121 = arith.addf %115, %120 : vector<8x256xf32>
    %122 = vector.extract_strided_slice %31 {offsets = [0, 13], sizes = [8, 1], strides = [1, 1]} : vector<8x16xf32> to vector<8x1xf32>
    %123 = vector.extract_strided_slice %42 {offsets = [1, 0], sizes = [1, 256], strides = [1, 1]} : vector<4x256xf32> to vector<1x256xf32>
    %124 = vector.broadcast %122 : vector<8x1xf32> to vector<8x256xf32>
    %125 = vector.broadcast %123 : vector<1x256xf32> to vector<8x256xf32>
    %126 = arith.mulf %124, %125 : vector<8x256xf32>
    %127 = arith.addf %121, %126 : vector<8x256xf32>
    %128 = vector.extract_strided_slice %31 {offsets = [0, 14], sizes = [8, 1], strides = [1, 1]} : vector<8x16xf32> to vector<8x1xf32>
    %129 = vector.extract_strided_slice %42 {offsets = [2, 0], sizes = [1, 256], strides = [1, 1]} : vector<4x256xf32> to vector<1x256xf32>
    %130 = vector.broadcast %128 : vector<8x1xf32> to vector<8x256xf32>
    %131 = vector.broadcast %129 : vector<1x256xf32> to vector<8x256xf32>
    %132 = arith.mulf %130, %131 : vector<8x256xf32>
    %133 = arith.addf %127, %132 : vector<8x256xf32>
    %134 = vector.extract_strided_slice %31 {offsets = [0, 15], sizes = [8, 1], strides = [1, 1]} : vector<8x16xf32> to vector<8x1xf32>
    %135 = vector.extract_strided_slice %42 {offsets = [3, 0], sizes = [1, 256], strides = [1, 1]} : vector<4x256xf32> to vector<1x256xf32>
    %136 = vector.broadcast %134 : vector<8x1xf32> to vector<8x256xf32>
    %137 = vector.broadcast %135 : vector<1x256xf32> to vector<8x256xf32>
    %138 = arith.mulf %136, %137 : vector<8x256xf32>
    %139 = arith.addf %133, %138 : vector<8x256xf32>
    %140 = vector.broadcast %32 : vector<8x1xf32> to vector<8x256xf32>
    %141 = arith.addf %139, %140 : vector<8x256xf32>
    %cst_15 = arith.constant 0.000000e+00 : f32
    %142 = vector.broadcast %cst_15 : f32 to vector<8x256xf32>
    %143 = arith.maximumf %141, %142 : vector<8x256xf32>
    %cst_16 = arith.constant 0.000000e+00 : f32
    %144 = vector.broadcast %cst_16 : f32 to vector<4x256xf32>
    %145 = vector.extract_strided_slice %33 {offsets = [0, 0], sizes = [4, 1], strides = [1, 1]} : vector<4x8xf32> to vector<4x1xf32>
    %146 = vector.extract_strided_slice %143 {offsets = [0, 0], sizes = [1, 256], strides = [1, 1]} : vector<8x256xf32> to vector<1x256xf32>
    %147 = vector.broadcast %145 : vector<4x1xf32> to vector<4x256xf32>
    %148 = vector.broadcast %146 : vector<1x256xf32> to vector<4x256xf32>
    %149 = arith.mulf %147, %148 : vector<4x256xf32>
    %150 = arith.addf %144, %149 : vector<4x256xf32>
    %151 = vector.extract_strided_slice %33 {offsets = [0, 1], sizes = [4, 1], strides = [1, 1]} : vector<4x8xf32> to vector<4x1xf32>
    %152 = vector.extract_strided_slice %143 {offsets = [1, 0], sizes = [1, 256], strides = [1, 1]} : vector<8x256xf32> to vector<1x256xf32>
    %153 = vector.broadcast %151 : vector<4x1xf32> to vector<4x256xf32>
    %154 = vector.broadcast %152 : vector<1x256xf32> to vector<4x256xf32>
    %155 = arith.mulf %153, %154 : vector<4x256xf32>
    %156 = arith.addf %150, %155 : vector<4x256xf32>
    %157 = vector.extract_strided_slice %33 {offsets = [0, 2], sizes = [4, 1], strides = [1, 1]} : vector<4x8xf32> to vector<4x1xf32>
    %158 = vector.extract_strided_slice %143 {offsets = [2, 0], sizes = [1, 256], strides = [1, 1]} : vector<8x256xf32> to vector<1x256xf32>
    %159 = vector.broadcast %157 : vector<4x1xf32> to vector<4x256xf32>
    %160 = vector.broadcast %158 : vector<1x256xf32> to vector<4x256xf32>
    %161 = arith.mulf %159, %160 : vector<4x256xf32>
    %162 = arith.addf %156, %161 : vector<4x256xf32>
    %163 = vector.extract_strided_slice %33 {offsets = [0, 3], sizes = [4, 1], strides = [1, 1]} : vector<4x8xf32> to vector<4x1xf32>
    %164 = vector.extract_strided_slice %143 {offsets = [3, 0], sizes = [1, 256], strides = [1, 1]} : vector<8x256xf32> to vector<1x256xf32>
    %165 = vector.broadcast %163 : vector<4x1xf32> to vector<4x256xf32>
    %166 = vector.broadcast %164 : vector<1x256xf32> to vector<4x256xf32>
    %167 = arith.mulf %165, %166 : vector<4x256xf32>
    %168 = arith.addf %162, %167 : vector<4x256xf32>
    %169 = vector.extract_strided_slice %33 {offsets = [0, 4], sizes = [4, 1], strides = [1, 1]} : vector<4x8xf32> to vector<4x1xf32>
    %170 = vector.extract_strided_slice %143 {offsets = [4, 0], sizes = [1, 256], strides = [1, 1]} : vector<8x256xf32> to vector<1x256xf32>
    %171 = vector.broadcast %169 : vector<4x1xf32> to vector<4x256xf32>
    %172 = vector.broadcast %170 : vector<1x256xf32> to vector<4x256xf32>
    %173 = arith.mulf %171, %172 : vector<4x256xf32>
    %174 = arith.addf %168, %173 : vector<4x256xf32>
    %175 = vector.extract_strided_slice %33 {offsets = [0, 5], sizes = [4, 1], strides = [1, 1]} : vector<4x8xf32> to vector<4x1xf32>
    %176 = vector.extract_strided_slice %143 {offsets = [5, 0], sizes = [1, 256], strides = [1, 1]} : vector<8x256xf32> to vector<1x256xf32>
    %177 = vector.broadcast %175 : vector<4x1xf32> to vector<4x256xf32>
    %178 = vector.broadcast %176 : vector<1x256xf32> to vector<4x256xf32>
    %179 = arith.mulf %177, %178 : vector<4x256xf32>
    %180 = arith.addf %174, %179 : vector<4x256xf32>
    %181 = vector.extract_strided_slice %33 {offsets = [0, 6], sizes = [4, 1], strides = [1, 1]} : vector<4x8xf32> to vector<4x1xf32>
    %182 = vector.extract_strided_slice %143 {offsets = [6, 0], sizes = [1, 256], strides = [1, 1]} : vector<8x256xf32> to vector<1x256xf32>
    %183 = vector.broadcast %181 : vector<4x1xf32> to vector<4x256xf32>
    %184 = vector.broadcast %182 : vector<1x256xf32> to vector<4x256xf32>
    %185 = arith.mulf %183, %184 : vector<4x256xf32>
    %186 = arith.addf %180, %185 : vector<4x256xf32>
    %187 = vector.extract_strided_slice %33 {offsets = [0, 7], sizes = [4, 1], strides = [1, 1]} : vector<4x8xf32> to vector<4x1xf32>
    %188 = vector.extract_strided_slice %143 {offsets = [7, 0], sizes = [1, 256], strides = [1, 1]} : vector<8x256xf32> to vector<1x256xf32>
    %189 = vector.broadcast %187 : vector<4x1xf32> to vector<4x256xf32>
    %190 = vector.broadcast %188 : vector<1x256xf32> to vector<4x256xf32>
    %191 = arith.mulf %189, %190 : vector<4x256xf32>
    %192 = arith.addf %186, %191 : vector<4x256xf32>
    %193 = vector.broadcast %34 : vector<4x1xf32> to vector<4x256xf32>
    %194 = arith.addf %192, %193 : vector<4x256xf32>
    %195 = math.tanh %194 : vector<4x256xf32>
    %196 = arith.addf %1, %195 : vector<4x256xf32>
    %197 = vector.extract_strided_slice %5 {offsets = [1, 0, 0], sizes = [1, 8, 26], strides = [1, 1, 1]} : vector<2x8x26xf32> to vector<1x8x26xf32>
    %198 = vector.shape_cast %197 : vector<1x8x26xf32> to vector<8x26xf32>
    %199 = vector.extract_strided_slice %198 {offsets = [0, 0], sizes = [8, 16], strides = [1, 1]} : vector<8x26xf32> to vector<8x16xf32>
    %200 = vector.extract_strided_slice %198 {offsets = [0, 16], sizes = [8, 1], strides = [1, 1]} : vector<8x26xf32> to vector<8x1xf32>
    %201 = vector.extract_strided_slice %198 {offsets = [0, 17], sizes = [4, 8], strides = [1, 1]} : vector<8x26xf32> to vector<4x8xf32>
    %202 = vector.extract_strided_slice %198 {offsets = [0, 25], sizes = [4, 1], strides = [1, 1]} : vector<8x26xf32> to vector<4x1xf32>
    %c2_i32_17 = arith.constant 2 : i32
    %203 = tpu.dynamic_rotate %196 by %c2_i32_17 dim 1 : vector<4x256xf32>, i32 -> vector<4x256xf32>
    %c254_i32_18 = arith.constant 254 : i32
    %204 = tpu.dynamic_rotate %196 by %c254_i32_18 dim 1 : vector<4x256xf32>, i32 -> vector<4x256xf32>
    %205 = arith.select %24, %204, %203 : vector<4x256xi1>, vector<4x256xf32>
    %206 = arith.select %26, %196, %205 : vector<4x256xi1>, vector<4x256xf32>
    %c1_i32_19 = arith.constant 1 : i32
    %207 = tpu.dynamic_rotate %196 by %c1_i32_19 dim 1 : vector<4x256xf32>, i32 -> vector<4x256xf32>
    %c255_i32_20 = arith.constant 255 : i32
    %208 = tpu.dynamic_rotate %196 by %c255_i32_20 dim 1 : vector<4x256xf32>, i32 -> vector<4x256xf32>
    %209 = arith.select %24, %208, %207 : vector<4x256xi1>, vector<4x256xf32>
    %210 = arith.select %28, %207, %208 : vector<4x256xi1>, vector<4x256xf32>
    %cst_21 = arith.constant 0.000000e+00 : f32
    %211 = vector.broadcast %cst_21 : f32 to vector<8x256xf32>
    %212 = vector.extract_strided_slice %199 {offsets = [0, 0], sizes = [8, 1], strides = [1, 1]} : vector<8x16xf32> to vector<8x1xf32>
    %213 = vector.extract_strided_slice %206 {offsets = [0, 0], sizes = [1, 256], strides = [1, 1]} : vector<4x256xf32> to vector<1x256xf32>
    %214 = vector.broadcast %212 : vector<8x1xf32> to vector<8x256xf32>
    %215 = vector.broadcast %213 : vector<1x256xf32> to vector<8x256xf32>
    %216 = arith.mulf %214, %215 : vector<8x256xf32>
    %217 = arith.addf %211, %216 : vector<8x256xf32>
    %218 = vector.extract_strided_slice %199 {offsets = [0, 1], sizes = [8, 1], strides = [1, 1]} : vector<8x16xf32> to vector<8x1xf32>
    %219 = vector.extract_strided_slice %206 {offsets = [1, 0], sizes = [1, 256], strides = [1, 1]} : vector<4x256xf32> to vector<1x256xf32>
    %220 = vector.broadcast %218 : vector<8x1xf32> to vector<8x256xf32>
    %221 = vector.broadcast %219 : vector<1x256xf32> to vector<8x256xf32>
    %222 = arith.mulf %220, %221 : vector<8x256xf32>
    %223 = arith.addf %217, %222 : vector<8x256xf32>
    %224 = vector.extract_strided_slice %199 {offsets = [0, 2], sizes = [8, 1], strides = [1, 1]} : vector<8x16xf32> to vector<8x1xf32>
    %225 = vector.extract_strided_slice %206 {offsets = [2, 0], sizes = [1, 256], strides = [1, 1]} : vector<4x256xf32> to vector<1x256xf32>
    %226 = vector.broadcast %224 : vector<8x1xf32> to vector<8x256xf32>
    %227 = vector.broadcast %225 : vector<1x256xf32> to vector<8x256xf32>
    %228 = arith.mulf %226, %227 : vector<8x256xf32>
    %229 = arith.addf %223, %228 : vector<8x256xf32>
    %230 = vector.extract_strided_slice %199 {offsets = [0, 3], sizes = [8, 1], strides = [1, 1]} : vector<8x16xf32> to vector<8x1xf32>
    %231 = vector.extract_strided_slice %206 {offsets = [3, 0], sizes = [1, 256], strides = [1, 1]} : vector<4x256xf32> to vector<1x256xf32>
    %232 = vector.broadcast %230 : vector<8x1xf32> to vector<8x256xf32>
    %233 = vector.broadcast %231 : vector<1x256xf32> to vector<8x256xf32>
    %234 = arith.mulf %232, %233 : vector<8x256xf32>
    %235 = arith.addf %229, %234 : vector<8x256xf32>
    %236 = vector.extract_strided_slice %199 {offsets = [0, 4], sizes = [8, 1], strides = [1, 1]} : vector<8x16xf32> to vector<8x1xf32>
    %237 = vector.extract_strided_slice %209 {offsets = [0, 0], sizes = [1, 256], strides = [1, 1]} : vector<4x256xf32> to vector<1x256xf32>
    %238 = vector.broadcast %236 : vector<8x1xf32> to vector<8x256xf32>
    %239 = vector.broadcast %237 : vector<1x256xf32> to vector<8x256xf32>
    %240 = arith.mulf %238, %239 : vector<8x256xf32>
    %241 = arith.addf %235, %240 : vector<8x256xf32>
    %242 = vector.extract_strided_slice %199 {offsets = [0, 5], sizes = [8, 1], strides = [1, 1]} : vector<8x16xf32> to vector<8x1xf32>
    %243 = vector.extract_strided_slice %209 {offsets = [1, 0], sizes = [1, 256], strides = [1, 1]} : vector<4x256xf32> to vector<1x256xf32>
    %244 = vector.broadcast %242 : vector<8x1xf32> to vector<8x256xf32>
    %245 = vector.broadcast %243 : vector<1x256xf32> to vector<8x256xf32>
    %246 = arith.mulf %244, %245 : vector<8x256xf32>
    %247 = arith.addf %241, %246 : vector<8x256xf32>
    %248 = vector.extract_strided_slice %199 {offsets = [0, 6], sizes = [8, 1], strides = [1, 1]} : vector<8x16xf32> to vector<8x1xf32>
    %249 = vector.extract_strided_slice %209 {offsets = [2, 0], sizes = [1, 256], strides = [1, 1]} : vector<4x256xf32> to vector<1x256xf32>
    %250 = vector.broadcast %248 : vector<8x1xf32> to vector<8x256xf32>
    %251 = vector.broadcast %249 : vector<1x256xf32> to vector<8x256xf32>
    %252 = arith.mulf %250, %251 : vector<8x256xf32>
    %253 = arith.addf %247, %252 : vector<8x256xf32>
    %254 = vector.extract_strided_slice %199 {offsets = [0, 7], sizes = [8, 1], strides = [1, 1]} : vector<8x16xf32> to vector<8x1xf32>
    %255 = vector.extract_strided_slice %209 {offsets = [3, 0], sizes = [1, 256], strides = [1, 1]} : vector<4x256xf32> to vector<1x256xf32>
    %256 = vector.broadcast %254 : vector<8x1xf32> to vector<8x256xf32>
    %257 = vector.broadcast %255 : vector<1x256xf32> to vector<8x256xf32>
    %258 = arith.mulf %256, %257 : vector<8x256xf32>
    %259 = arith.addf %253, %258 : vector<8x256xf32>
    %260 = vector.extract_strided_slice %199 {offsets = [0, 8], sizes = [8, 1], strides = [1, 1]} : vector<8x16xf32> to vector<8x1xf32>
    %261 = vector.extract_strided_slice %196 {offsets = [0, 0], sizes = [1, 256], strides = [1, 1]} : vector<4x256xf32> to vector<1x256xf32>
    %262 = vector.broadcast %260 : vector<8x1xf32> to vector<8x256xf32>
    %263 = vector.broadcast %261 : vector<1x256xf32> to vector<8x256xf32>
    %264 = arith.mulf %262, %263 : vector<8x256xf32>
    %265 = arith.addf %259, %264 : vector<8x256xf32>
    %266 = vector.extract_strided_slice %199 {offsets = [0, 9], sizes = [8, 1], strides = [1, 1]} : vector<8x16xf32> to vector<8x1xf32>
    %267 = vector.extract_strided_slice %196 {offsets = [1, 0], sizes = [1, 256], strides = [1, 1]} : vector<4x256xf32> to vector<1x256xf32>
    %268 = vector.broadcast %266 : vector<8x1xf32> to vector<8x256xf32>
    %269 = vector.broadcast %267 : vector<1x256xf32> to vector<8x256xf32>
    %270 = arith.mulf %268, %269 : vector<8x256xf32>
    %271 = arith.addf %265, %270 : vector<8x256xf32>
    %272 = vector.extract_strided_slice %199 {offsets = [0, 10], sizes = [8, 1], strides = [1, 1]} : vector<8x16xf32> to vector<8x1xf32>
    %273 = vector.extract_strided_slice %196 {offsets = [2, 0], sizes = [1, 256], strides = [1, 1]} : vector<4x256xf32> to vector<1x256xf32>
    %274 = vector.broadcast %272 : vector<8x1xf32> to vector<8x256xf32>
    %275 = vector.broadcast %273 : vector<1x256xf32> to vector<8x256xf32>
    %276 = arith.mulf %274, %275 : vector<8x256xf32>
    %277 = arith.addf %271, %276 : vector<8x256xf32>
    %278 = vector.extract_strided_slice %199 {offsets = [0, 11], sizes = [8, 1], strides = [1, 1]} : vector<8x16xf32> to vector<8x1xf32>
    %279 = vector.extract_strided_slice %196 {offsets = [3, 0], sizes = [1, 256], strides = [1, 1]} : vector<4x256xf32> to vector<1x256xf32>
    %280 = vector.broadcast %278 : vector<8x1xf32> to vector<8x256xf32>
    %281 = vector.broadcast %279 : vector<1x256xf32> to vector<8x256xf32>
    %282 = arith.mulf %280, %281 : vector<8x256xf32>
    %283 = arith.addf %277, %282 : vector<8x256xf32>
    %284 = vector.extract_strided_slice %199 {offsets = [0, 12], sizes = [8, 1], strides = [1, 1]} : vector<8x16xf32> to vector<8x1xf32>
    %285 = vector.extract_strided_slice %210 {offsets = [0, 0], sizes = [1, 256], strides = [1, 1]} : vector<4x256xf32> to vector<1x256xf32>
    %286 = vector.broadcast %284 : vector<8x1xf32> to vector<8x256xf32>
    %287 = vector.broadcast %285 : vector<1x256xf32> to vector<8x256xf32>
    %288 = arith.mulf %286, %287 : vector<8x256xf32>
    %289 = arith.addf %283, %288 : vector<8x256xf32>
    %290 = vector.extract_strided_slice %199 {offsets = [0, 13], sizes = [8, 1], strides = [1, 1]} : vector<8x16xf32> to vector<8x1xf32>
    %291 = vector.extract_strided_slice %210 {offsets = [1, 0], sizes = [1, 256], strides = [1, 1]} : vector<4x256xf32> to vector<1x256xf32>
    %292 = vector.broadcast %290 : vector<8x1xf32> to vector<8x256xf32>
    %293 = vector.broadcast %291 : vector<1x256xf32> to vector<8x256xf32>
    %294 = arith.mulf %292, %293 : vector<8x256xf32>
    %295 = arith.addf %289, %294 : vector<8x256xf32>
    %296 = vector.extract_strided_slice %199 {offsets = [0, 14], sizes = [8, 1], strides = [1, 1]} : vector<8x16xf32> to vector<8x1xf32>
    %297 = vector.extract_strided_slice %210 {offsets = [2, 0], sizes = [1, 256], strides = [1, 1]} : vector<4x256xf32> to vector<1x256xf32>
    %298 = vector.broadcast %296 : vector<8x1xf32> to vector<8x256xf32>
    %299 = vector.broadcast %297 : vector<1x256xf32> to vector<8x256xf32>
    %300 = arith.mulf %298, %299 : vector<8x256xf32>
    %301 = arith.addf %295, %300 : vector<8x256xf32>
    %302 = vector.extract_strided_slice %199 {offsets = [0, 15], sizes = [8, 1], strides = [1, 1]} : vector<8x16xf32> to vector<8x1xf32>
    %303 = vector.extract_strided_slice %210 {offsets = [3, 0], sizes = [1, 256], strides = [1, 1]} : vector<4x256xf32> to vector<1x256xf32>
    %304 = vector.broadcast %302 : vector<8x1xf32> to vector<8x256xf32>
    %305 = vector.broadcast %303 : vector<1x256xf32> to vector<8x256xf32>
    %306 = arith.mulf %304, %305 : vector<8x256xf32>
    %307 = arith.addf %301, %306 : vector<8x256xf32>
    %308 = vector.broadcast %200 : vector<8x1xf32> to vector<8x256xf32>
    %309 = arith.addf %307, %308 : vector<8x256xf32>
    %cst_22 = arith.constant 0.000000e+00 : f32
    %310 = vector.broadcast %cst_22 : f32 to vector<8x256xf32>
    %311 = arith.maximumf %309, %310 : vector<8x256xf32>
    %cst_23 = arith.constant 0.000000e+00 : f32
    %312 = vector.broadcast %cst_23 : f32 to vector<4x256xf32>
    %313 = vector.extract_strided_slice %201 {offsets = [0, 0], sizes = [4, 1], strides = [1, 1]} : vector<4x8xf32> to vector<4x1xf32>
    %314 = vector.extract_strided_slice %311 {offsets = [0, 0], sizes = [1, 256], strides = [1, 1]} : vector<8x256xf32> to vector<1x256xf32>
    %315 = vector.broadcast %313 : vector<4x1xf32> to vector<4x256xf32>
    %316 = vector.broadcast %314 : vector<1x256xf32> to vector<4x256xf32>
    %317 = arith.mulf %315, %316 : vector<4x256xf32>
    %318 = arith.addf %312, %317 : vector<4x256xf32>
    %319 = vector.extract_strided_slice %201 {offsets = [0, 1], sizes = [4, 1], strides = [1, 1]} : vector<4x8xf32> to vector<4x1xf32>
    %320 = vector.extract_strided_slice %311 {offsets = [1, 0], sizes = [1, 256], strides = [1, 1]} : vector<8x256xf32> to vector<1x256xf32>
    %321 = vector.broadcast %319 : vector<4x1xf32> to vector<4x256xf32>
    %322 = vector.broadcast %320 : vector<1x256xf32> to vector<4x256xf32>
    %323 = arith.mulf %321, %322 : vector<4x256xf32>
    %324 = arith.addf %318, %323 : vector<4x256xf32>
    %325 = vector.extract_strided_slice %201 {offsets = [0, 2], sizes = [4, 1], strides = [1, 1]} : vector<4x8xf32> to vector<4x1xf32>
    %326 = vector.extract_strided_slice %311 {offsets = [2, 0], sizes = [1, 256], strides = [1, 1]} : vector<8x256xf32> to vector<1x256xf32>
    %327 = vector.broadcast %325 : vector<4x1xf32> to vector<4x256xf32>
    %328 = vector.broadcast %326 : vector<1x256xf32> to vector<4x256xf32>
    %329 = arith.mulf %327, %328 : vector<4x256xf32>
    %330 = arith.addf %324, %329 : vector<4x256xf32>
    %331 = vector.extract_strided_slice %201 {offsets = [0, 3], sizes = [4, 1], strides = [1, 1]} : vector<4x8xf32> to vector<4x1xf32>
    %332 = vector.extract_strided_slice %311 {offsets = [3, 0], sizes = [1, 256], strides = [1, 1]} : vector<8x256xf32> to vector<1x256xf32>
    %333 = vector.broadcast %331 : vector<4x1xf32> to vector<4x256xf32>
    %334 = vector.broadcast %332 : vector<1x256xf32> to vector<4x256xf32>
    %335 = arith.mulf %333, %334 : vector<4x256xf32>
    %336 = arith.addf %330, %335 : vector<4x256xf32>
    %337 = vector.extract_strided_slice %201 {offsets = [0, 4], sizes = [4, 1], strides = [1, 1]} : vector<4x8xf32> to vector<4x1xf32>
    %338 = vector.extract_strided_slice %311 {offsets = [4, 0], sizes = [1, 256], strides = [1, 1]} : vector<8x256xf32> to vector<1x256xf32>
    %339 = vector.broadcast %337 : vector<4x1xf32> to vector<4x256xf32>
    %340 = vector.broadcast %338 : vector<1x256xf32> to vector<4x256xf32>
    %341 = arith.mulf %339, %340 : vector<4x256xf32>
    %342 = arith.addf %336, %341 : vector<4x256xf32>
    %343 = vector.extract_strided_slice %201 {offsets = [0, 5], sizes = [4, 1], strides = [1, 1]} : vector<4x8xf32> to vector<4x1xf32>
    %344 = vector.extract_strided_slice %311 {offsets = [5, 0], sizes = [1, 256], strides = [1, 1]} : vector<8x256xf32> to vector<1x256xf32>
    %345 = vector.broadcast %343 : vector<4x1xf32> to vector<4x256xf32>
    %346 = vector.broadcast %344 : vector<1x256xf32> to vector<4x256xf32>
    %347 = arith.mulf %345, %346 : vector<4x256xf32>
    %348 = arith.addf %342, %347 : vector<4x256xf32>
    %349 = vector.extract_strided_slice %201 {offsets = [0, 6], sizes = [4, 1], strides = [1, 1]} : vector<4x8xf32> to vector<4x1xf32>
    %350 = vector.extract_strided_slice %311 {offsets = [6, 0], sizes = [1, 256], strides = [1, 1]} : vector<8x256xf32> to vector<1x256xf32>
    %351 = vector.broadcast %349 : vector<4x1xf32> to vector<4x256xf32>
    %352 = vector.broadcast %350 : vector<1x256xf32> to vector<4x256xf32>
    %353 = arith.mulf %351, %352 : vector<4x256xf32>
    %354 = arith.addf %348, %353 : vector<4x256xf32>
    %355 = vector.extract_strided_slice %201 {offsets = [0, 7], sizes = [4, 1], strides = [1, 1]} : vector<4x8xf32> to vector<4x1xf32>
    %356 = vector.extract_strided_slice %311 {offsets = [7, 0], sizes = [1, 256], strides = [1, 1]} : vector<8x256xf32> to vector<1x256xf32>
    %357 = vector.broadcast %355 : vector<4x1xf32> to vector<4x256xf32>
    %358 = vector.broadcast %356 : vector<1x256xf32> to vector<4x256xf32>
    %359 = arith.mulf %357, %358 : vector<4x256xf32>
    %360 = arith.addf %354, %359 : vector<4x256xf32>
    %361 = vector.broadcast %202 : vector<4x1xf32> to vector<4x256xf32>
    %362 = arith.addf %360, %361 : vector<4x256xf32>
    %363 = math.tanh %362 : vector<4x256xf32>
    %364 = arith.subf %3, %363 : vector<4x256xf32>
    %365 = vector.shape_cast %196 : vector<4x256xf32> to vector<1x4x256xf32>
    %c0_24 = arith.constant 0 : index
    %c0_25 = arith.constant 0 : index
    %c0_26 = arith.constant 0 : index
    %366 = vector.load %arg5[%c0_24, %c0_25, %c0_26] : memref<1x4x256xf32, #tpu.memory_space<vmem>>, vector<1x4x256xf32>
    tpu.vector_store %arg5[%c0_24, %c0_25, %c0_26], %365 {strides = array<i32>} : memref<1x4x256xf32, #tpu.memory_space<vmem>>, vector<1x4x256xf32>,
    %367 = vector.shape_cast %364 : vector<4x256xf32> to vector<1x4x256xf32>
    %c0_27 = arith.constant 0 : index
    %c0_28 = arith.constant 0 : index
    %c0_29 = arith.constant 0 : index
    %368 = vector.load %arg6[%c0_27, %c0_28, %c0_29] : memref<1x4x256xf32, #tpu.memory_space<vmem>>, vector<1x4x256xf32>
    tpu.vector_store %arg6[%c0_27, %c0_28, %c0_29], %367 {strides = array<i32>} : memref<1x4x256xf32, #tpu.memory_space<vmem>>, vector<1x4x256xf32>,
    %cst_30 = arith.constant dense<0.000000e+00> : vector<4xf32>
    %369 = vector.multi_reduction <add>, %196, %cst_30 [1] : vector<4x256xf32> to vector<4xf32>
    %370 = vector.shape_cast %369 : vector<4xf32> to vector<4x1xf32>
    %371 = arith.mulf %196, %196 : vector<4x256xf32>
    %cst_31 = arith.constant dense<0.000000e+00> : vector<4xf32>
    %372 = vector.multi_reduction <add>, %371, %cst_31 [1] : vector<4x256xf32> to vector<4xf32>
    %373 = vector.shape_cast %372 : vector<4xf32> to vector<4x1xf32>
    %cst_32 = arith.constant dense<0.000000e+00> : vector<4xf32>
    %374 = vector.multi_reduction <add>, %364, %cst_32 [1] : vector<4x256xf32> to vector<4xf32>
    %375 = vector.shape_cast %374 : vector<4xf32> to vector<4x1xf32>
    %376 = math.absf %364 : vector<4x256xf32>
    %cst_33 = arith.constant dense<0.000000e+00> : vector<4xf32>
    %377 = vector.multi_reduction <add>, %376, %cst_33 [1] : vector<4x256xf32> to vector<4xf32>
    %378 = vector.shape_cast %377 : vector<4xf32> to vector<4x1xf32>
    %379 = tpu.concatenate %370, %373, %375, %378 in 1 : vector<4x1xf32>, vector<4x1xf32>, vector<4x1xf32>, vector<4x1xf32> -> vector<4x4xf32>
    %380 = vector.shape_cast %379 : vector<4x4xf32> to vector<1x1x4x4xf32>
    %c0_34 = arith.constant 0 : index
    %c0_35 = arith.constant 0 : index
    %c0_36 = arith.constant 0 : index
    %c0_37 = arith.constant 0 : index
    %381 = vector.load %arg7[%c0_34, %c0_35, %c0_36, %c0_37] : memref<1x1x4x4xf32, #tpu.memory_space<vmem>>, vector<1x1x4x4xf32>
    tpu.vector_store %arg7[%c0_34, %c0_35, %c0_36, %c0_37], %380 {strides = array<i32>} : memref<1x1x4x4xf32, #tpu.memory_space<vmem>>, vector<1x1x4x4xf32>,
    return
  }
  func.func @transform_0(%arg0: i32, %arg1: i32) -> (i32, i32, i32) {
    %c0_i32 = arith.constant 0 : i32
    %c0_i32_0 = arith.constant 0 : i32
    return %arg0, %c0_i32, %arg1 : i32, i32, i32
  }
  func.func @transform_1(%arg0: i32, %arg1: i32) -> (i32, i32, i32) {
    %c0_i32 = arith.constant 0 : i32
    %c0_i32_0 = arith.constant 0 : i32
    return %arg0, %c0_i32, %arg1 : i32, i32, i32
  }
  func.func @transform_2(%arg0: i32, %arg1: i32) -> (i32, i32, i32, i32) {
    %c0_i32 = arith.constant 0 : i32
    %c0_i32_0 = arith.constant 0 : i32
    %c0_i32_1 = arith.constant 0 : i32
    %c0_i32_2 = arith.constant 0 : i32
    return %arg0, %c0_i32, %c0_i32_0, %c0_i32_1 : i32, i32, i32, i32
  }
  func.func @transform_3(%arg0: i32, %arg1: i32) -> (i32, i32, i32) {
    %c0_i32 = arith.constant 0 : i32
    %c0_i32_0 = arith.constant 0 : i32
    return %arg0, %c0_i32, %arg1 : i32, i32, i32
  }
  func.func @transform_4(%arg0: i32, %arg1: i32) -> (i32, i32, i32) {
    %c0_i32 = arith.constant 0 : i32
    %c0_i32_0 = arith.constant 0 : i32
    return %arg0, %c0_i32, %arg1 : i32, i32, i32
  }
  func.func @transform_5(%arg0: i32, %arg1: i32) -> (i32, i32, i32, i32) {
    %c0_i32 = arith.constant 0 : i32
    %c0_i32_0 = arith.constant 0 : i32
    %c0_i32_1 = arith.constant 0 : i32
    return %arg0, %arg1, %c0_i32, %c0_i32_0 : i32, i32, i32, i32
  }
}

module attributes {stable_mosaic.version = 11 : i64} {
  func.func @_lifting_kernel(%arg0: i32, %arg1: i32, %arg2: memref<1x4x128xf32, #tpu.memory_space<vmem>>, %arg3: memref<1x4x128xf32, #tpu.memory_space<vmem>>, %arg4: memref<1x2x8x26xf32, #tpu.memory_space<vmem>>, %arg5: memref<1x4x128xf32, #tpu.memory_space<vmem>>, %arg6: memref<1x4x128xf32, #tpu.memory_space<vmem>>, %arg7: memref<1x1x4x4xf32, #tpu.memory_space<vmem>>) attributes {dimension_semantics = [#tpu.dimension_semantics<parallel>, #tpu.dimension_semantics<parallel>], iteration_bounds = array<i64: 2, 1>, scalar_prefetch = 0 : i64, scratch_operands = 0 : i64, tpu.core_type = #tpu.core_type<tc>, window_params = [{transform_indices = @transform_0, window_bounds = array<i64: 1, 4, 128>}, {transform_indices = @transform_1, window_bounds = array<i64: 1, 4, 128>}, {transform_indices = @transform_2, window_bounds = array<i64: 1, 2, 8, 26>}, {transform_indices = @transform_3, window_bounds = array<i64: 1, 4, 128>}, {transform_indices = @transform_4, window_bounds = array<i64: 1, 4, 128>}, {transform_indices = @transform_5, window_bounds = array<i64: 1, 1, 4, 4>}]} {
    %c0 = arith.constant 0 : index
    %c0_0 = arith.constant 0 : index
    %c0_1 = arith.constant 0 : index
    %0 = vector.load %arg2[%c0, %c0_0, %c0_1] : memref<1x4x128xf32, #tpu.memory_space<vmem>>, vector<1x4x128xf32>
    %1 = vector.shape_cast %0 : vector<1x4x128xf32> to vector<4x128xf32>
    %c0_2 = arith.constant 0 : index
    %c0_3 = arith.constant 0 : index
    %c0_4 = arith.constant 0 : index
    %2 = vector.load %arg3[%c0_2, %c0_3, %c0_4] : memref<1x4x128xf32, #tpu.memory_space<vmem>>, vector<1x4x128xf32>
    %3 = vector.shape_cast %2 : vector<1x4x128xf32> to vector<4x128xf32>
    %c0_5 = arith.constant 0 : index
    %c0_6 = arith.constant 0 : index
    %c0_7 = arith.constant 0 : index
    %c0_8 = arith.constant 0 : index
    %4 = vector.load %arg4[%c0_5, %c0_6, %c0_7, %c0_8] : memref<1x2x8x26xf32, #tpu.memory_space<vmem>>, vector<1x2x8x26xf32>
    %5 = vector.shape_cast %4 : vector<1x2x8x26xf32> to vector<2x8x26xf32>
    %6 = tpu.iota {dimensions = array<i32: 1>} : vector<4x128xi32>
    %c8_i32 = arith.constant 8 : i32
    %c0_i32 = arith.constant 0 : i32
    %7 = arith.cmpi eq, %c8_i32, %c0_i32 : i32
    %c1_i32 = arith.constant 1 : i32
    %8 = arith.select %7, %c1_i32, %c8_i32 : i32
    %9 = vector.broadcast %8 : i32 to vector<4x128xi32>
    %10 = arith.remsi %6, %9 : vector<4x128xi32>
    %c0_i32_9 = arith.constant 0 : i32
    %11 = vector.broadcast %c0_i32_9 : i32 to vector<4x128xi32>
    %12 = arith.cmpi ne, %10, %11 : vector<4x128xi32>
    %c0_i32_10 = arith.constant 0 : i32
    %13 = vector.broadcast %c0_i32_10 : i32 to vector<4x128xi32>
    %14 = arith.cmpi slt, %10, %13 : vector<4x128xi32>
    %c0_i32_11 = arith.constant 0 : i32
    %15 = arith.cmpi slt, %8, %c0_i32_11 : i32
    %16 = vector.broadcast %15 : i1 to vector<4x128xi1>
    %17 = vector.broadcast %16 : vector<4x128xi1> to vector<4x128xi1>
    %18 = arith.xori %14, %17 : vector<4x128xi1>
    %19 = arith.andi %18, %12 : vector<4x128xi1>
    %20 = vector.broadcast %8 : i32 to vector<4x128xi32>
    %21 = arith.addi %10, %20 : vector<4x128xi32>
    %22 = arith.select %19, %21, %10 : vector<4x128xi1>, vector<4x128xi32>
    %c0_i32_12 = arith.constant 0 : i32
    %23 = vector.broadcast %c0_i32_12 : i32 to vector<4x128xi32>
    %24 = arith.cmpi eq, %22, %23 : vector<4x128xi32>
    %c1_i32_13 = arith.constant 1 : i32
    %25 = vector.broadcast %c1_i32_13 : i32 to vector<4x128xi32>
    %26 = arith.cmpi eq, %22, %25 : vector<4x128xi32>
    %c7_i32 = arith.constant 7 : i32
    %27 = vector.broadcast %c7_i32 : i32 to vector<4x128xi32>
    %28 = arith.cmpi eq, %22, %27 : vector<4x128xi32>
    %29 = vector.extract_strided_slice %5 {offsets = [0, 0, 0], sizes = [1, 8, 26], strides = [1, 1, 1]} : vector<2x8x26xf32> to vector<1x8x26xf32>
    %30 = vector.shape_cast %29 : vector<1x8x26xf32> to vector<8x26xf32>
    %31 = vector.extract_strided_slice %30 {offsets = [0, 0], sizes = [8, 16], strides = [1, 1]} : vector<8x26xf32> to vector<8x16xf32>
    %32 = vector.extract_strided_slice %30 {offsets = [0, 16], sizes = [8, 1], strides = [1, 1]} : vector<8x26xf32> to vector<8x1xf32>
    %33 = vector.extract_strided_slice %30 {offsets = [0, 17], sizes = [4, 8], strides = [1, 1]} : vector<8x26xf32> to vector<4x8xf32>
    %34 = vector.extract_strided_slice %30 {offsets = [0, 25], sizes = [4, 1], strides = [1, 1]} : vector<8x26xf32> to vector<4x1xf32>
    %c2_i32 = arith.constant 2 : i32
    %35 = tpu.dynamic_rotate %3 by %c2_i32 dim 1 : vector<4x128xf32>, i32 -> vector<4x128xf32>
    %c126_i32 = arith.constant 126 : i32
    %36 = tpu.dynamic_rotate %3 by %c126_i32 dim 1 : vector<4x128xf32>, i32 -> vector<4x128xf32>
    %37 = arith.select %24, %36, %35 : vector<4x128xi1>, vector<4x128xf32>
    %38 = arith.select %26, %3, %37 : vector<4x128xi1>, vector<4x128xf32>
    %c1_i32_14 = arith.constant 1 : i32
    %39 = tpu.dynamic_rotate %3 by %c1_i32_14 dim 1 : vector<4x128xf32>, i32 -> vector<4x128xf32>
    %c127_i32 = arith.constant 127 : i32
    %40 = tpu.dynamic_rotate %3 by %c127_i32 dim 1 : vector<4x128xf32>, i32 -> vector<4x128xf32>
    %41 = arith.select %24, %40, %39 : vector<4x128xi1>, vector<4x128xf32>
    %42 = arith.select %28, %39, %40 : vector<4x128xi1>, vector<4x128xf32>
    %cst = arith.constant 0.000000e+00 : f32
    %43 = vector.broadcast %cst : f32 to vector<8x128xf32>
    %44 = vector.extract_strided_slice %31 {offsets = [0, 0], sizes = [8, 1], strides = [1, 1]} : vector<8x16xf32> to vector<8x1xf32>
    %45 = vector.extract_strided_slice %38 {offsets = [0, 0], sizes = [1, 128], strides = [1, 1]} : vector<4x128xf32> to vector<1x128xf32>
    %46 = vector.broadcast %44 : vector<8x1xf32> to vector<8x128xf32>
    %47 = vector.broadcast %45 : vector<1x128xf32> to vector<8x128xf32>
    %48 = arith.mulf %46, %47 : vector<8x128xf32>
    %49 = arith.addf %43, %48 : vector<8x128xf32>
    %50 = vector.extract_strided_slice %31 {offsets = [0, 1], sizes = [8, 1], strides = [1, 1]} : vector<8x16xf32> to vector<8x1xf32>
    %51 = vector.extract_strided_slice %38 {offsets = [1, 0], sizes = [1, 128], strides = [1, 1]} : vector<4x128xf32> to vector<1x128xf32>
    %52 = vector.broadcast %50 : vector<8x1xf32> to vector<8x128xf32>
    %53 = vector.broadcast %51 : vector<1x128xf32> to vector<8x128xf32>
    %54 = arith.mulf %52, %53 : vector<8x128xf32>
    %55 = arith.addf %49, %54 : vector<8x128xf32>
    %56 = vector.extract_strided_slice %31 {offsets = [0, 2], sizes = [8, 1], strides = [1, 1]} : vector<8x16xf32> to vector<8x1xf32>
    %57 = vector.extract_strided_slice %38 {offsets = [2, 0], sizes = [1, 128], strides = [1, 1]} : vector<4x128xf32> to vector<1x128xf32>
    %58 = vector.broadcast %56 : vector<8x1xf32> to vector<8x128xf32>
    %59 = vector.broadcast %57 : vector<1x128xf32> to vector<8x128xf32>
    %60 = arith.mulf %58, %59 : vector<8x128xf32>
    %61 = arith.addf %55, %60 : vector<8x128xf32>
    %62 = vector.extract_strided_slice %31 {offsets = [0, 3], sizes = [8, 1], strides = [1, 1]} : vector<8x16xf32> to vector<8x1xf32>
    %63 = vector.extract_strided_slice %38 {offsets = [3, 0], sizes = [1, 128], strides = [1, 1]} : vector<4x128xf32> to vector<1x128xf32>
    %64 = vector.broadcast %62 : vector<8x1xf32> to vector<8x128xf32>
    %65 = vector.broadcast %63 : vector<1x128xf32> to vector<8x128xf32>
    %66 = arith.mulf %64, %65 : vector<8x128xf32>
    %67 = arith.addf %61, %66 : vector<8x128xf32>
    %68 = vector.extract_strided_slice %31 {offsets = [0, 4], sizes = [8, 1], strides = [1, 1]} : vector<8x16xf32> to vector<8x1xf32>
    %69 = vector.extract_strided_slice %41 {offsets = [0, 0], sizes = [1, 128], strides = [1, 1]} : vector<4x128xf32> to vector<1x128xf32>
    %70 = vector.broadcast %68 : vector<8x1xf32> to vector<8x128xf32>
    %71 = vector.broadcast %69 : vector<1x128xf32> to vector<8x128xf32>
    %72 = arith.mulf %70, %71 : vector<8x128xf32>
    %73 = arith.addf %67, %72 : vector<8x128xf32>
    %74 = vector.extract_strided_slice %31 {offsets = [0, 5], sizes = [8, 1], strides = [1, 1]} : vector<8x16xf32> to vector<8x1xf32>
    %75 = vector.extract_strided_slice %41 {offsets = [1, 0], sizes = [1, 128], strides = [1, 1]} : vector<4x128xf32> to vector<1x128xf32>
    %76 = vector.broadcast %74 : vector<8x1xf32> to vector<8x128xf32>
    %77 = vector.broadcast %75 : vector<1x128xf32> to vector<8x128xf32>
    %78 = arith.mulf %76, %77 : vector<8x128xf32>
    %79 = arith.addf %73, %78 : vector<8x128xf32>
    %80 = vector.extract_strided_slice %31 {offsets = [0, 6], sizes = [8, 1], strides = [1, 1]} : vector<8x16xf32> to vector<8x1xf32>
    %81 = vector.extract_strided_slice %41 {offsets = [2, 0], sizes = [1, 128], strides = [1, 1]} : vector<4x128xf32> to vector<1x128xf32>
    %82 = vector.broadcast %80 : vector<8x1xf32> to vector<8x128xf32>
    %83 = vector.broadcast %81 : vector<1x128xf32> to vector<8x128xf32>
    %84 = arith.mulf %82, %83 : vector<8x128xf32>
    %85 = arith.addf %79, %84 : vector<8x128xf32>
    %86 = vector.extract_strided_slice %31 {offsets = [0, 7], sizes = [8, 1], strides = [1, 1]} : vector<8x16xf32> to vector<8x1xf32>
    %87 = vector.extract_strided_slice %41 {offsets = [3, 0], sizes = [1, 128], strides = [1, 1]} : vector<4x128xf32> to vector<1x128xf32>
    %88 = vector.broadcast %86 : vector<8x1xf32> to vector<8x128xf32>
    %89 = vector.broadcast %87 : vector<1x128xf32> to vector<8x128xf32>
    %90 = arith.mulf %88, %89 : vector<8x128xf32>
    %91 = arith.addf %85, %90 : vector<8x128xf32>
    %92 = vector.extract_strided_slice %31 {offsets = [0, 8], sizes = [8, 1], strides = [1, 1]} : vector<8x16xf32> to vector<8x1xf32>
    %93 = vector.extract_strided_slice %3 {offsets = [0, 0], sizes = [1, 128], strides = [1, 1]} : vector<4x128xf32> to vector<1x128xf32>
    %94 = vector.broadcast %92 : vector<8x1xf32> to vector<8x128xf32>
    %95 = vector.broadcast %93 : vector<1x128xf32> to vector<8x128xf32>
    %96 = arith.mulf %94, %95 : vector<8x128xf32>
    %97 = arith.addf %91, %96 : vector<8x128xf32>
    %98 = vector.extract_strided_slice %31 {offsets = [0, 9], sizes = [8, 1], strides = [1, 1]} : vector<8x16xf32> to vector<8x1xf32>
    %99 = vector.extract_strided_slice %3 {offsets = [1, 0], sizes = [1, 128], strides = [1, 1]} : vector<4x128xf32> to vector<1x128xf32>
    %100 = vector.broadcast %98 : vector<8x1xf32> to vector<8x128xf32>
    %101 = vector.broadcast %99 : vector<1x128xf32> to vector<8x128xf32>
    %102 = arith.mulf %100, %101 : vector<8x128xf32>
    %103 = arith.addf %97, %102 : vector<8x128xf32>
    %104 = vector.extract_strided_slice %31 {offsets = [0, 10], sizes = [8, 1], strides = [1, 1]} : vector<8x16xf32> to vector<8x1xf32>
    %105 = vector.extract_strided_slice %3 {offsets = [2, 0], sizes = [1, 128], strides = [1, 1]} : vector<4x128xf32> to vector<1x128xf32>
    %106 = vector.broadcast %104 : vector<8x1xf32> to vector<8x128xf32>
    %107 = vector.broadcast %105 : vector<1x128xf32> to vector<8x128xf32>
    %108 = arith.mulf %106, %107 : vector<8x128xf32>
    %109 = arith.addf %103, %108 : vector<8x128xf32>
    %110 = vector.extract_strided_slice %31 {offsets = [0, 11], sizes = [8, 1], strides = [1, 1]} : vector<8x16xf32> to vector<8x1xf32>
    %111 = vector.extract_strided_slice %3 {offsets = [3, 0], sizes = [1, 128], strides = [1, 1]} : vector<4x128xf32> to vector<1x128xf32>
    %112 = vector.broadcast %110 : vector<8x1xf32> to vector<8x128xf32>
    %113 = vector.broadcast %111 : vector<1x128xf32> to vector<8x128xf32>
    %114 = arith.mulf %112, %113 : vector<8x128xf32>
    %115 = arith.addf %109, %114 : vector<8x128xf32>
    %116 = vector.extract_strided_slice %31 {offsets = [0, 12], sizes = [8, 1], strides = [1, 1]} : vector<8x16xf32> to vector<8x1xf32>
    %117 = vector.extract_strided_slice %42 {offsets = [0, 0], sizes = [1, 128], strides = [1, 1]} : vector<4x128xf32> to vector<1x128xf32>
    %118 = vector.broadcast %116 : vector<8x1xf32> to vector<8x128xf32>
    %119 = vector.broadcast %117 : vector<1x128xf32> to vector<8x128xf32>
    %120 = arith.mulf %118, %119 : vector<8x128xf32>
    %121 = arith.addf %115, %120 : vector<8x128xf32>
    %122 = vector.extract_strided_slice %31 {offsets = [0, 13], sizes = [8, 1], strides = [1, 1]} : vector<8x16xf32> to vector<8x1xf32>
    %123 = vector.extract_strided_slice %42 {offsets = [1, 0], sizes = [1, 128], strides = [1, 1]} : vector<4x128xf32> to vector<1x128xf32>
    %124 = vector.broadcast %122 : vector<8x1xf32> to vector<8x128xf32>
    %125 = vector.broadcast %123 : vector<1x128xf32> to vector<8x128xf32>
    %126 = arith.mulf %124, %125 : vector<8x128xf32>
    %127 = arith.addf %121, %126 : vector<8x128xf32>
    %128 = vector.extract_strided_slice %31 {offsets = [0, 14], sizes = [8, 1], strides = [1, 1]} : vector<8x16xf32> to vector<8x1xf32>
    %129 = vector.extract_strided_slice %42 {offsets = [2, 0], sizes = [1, 128], strides = [1, 1]} : vector<4x128xf32> to vector<1x128xf32>
    %130 = vector.broadcast %128 : vector<8x1xf32> to vector<8x128xf32>
    %131 = vector.broadcast %129 : vector<1x128xf32> to vector<8x128xf32>
    %132 = arith.mulf %130, %131 : vector<8x128xf32>
    %133 = arith.addf %127, %132 : vector<8x128xf32>
    %134 = vector.extract_strided_slice %31 {offsets = [0, 15], sizes = [8, 1], strides = [1, 1]} : vector<8x16xf32> to vector<8x1xf32>
    %135 = vector.extract_strided_slice %42 {offsets = [3, 0], sizes = [1, 128], strides = [1, 1]} : vector<4x128xf32> to vector<1x128xf32>
    %136 = vector.broadcast %134 : vector<8x1xf32> to vector<8x128xf32>
    %137 = vector.broadcast %135 : vector<1x128xf32> to vector<8x128xf32>
    %138 = arith.mulf %136, %137 : vector<8x128xf32>
    %139 = arith.addf %133, %138 : vector<8x128xf32>
    %140 = vector.broadcast %32 : vector<8x1xf32> to vector<8x128xf32>
    %141 = arith.addf %139, %140 : vector<8x128xf32>
    %cst_15 = arith.constant 0.000000e+00 : f32
    %142 = vector.broadcast %cst_15 : f32 to vector<8x128xf32>
    %143 = arith.maximumf %141, %142 : vector<8x128xf32>
    %cst_16 = arith.constant 0.000000e+00 : f32
    %144 = vector.broadcast %cst_16 : f32 to vector<4x128xf32>
    %145 = vector.extract_strided_slice %33 {offsets = [0, 0], sizes = [4, 1], strides = [1, 1]} : vector<4x8xf32> to vector<4x1xf32>
    %146 = vector.extract_strided_slice %143 {offsets = [0, 0], sizes = [1, 128], strides = [1, 1]} : vector<8x128xf32> to vector<1x128xf32>
    %147 = vector.broadcast %145 : vector<4x1xf32> to vector<4x128xf32>
    %148 = vector.broadcast %146 : vector<1x128xf32> to vector<4x128xf32>
    %149 = arith.mulf %147, %148 : vector<4x128xf32>
    %150 = arith.addf %144, %149 : vector<4x128xf32>
    %151 = vector.extract_strided_slice %33 {offsets = [0, 1], sizes = [4, 1], strides = [1, 1]} : vector<4x8xf32> to vector<4x1xf32>
    %152 = vector.extract_strided_slice %143 {offsets = [1, 0], sizes = [1, 128], strides = [1, 1]} : vector<8x128xf32> to vector<1x128xf32>
    %153 = vector.broadcast %151 : vector<4x1xf32> to vector<4x128xf32>
    %154 = vector.broadcast %152 : vector<1x128xf32> to vector<4x128xf32>
    %155 = arith.mulf %153, %154 : vector<4x128xf32>
    %156 = arith.addf %150, %155 : vector<4x128xf32>
    %157 = vector.extract_strided_slice %33 {offsets = [0, 2], sizes = [4, 1], strides = [1, 1]} : vector<4x8xf32> to vector<4x1xf32>
    %158 = vector.extract_strided_slice %143 {offsets = [2, 0], sizes = [1, 128], strides = [1, 1]} : vector<8x128xf32> to vector<1x128xf32>
    %159 = vector.broadcast %157 : vector<4x1xf32> to vector<4x128xf32>
    %160 = vector.broadcast %158 : vector<1x128xf32> to vector<4x128xf32>
    %161 = arith.mulf %159, %160 : vector<4x128xf32>
    %162 = arith.addf %156, %161 : vector<4x128xf32>
    %163 = vector.extract_strided_slice %33 {offsets = [0, 3], sizes = [4, 1], strides = [1, 1]} : vector<4x8xf32> to vector<4x1xf32>
    %164 = vector.extract_strided_slice %143 {offsets = [3, 0], sizes = [1, 128], strides = [1, 1]} : vector<8x128xf32> to vector<1x128xf32>
    %165 = vector.broadcast %163 : vector<4x1xf32> to vector<4x128xf32>
    %166 = vector.broadcast %164 : vector<1x128xf32> to vector<4x128xf32>
    %167 = arith.mulf %165, %166 : vector<4x128xf32>
    %168 = arith.addf %162, %167 : vector<4x128xf32>
    %169 = vector.extract_strided_slice %33 {offsets = [0, 4], sizes = [4, 1], strides = [1, 1]} : vector<4x8xf32> to vector<4x1xf32>
    %170 = vector.extract_strided_slice %143 {offsets = [4, 0], sizes = [1, 128], strides = [1, 1]} : vector<8x128xf32> to vector<1x128xf32>
    %171 = vector.broadcast %169 : vector<4x1xf32> to vector<4x128xf32>
    %172 = vector.broadcast %170 : vector<1x128xf32> to vector<4x128xf32>
    %173 = arith.mulf %171, %172 : vector<4x128xf32>
    %174 = arith.addf %168, %173 : vector<4x128xf32>
    %175 = vector.extract_strided_slice %33 {offsets = [0, 5], sizes = [4, 1], strides = [1, 1]} : vector<4x8xf32> to vector<4x1xf32>
    %176 = vector.extract_strided_slice %143 {offsets = [5, 0], sizes = [1, 128], strides = [1, 1]} : vector<8x128xf32> to vector<1x128xf32>
    %177 = vector.broadcast %175 : vector<4x1xf32> to vector<4x128xf32>
    %178 = vector.broadcast %176 : vector<1x128xf32> to vector<4x128xf32>
    %179 = arith.mulf %177, %178 : vector<4x128xf32>
    %180 = arith.addf %174, %179 : vector<4x128xf32>
    %181 = vector.extract_strided_slice %33 {offsets = [0, 6], sizes = [4, 1], strides = [1, 1]} : vector<4x8xf32> to vector<4x1xf32>
    %182 = vector.extract_strided_slice %143 {offsets = [6, 0], sizes = [1, 128], strides = [1, 1]} : vector<8x128xf32> to vector<1x128xf32>
    %183 = vector.broadcast %181 : vector<4x1xf32> to vector<4x128xf32>
    %184 = vector.broadcast %182 : vector<1x128xf32> to vector<4x128xf32>
    %185 = arith.mulf %183, %184 : vector<4x128xf32>
    %186 = arith.addf %180, %185 : vector<4x128xf32>
    %187 = vector.extract_strided_slice %33 {offsets = [0, 7], sizes = [4, 1], strides = [1, 1]} : vector<4x8xf32> to vector<4x1xf32>
    %188 = vector.extract_strided_slice %143 {offsets = [7, 0], sizes = [1, 128], strides = [1, 1]} : vector<8x128xf32> to vector<1x128xf32>
    %189 = vector.broadcast %187 : vector<4x1xf32> to vector<4x128xf32>
    %190 = vector.broadcast %188 : vector<1x128xf32> to vector<4x128xf32>
    %191 = arith.mulf %189, %190 : vector<4x128xf32>
    %192 = arith.addf %186, %191 : vector<4x128xf32>
    %193 = vector.broadcast %34 : vector<4x1xf32> to vector<4x128xf32>
    %194 = arith.addf %192, %193 : vector<4x128xf32>
    %195 = math.tanh %194 : vector<4x128xf32>
    %196 = arith.addf %1, %195 : vector<4x128xf32>
    %197 = vector.extract_strided_slice %5 {offsets = [1, 0, 0], sizes = [1, 8, 26], strides = [1, 1, 1]} : vector<2x8x26xf32> to vector<1x8x26xf32>
    %198 = vector.shape_cast %197 : vector<1x8x26xf32> to vector<8x26xf32>
    %199 = vector.extract_strided_slice %198 {offsets = [0, 0], sizes = [8, 16], strides = [1, 1]} : vector<8x26xf32> to vector<8x16xf32>
    %200 = vector.extract_strided_slice %198 {offsets = [0, 16], sizes = [8, 1], strides = [1, 1]} : vector<8x26xf32> to vector<8x1xf32>
    %201 = vector.extract_strided_slice %198 {offsets = [0, 17], sizes = [4, 8], strides = [1, 1]} : vector<8x26xf32> to vector<4x8xf32>
    %202 = vector.extract_strided_slice %198 {offsets = [0, 25], sizes = [4, 1], strides = [1, 1]} : vector<8x26xf32> to vector<4x1xf32>
    %c2_i32_17 = arith.constant 2 : i32
    %203 = tpu.dynamic_rotate %196 by %c2_i32_17 dim 1 : vector<4x128xf32>, i32 -> vector<4x128xf32>
    %c126_i32_18 = arith.constant 126 : i32
    %204 = tpu.dynamic_rotate %196 by %c126_i32_18 dim 1 : vector<4x128xf32>, i32 -> vector<4x128xf32>
    %205 = arith.select %24, %204, %203 : vector<4x128xi1>, vector<4x128xf32>
    %206 = arith.select %26, %196, %205 : vector<4x128xi1>, vector<4x128xf32>
    %c1_i32_19 = arith.constant 1 : i32
    %207 = tpu.dynamic_rotate %196 by %c1_i32_19 dim 1 : vector<4x128xf32>, i32 -> vector<4x128xf32>
    %c127_i32_20 = arith.constant 127 : i32
    %208 = tpu.dynamic_rotate %196 by %c127_i32_20 dim 1 : vector<4x128xf32>, i32 -> vector<4x128xf32>
    %209 = arith.select %24, %208, %207 : vector<4x128xi1>, vector<4x128xf32>
    %210 = arith.select %28, %207, %208 : vector<4x128xi1>, vector<4x128xf32>
    %cst_21 = arith.constant 0.000000e+00 : f32
    %211 = vector.broadcast %cst_21 : f32 to vector<8x128xf32>
    %212 = vector.extract_strided_slice %199 {offsets = [0, 0], sizes = [8, 1], strides = [1, 1]} : vector<8x16xf32> to vector<8x1xf32>
    %213 = vector.extract_strided_slice %206 {offsets = [0, 0], sizes = [1, 128], strides = [1, 1]} : vector<4x128xf32> to vector<1x128xf32>
    %214 = vector.broadcast %212 : vector<8x1xf32> to vector<8x128xf32>
    %215 = vector.broadcast %213 : vector<1x128xf32> to vector<8x128xf32>
    %216 = arith.mulf %214, %215 : vector<8x128xf32>
    %217 = arith.addf %211, %216 : vector<8x128xf32>
    %218 = vector.extract_strided_slice %199 {offsets = [0, 1], sizes = [8, 1], strides = [1, 1]} : vector<8x16xf32> to vector<8x1xf32>
    %219 = vector.extract_strided_slice %206 {offsets = [1, 0], sizes = [1, 128], strides = [1, 1]} : vector<4x128xf32> to vector<1x128xf32>
    %220 = vector.broadcast %218 : vector<8x1xf32> to vector<8x128xf32>
    %221 = vector.broadcast %219 : vector<1x128xf32> to vector<8x128xf32>
    %222 = arith.mulf %220, %221 : vector<8x128xf32>
    %223 = arith.addf %217, %222 : vector<8x128xf32>
    %224 = vector.extract_strided_slice %199 {offsets = [0, 2], sizes = [8, 1], strides = [1, 1]} : vector<8x16xf32> to vector<8x1xf32>
    %225 = vector.extract_strided_slice %206 {offsets = [2, 0], sizes = [1, 128], strides = [1, 1]} : vector<4x128xf32> to vector<1x128xf32>
    %226 = vector.broadcast %224 : vector<8x1xf32> to vector<8x128xf32>
    %227 = vector.broadcast %225 : vector<1x128xf32> to vector<8x128xf32>
    %228 = arith.mulf %226, %227 : vector<8x128xf32>
    %229 = arith.addf %223, %228 : vector<8x128xf32>
    %230 = vector.extract_strided_slice %199 {offsets = [0, 3], sizes = [8, 1], strides = [1, 1]} : vector<8x16xf32> to vector<8x1xf32>
    %231 = vector.extract_strided_slice %206 {offsets = [3, 0], sizes = [1, 128], strides = [1, 1]} : vector<4x128xf32> to vector<1x128xf32>
    %232 = vector.broadcast %230 : vector<8x1xf32> to vector<8x128xf32>
    %233 = vector.broadcast %231 : vector<1x128xf32> to vector<8x128xf32>
    %234 = arith.mulf %232, %233 : vector<8x128xf32>
    %235 = arith.addf %229, %234 : vector<8x128xf32>
    %236 = vector.extract_strided_slice %199 {offsets = [0, 4], sizes = [8, 1], strides = [1, 1]} : vector<8x16xf32> to vector<8x1xf32>
    %237 = vector.extract_strided_slice %209 {offsets = [0, 0], sizes = [1, 128], strides = [1, 1]} : vector<4x128xf32> to vector<1x128xf32>
    %238 = vector.broadcast %236 : vector<8x1xf32> to vector<8x128xf32>
    %239 = vector.broadcast %237 : vector<1x128xf32> to vector<8x128xf32>
    %240 = arith.mulf %238, %239 : vector<8x128xf32>
    %241 = arith.addf %235, %240 : vector<8x128xf32>
    %242 = vector.extract_strided_slice %199 {offsets = [0, 5], sizes = [8, 1], strides = [1, 1]} : vector<8x16xf32> to vector<8x1xf32>
    %243 = vector.extract_strided_slice %209 {offsets = [1, 0], sizes = [1, 128], strides = [1, 1]} : vector<4x128xf32> to vector<1x128xf32>
    %244 = vector.broadcast %242 : vector<8x1xf32> to vector<8x128xf32>
    %245 = vector.broadcast %243 : vector<1x128xf32> to vector<8x128xf32>
    %246 = arith.mulf %244, %245 : vector<8x128xf32>
    %247 = arith.addf %241, %246 : vector<8x128xf32>
    %248 = vector.extract_strided_slice %199 {offsets = [0, 6], sizes = [8, 1], strides = [1, 1]} : vector<8x16xf32> to vector<8x1xf32>
    %249 = vector.extract_strided_slice %209 {offsets = [2, 0], sizes = [1, 128], strides = [1, 1]} : vector<4x128xf32> to vector<1x128xf32>
    %250 = vector.broadcast %248 : vector<8x1xf32> to vector<8x128xf32>
    %251 = vector.broadcast %249 : vector<1x128xf32> to vector<8x128xf32>
    %252 = arith.mulf %250, %251 : vector<8x128xf32>
    %253 = arith.addf %247, %252 : vector<8x128xf32>
    %254 = vector.extract_strided_slice %199 {offsets = [0, 7], sizes = [8, 1], strides = [1, 1]} : vector<8x16xf32> to vector<8x1xf32>
    %255 = vector.extract_strided_slice %209 {offsets = [3, 0], sizes = [1, 128], strides = [1, 1]} : vector<4x128xf32> to vector<1x128xf32>
    %256 = vector.broadcast %254 : vector<8x1xf32> to vector<8x128xf32>
    %257 = vector.broadcast %255 : vector<1x128xf32> to vector<8x128xf32>
    %258 = arith.mulf %256, %257 : vector<8x128xf32>
    %259 = arith.addf %253, %258 : vector<8x128xf32>
    %260 = vector.extract_strided_slice %199 {offsets = [0, 8], sizes = [8, 1], strides = [1, 1]} : vector<8x16xf32> to vector<8x1xf32>
    %261 = vector.extract_strided_slice %196 {offsets = [0, 0], sizes = [1, 128], strides = [1, 1]} : vector<4x128xf32> to vector<1x128xf32>
    %262 = vector.broadcast %260 : vector<8x1xf32> to vector<8x128xf32>
    %263 = vector.broadcast %261 : vector<1x128xf32> to vector<8x128xf32>
    %264 = arith.mulf %262, %263 : vector<8x128xf32>
    %265 = arith.addf %259, %264 : vector<8x128xf32>
    %266 = vector.extract_strided_slice %199 {offsets = [0, 9], sizes = [8, 1], strides = [1, 1]} : vector<8x16xf32> to vector<8x1xf32>
    %267 = vector.extract_strided_slice %196 {offsets = [1, 0], sizes = [1, 128], strides = [1, 1]} : vector<4x128xf32> to vector<1x128xf32>
    %268 = vector.broadcast %266 : vector<8x1xf32> to vector<8x128xf32>
    %269 = vector.broadcast %267 : vector<1x128xf32> to vector<8x128xf32>
    %270 = arith.mulf %268, %269 : vector<8x128xf32>
    %271 = arith.addf %265, %270 : vector<8x128xf32>
    %272 = vector.extract_strided_slice %199 {offsets = [0, 10], sizes = [8, 1], strides = [1, 1]} : vector<8x16xf32> to vector<8x1xf32>
    %273 = vector.extract_strided_slice %196 {offsets = [2, 0], sizes = [1, 128], strides = [1, 1]} : vector<4x128xf32> to vector<1x128xf32>
    %274 = vector.broadcast %272 : vector<8x1xf32> to vector<8x128xf32>
    %275 = vector.broadcast %273 : vector<1x128xf32> to vector<8x128xf32>
    %276 = arith.mulf %274, %275 : vector<8x128xf32>
    %277 = arith.addf %271, %276 : vector<8x128xf32>
    %278 = vector.extract_strided_slice %199 {offsets = [0, 11], sizes = [8, 1], strides = [1, 1]} : vector<8x16xf32> to vector<8x1xf32>
    %279 = vector.extract_strided_slice %196 {offsets = [3, 0], sizes = [1, 128], strides = [1, 1]} : vector<4x128xf32> to vector<1x128xf32>
    %280 = vector.broadcast %278 : vector<8x1xf32> to vector<8x128xf32>
    %281 = vector.broadcast %279 : vector<1x128xf32> to vector<8x128xf32>
    %282 = arith.mulf %280, %281 : vector<8x128xf32>
    %283 = arith.addf %277, %282 : vector<8x128xf32>
    %284 = vector.extract_strided_slice %199 {offsets = [0, 12], sizes = [8, 1], strides = [1, 1]} : vector<8x16xf32> to vector<8x1xf32>
    %285 = vector.extract_strided_slice %210 {offsets = [0, 0], sizes = [1, 128], strides = [1, 1]} : vector<4x128xf32> to vector<1x128xf32>
    %286 = vector.broadcast %284 : vector<8x1xf32> to vector<8x128xf32>
    %287 = vector.broadcast %285 : vector<1x128xf32> to vector<8x128xf32>
    %288 = arith.mulf %286, %287 : vector<8x128xf32>
    %289 = arith.addf %283, %288 : vector<8x128xf32>
    %290 = vector.extract_strided_slice %199 {offsets = [0, 13], sizes = [8, 1], strides = [1, 1]} : vector<8x16xf32> to vector<8x1xf32>
    %291 = vector.extract_strided_slice %210 {offsets = [1, 0], sizes = [1, 128], strides = [1, 1]} : vector<4x128xf32> to vector<1x128xf32>
    %292 = vector.broadcast %290 : vector<8x1xf32> to vector<8x128xf32>
    %293 = vector.broadcast %291 : vector<1x128xf32> to vector<8x128xf32>
    %294 = arith.mulf %292, %293 : vector<8x128xf32>
    %295 = arith.addf %289, %294 : vector<8x128xf32>
    %296 = vector.extract_strided_slice %199 {offsets = [0, 14], sizes = [8, 1], strides = [1, 1]} : vector<8x16xf32> to vector<8x1xf32>
    %297 = vector.extract_strided_slice %210 {offsets = [2, 0], sizes = [1, 128], strides = [1, 1]} : vector<4x128xf32> to vector<1x128xf32>
    %298 = vector.broadcast %296 : vector<8x1xf32> to vector<8x128xf32>
    %299 = vector.broadcast %297 : vector<1x128xf32> to vector<8x128xf32>
    %300 = arith.mulf %298, %299 : vector<8x128xf32>
    %301 = arith.addf %295, %300 : vector<8x128xf32>
    %302 = vector.extract_strided_slice %199 {offsets = [0, 15], sizes = [8, 1], strides = [1, 1]} : vector<8x16xf32> to vector<8x1xf32>
    %303 = vector.extract_strided_slice %210 {offsets = [3, 0], sizes = [1, 128], strides = [1, 1]} : vector<4x128xf32> to vector<1x128xf32>
    %304 = vector.broadcast %302 : vector<8x1xf32> to vector<8x128xf32>
    %305 = vector.broadcast %303 : vector<1x128xf32> to vector<8x128xf32>
    %306 = arith.mulf %304, %305 : vector<8x128xf32>
    %307 = arith.addf %301, %306 : vector<8x128xf32>
    %308 = vector.broadcast %200 : vector<8x1xf32> to vector<8x128xf32>
    %309 = arith.addf %307, %308 : vector<8x128xf32>
    %cst_22 = arith.constant 0.000000e+00 : f32
    %310 = vector.broadcast %cst_22 : f32 to vector<8x128xf32>
    %311 = arith.maximumf %309, %310 : vector<8x128xf32>
    %cst_23 = arith.constant 0.000000e+00 : f32
    %312 = vector.broadcast %cst_23 : f32 to vector<4x128xf32>
    %313 = vector.extract_strided_slice %201 {offsets = [0, 0], sizes = [4, 1], strides = [1, 1]} : vector<4x8xf32> to vector<4x1xf32>
    %314 = vector.extract_strided_slice %311 {offsets = [0, 0], sizes = [1, 128], strides = [1, 1]} : vector<8x128xf32> to vector<1x128xf32>
    %315 = vector.broadcast %313 : vector<4x1xf32> to vector<4x128xf32>
    %316 = vector.broadcast %314 : vector<1x128xf32> to vector<4x128xf32>
    %317 = arith.mulf %315, %316 : vector<4x128xf32>
    %318 = arith.addf %312, %317 : vector<4x128xf32>
    %319 = vector.extract_strided_slice %201 {offsets = [0, 1], sizes = [4, 1], strides = [1, 1]} : vector<4x8xf32> to vector<4x1xf32>
    %320 = vector.extract_strided_slice %311 {offsets = [1, 0], sizes = [1, 128], strides = [1, 1]} : vector<8x128xf32> to vector<1x128xf32>
    %321 = vector.broadcast %319 : vector<4x1xf32> to vector<4x128xf32>
    %322 = vector.broadcast %320 : vector<1x128xf32> to vector<4x128xf32>
    %323 = arith.mulf %321, %322 : vector<4x128xf32>
    %324 = arith.addf %318, %323 : vector<4x128xf32>
    %325 = vector.extract_strided_slice %201 {offsets = [0, 2], sizes = [4, 1], strides = [1, 1]} : vector<4x8xf32> to vector<4x1xf32>
    %326 = vector.extract_strided_slice %311 {offsets = [2, 0], sizes = [1, 128], strides = [1, 1]} : vector<8x128xf32> to vector<1x128xf32>
    %327 = vector.broadcast %325 : vector<4x1xf32> to vector<4x128xf32>
    %328 = vector.broadcast %326 : vector<1x128xf32> to vector<4x128xf32>
    %329 = arith.mulf %327, %328 : vector<4x128xf32>
    %330 = arith.addf %324, %329 : vector<4x128xf32>
    %331 = vector.extract_strided_slice %201 {offsets = [0, 3], sizes = [4, 1], strides = [1, 1]} : vector<4x8xf32> to vector<4x1xf32>
    %332 = vector.extract_strided_slice %311 {offsets = [3, 0], sizes = [1, 128], strides = [1, 1]} : vector<8x128xf32> to vector<1x128xf32>
    %333 = vector.broadcast %331 : vector<4x1xf32> to vector<4x128xf32>
    %334 = vector.broadcast %332 : vector<1x128xf32> to vector<4x128xf32>
    %335 = arith.mulf %333, %334 : vector<4x128xf32>
    %336 = arith.addf %330, %335 : vector<4x128xf32>
    %337 = vector.extract_strided_slice %201 {offsets = [0, 4], sizes = [4, 1], strides = [1, 1]} : vector<4x8xf32> to vector<4x1xf32>
    %338 = vector.extract_strided_slice %311 {offsets = [4, 0], sizes = [1, 128], strides = [1, 1]} : vector<8x128xf32> to vector<1x128xf32>
    %339 = vector.broadcast %337 : vector<4x1xf32> to vector<4x128xf32>
    %340 = vector.broadcast %338 : vector<1x128xf32> to vector<4x128xf32>
    %341 = arith.mulf %339, %340 : vector<4x128xf32>
    %342 = arith.addf %336, %341 : vector<4x128xf32>
    %343 = vector.extract_strided_slice %201 {offsets = [0, 5], sizes = [4, 1], strides = [1, 1]} : vector<4x8xf32> to vector<4x1xf32>
    %344 = vector.extract_strided_slice %311 {offsets = [5, 0], sizes = [1, 128], strides = [1, 1]} : vector<8x128xf32> to vector<1x128xf32>
    %345 = vector.broadcast %343 : vector<4x1xf32> to vector<4x128xf32>
    %346 = vector.broadcast %344 : vector<1x128xf32> to vector<4x128xf32>
    %347 = arith.mulf %345, %346 : vector<4x128xf32>
    %348 = arith.addf %342, %347 : vector<4x128xf32>
    %349 = vector.extract_strided_slice %201 {offsets = [0, 6], sizes = [4, 1], strides = [1, 1]} : vector<4x8xf32> to vector<4x1xf32>
    %350 = vector.extract_strided_slice %311 {offsets = [6, 0], sizes = [1, 128], strides = [1, 1]} : vector<8x128xf32> to vector<1x128xf32>
    %351 = vector.broadcast %349 : vector<4x1xf32> to vector<4x128xf32>
    %352 = vector.broadcast %350 : vector<1x128xf32> to vector<4x128xf32>
    %353 = arith.mulf %351, %352 : vector<4x128xf32>
    %354 = arith.addf %348, %353 : vector<4x128xf32>
    %355 = vector.extract_strided_slice %201 {offsets = [0, 7], sizes = [4, 1], strides = [1, 1]} : vector<4x8xf32> to vector<4x1xf32>
    %356 = vector.extract_strided_slice %311 {offsets = [7, 0], sizes = [1, 128], strides = [1, 1]} : vector<8x128xf32> to vector<1x128xf32>
    %357 = vector.broadcast %355 : vector<4x1xf32> to vector<4x128xf32>
    %358 = vector.broadcast %356 : vector<1x128xf32> to vector<4x128xf32>
    %359 = arith.mulf %357, %358 : vector<4x128xf32>
    %360 = arith.addf %354, %359 : vector<4x128xf32>
    %361 = vector.broadcast %202 : vector<4x1xf32> to vector<4x128xf32>
    %362 = arith.addf %360, %361 : vector<4x128xf32>
    %363 = math.tanh %362 : vector<4x128xf32>
    %364 = arith.subf %3, %363 : vector<4x128xf32>
    %365 = vector.shape_cast %196 : vector<4x128xf32> to vector<1x4x128xf32>
    %c0_24 = arith.constant 0 : index
    %c0_25 = arith.constant 0 : index
    %c0_26 = arith.constant 0 : index
    %366 = vector.load %arg5[%c0_24, %c0_25, %c0_26] : memref<1x4x128xf32, #tpu.memory_space<vmem>>, vector<1x4x128xf32>
    tpu.vector_store %arg5[%c0_24, %c0_25, %c0_26], %365 {strides = array<i32>} : memref<1x4x128xf32, #tpu.memory_space<vmem>>, vector<1x4x128xf32>,
    %367 = vector.shape_cast %364 : vector<4x128xf32> to vector<1x4x128xf32>
    %c0_27 = arith.constant 0 : index
    %c0_28 = arith.constant 0 : index
    %c0_29 = arith.constant 0 : index
    %368 = vector.load %arg6[%c0_27, %c0_28, %c0_29] : memref<1x4x128xf32, #tpu.memory_space<vmem>>, vector<1x4x128xf32>
    tpu.vector_store %arg6[%c0_27, %c0_28, %c0_29], %367 {strides = array<i32>} : memref<1x4x128xf32, #tpu.memory_space<vmem>>, vector<1x4x128xf32>,
    %cst_30 = arith.constant dense<0.000000e+00> : vector<4xf32>
    %369 = vector.multi_reduction <add>, %196, %cst_30 [1] : vector<4x128xf32> to vector<4xf32>
    %370 = vector.shape_cast %369 : vector<4xf32> to vector<4x1xf32>
    %371 = arith.mulf %196, %196 : vector<4x128xf32>
    %cst_31 = arith.constant dense<0.000000e+00> : vector<4xf32>
    %372 = vector.multi_reduction <add>, %371, %cst_31 [1] : vector<4x128xf32> to vector<4xf32>
    %373 = vector.shape_cast %372 : vector<4xf32> to vector<4x1xf32>
    %cst_32 = arith.constant dense<0.000000e+00> : vector<4xf32>
    %374 = vector.multi_reduction <add>, %364, %cst_32 [1] : vector<4x128xf32> to vector<4xf32>
    %375 = vector.shape_cast %374 : vector<4xf32> to vector<4x1xf32>
    %376 = math.absf %364 : vector<4x128xf32>
    %cst_33 = arith.constant dense<0.000000e+00> : vector<4xf32>
    %377 = vector.multi_reduction <add>, %376, %cst_33 [1] : vector<4x128xf32> to vector<4xf32>
    %378 = vector.shape_cast %377 : vector<4xf32> to vector<4x1xf32>
    %379 = tpu.concatenate %370, %373, %375, %378 in 1 : vector<4x1xf32>, vector<4x1xf32>, vector<4x1xf32>, vector<4x1xf32> -> vector<4x4xf32>
    %380 = vector.shape_cast %379 : vector<4x4xf32> to vector<1x1x4x4xf32>
    %c0_34 = arith.constant 0 : index
    %c0_35 = arith.constant 0 : index
    %c0_36 = arith.constant 0 : index
    %c0_37 = arith.constant 0 : index
    %381 = vector.load %arg7[%c0_34, %c0_35, %c0_36, %c0_37] : memref<1x1x4x4xf32, #tpu.memory_space<vmem>>, vector<1x1x4x4xf32>
    tpu.vector_store %arg7[%c0_34, %c0_35, %c0_36, %c0_37], %380 {strides = array<i32>} : memref<1x1x4x4xf32, #tpu.memory_space<vmem>>, vector<1x1x4x4xf32>,
    return
  }
  func.func @transform_0(%arg0: i32, %arg1: i32) -> (i32, i32, i32) {
    %c0_i32 = arith.constant 0 : i32
    %c0_i32_0 = arith.constant 0 : i32
    return %arg0, %c0_i32, %arg1 : i32, i32, i32
  }
  func.func @transform_1(%arg0: i32, %arg1: i32) -> (i32, i32, i32) {
    %c0_i32 = arith.constant 0 : i32
    %c0_i32_0 = arith.constant 0 : i32
    return %arg0, %c0_i32, %arg1 : i32, i32, i32
  }
  func.func @transform_2(%arg0: i32, %arg1: i32) -> (i32, i32, i32, i32) {
    %c0_i32 = arith.constant 0 : i32
    %c0_i32_0 = arith.constant 0 : i32
    %c0_i32_1 = arith.constant 0 : i32
    %c0_i32_2 = arith.constant 0 : i32
    return %arg0, %c0_i32, %c0_i32_0, %c0_i32_1 : i32, i32, i32, i32
  }
  func.func @transform_3(%arg0: i32, %arg1: i32) -> (i32, i32, i32) {
    %c0_i32 = arith.constant 0 : i32
    %c0_i32_0 = arith.constant 0 : i32
    return %arg0, %c0_i32, %arg1 : i32, i32, i32
  }
  func.func @transform_4(%arg0: i32, %arg1: i32) -> (i32, i32, i32) {
    %c0_i32 = arith.constant 0 : i32
    %c0_i32_0 = arith.constant 0 : i32
    return %arg0, %c0_i32, %arg1 : i32, i32, i32
  }
  func.func @transform_5(%arg0: i32, %arg1: i32) -> (i32, i32, i32, i32) {
    %c0_i32 = arith.constant 0 : i32
    %c0_i32_0 = arith.constant 0 : i32
    %c0_i32_1 = arith.constant 0 : i32
    return %arg0, %arg1, %c0_i32, %c0_i32_0 : i32, i32, i32, i32
  }
}

module attributes {stable_mosaic.version = 11 : i64} {
  func.func @_bn_relu_kernel(%arg0: i32, %arg1: memref<1x4x128xf32, #tpu.memory_space<vmem>>, %arg2: memref<4x1xf32, #tpu.memory_space<vmem>>, %arg3: memref<4x1xf32, #tpu.memory_space<vmem>>, %arg4: memref<4x128xf32, #tpu.memory_space<vmem>>) attributes {dimension_semantics = [#tpu.dimension_semantics<parallel>], iteration_bounds = array<i64: 1>, scalar_prefetch = 0 : i64, scratch_operands = 0 : i64, tpu.core_type = #tpu.core_type<tc>, window_params = [{transform_indices = @transform_0, window_bounds = array<i64: 1, 4, 128>}, {pipeline_mode = #tpu.pipeline_mode<synchronous>, transform_indices = @transform_1, window_bounds = array<i64: 4, 1>}, {pipeline_mode = #tpu.pipeline_mode<synchronous>, transform_indices = @transform_2, window_bounds = array<i64: 4, 1>}, {transform_indices = @transform_3, window_bounds = array<i64: 4, 128>}]} {
    %c0 = arith.constant 0 : index
    %c0_0 = arith.constant 0 : index
    %c0_1 = arith.constant 0 : index
    %0 = vector.load %arg1[%c0, %c0_0, %c0_1] : memref<1x4x128xf32, #tpu.memory_space<vmem>>, vector<1x4x128xf32>
    %1 = vector.shape_cast %0 : vector<1x4x128xf32> to vector<4x128xf32>
    %c0_2 = arith.constant 0 : index
    %c0_3 = arith.constant 0 : index
    %2 = vector.load %arg2[%c0_2, %c0_3] : memref<4x1xf32, #tpu.memory_space<vmem>>, vector<4x1xf32>
    %3 = vector.broadcast %2 : vector<4x1xf32> to vector<4x128xf32>
    %4 = arith.mulf %1, %3 : vector<4x128xf32>
    %c0_4 = arith.constant 0 : index
    %c0_5 = arith.constant 0 : index
    %5 = vector.load %arg3[%c0_4, %c0_5] : memref<4x1xf32, #tpu.memory_space<vmem>>, vector<4x1xf32>
    %6 = vector.broadcast %5 : vector<4x1xf32> to vector<4x128xf32>
    %7 = arith.addf %4, %6 : vector<4x128xf32>
    %cst = arith.constant 0.000000e+00 : f32
    %8 = vector.broadcast %cst : f32 to vector<4x128xf32>
    %9 = arith.maximumf %7, %8 : vector<4x128xf32>
    %c0_6 = arith.constant 0 : index
    %c0_7 = arith.constant 0 : index
    %10 = vector.load %arg4[%c0_6, %c0_7] : memref<4x128xf32, #tpu.memory_space<vmem>>, vector<4x128xf32>
    tpu.vector_store %arg4[%c0_6, %c0_7], %9 {strides = array<i32>} : memref<4x128xf32, #tpu.memory_space<vmem>>, vector<4x128xf32>,
    return
  }
  func.func @transform_0(%arg0: i32) -> (i32, i32, i32) {
    %c0_i32 = arith.constant 0 : i32
    %c0_i32_0 = arith.constant 0 : i32
    %c0_i32_1 = arith.constant 0 : i32
    return %c0_i32, %c0_i32_0, %arg0 : i32, i32, i32
  }
  func.func @transform_1(%arg0: i32) -> (i32, i32) {
    %c0_i32 = arith.constant 0 : i32
    %c0_i32_0 = arith.constant 0 : i32
    %c0_i32_1 = arith.constant 0 : i32
    return %c0_i32, %c0_i32_0 : i32, i32
  }
  func.func @transform_2(%arg0: i32) -> (i32, i32) {
    %c0_i32 = arith.constant 0 : i32
    %c0_i32_0 = arith.constant 0 : i32
    %c0_i32_1 = arith.constant 0 : i32
    return %c0_i32, %c0_i32_0 : i32, i32
  }
  func.func @transform_3(%arg0: i32) -> (i32, i32) {
    %c0_i32 = arith.constant 0 : i32
    %c0_i32_0 = arith.constant 0 : i32
    return %c0_i32, %arg0 : i32, i32
  }
}

</mosaic_0001>

<bundles_post_ra>
// kernel: level_dawn_forward.5
= control target key start
LH: loop header
LB: loop body
LE: loop exit
PB: predicated region body
PF: predicated region fallthrough
CT: control target
= control target key end

     0   :  { %v37_v0 = vmov 0   ;;  %s70_s1 = inlined_call_operand.vmem [shape: f32[4,1], index: 1, kind: input, shape index: {}]   ;;  %s71_s2 = inlined_call_operand.vmem [shape: f32[4,1], index: 2, kind: input, shape index: {}]   ;;  %s72_s0 = inlined_call_operand.vmem [shape: f32[2,4,128], index: 0, kind: input, shape index: {}]   ;;  %s73_s3 = inlined_call_operand.vmem [shape: f32[4,128], index: 3, kind: output, shape index: {}]  }
   0x1   :  { %36 = vset.pattern.permute.xlu0 %v37_v0  ;;  %v15_v1 = vld [vmem:[%s70_s1] sm:$0xf] }
   0x2   :  { %18 = vperm.xlu0 %36, %v15_v1   ;;  %v22_v2 = vld [vmem:[%s71_s2] sm:$0xf] }
   0x3   :  { %v14_v4 = vld [vmem:[%s72_s0] sm:$0xf] }
   0x6   :  { %25 = vperm.xlu0 %36, %v22_v2  }
  0x81   :  { %v19_v3 = vpop.permute.xlu0 %18 }
  0x82   :  { %v21_v5 = vmul.f32 %v19_v3, %v14_v4 }
  0x85   :  { %v26_v6 = vpop.permute.xlu0 %25 }
  0x86   :  { %v28_v7 = vadd.f32 %v26_v6, %v21_v5 }
  0x88   :  { %v29_v8 = vmax.f32 %v28_v7, 0.0 }
  0x8a   :  { %30 = vst [vmem:[%s73_s3] sm:$0xf] %v29_v8 }

// kernel: level_dawn_forward.3
= control target key start
LH: loop header
LB: loop body
LE: loop exit
PB: predicated region body
PF: predicated region fallthrough
CT: control target
= control target key end

     0   :  { %v1167_v0 = vmov 0   ;;  %v1168_v3 = vmov 2   ;;  %s1169_s22 = smov 2   ;;  %v1170_v5 = vmov 1   ;;  %s1171_s23 = smov 126   ;;  %v1172_v6 = vmov 3   ;;  %s1661_s2 = inlined_call_operand.vmem [shape: f32[1,2,8,26], index: 2, kind: input, shape index: {}]   ;;  %s1662_s1 = inlined_call_operand.vmem [shape: f32[1,4,256], index: 1, kind: input, shape index: {}]   ;;  %s1663_s0 = inlined_call_operand.vmem [shape: f32[1,4,256], index: 0, kind: input, shape index: {}]   ;;  %s1664_s3 = inlined_call_operand.vmem [shape: f32[1,4,256], index: 3, kind: output, shape index: {0}]   ;;  %s1665_s4 = inlined_call_operand.vmem [shape: f32[1,4,256], index: 4, kind: output, shape index: {1}]   ;;  %s1666_s5 = inlined_call_operand.vmem [shape: f32[1,1,4,4], index: 5, kind: output, shape index: {2}]  }
   0x1   :  { %1104 = vset.pattern.permute.xlu0 %v1167_v0  ;;  %v1231_v1 = vld [vmem:[%s1661_s2] sm:$0xff]  ;;  %1106 = vset.pattern.permute.xlu1 %v1168_v3  ;;  %v1173_v7 = vmov 4   ;;  %s1174_s24 = smov 1   ;;  %v1175_v8 = vmov 6   ;;  %s1176_s25 = smov 127   ;;  %v1177_v9 = vmov 5   ;;  %v21_v30 = vlaneseq }
   0x2   :  { %v1236_v2 = vld [vmem:[%s1662_s1] sm:$0xff]  ;;  %95 = vperm.xlu0 %1104, %v1231_v1   ;;  %v1178_v10 = vmov 7   ;;  %v1179_v11 = vmov 9   ;;  %v1180_v12 = vmov 12   ;;  %v1181_v13 = vmov 8   ;;  %v1294_v22 = vld [vmem:[%s1661_s2 + $0x8] sm:$0xff] }
   0x3   :  { %57 = vrot.lane.b32.xlu1 %v1236_v2, %s1169_s22  ;;  %v1244_v4 = vcombine.high %v1236_v2, %v1236_v2  ;;  %v1182_v14 = vmov 15   ;;  %v1183_v15 = vmov 10   ;;  %v1184_v16 = vmov 18  }
   0x4   :  { %v1185_v17 = vmov 11   ;;  %v1186_v18 = vmov 21   ;;  %v1187_v19 = vmov 13   ;;  %v1188_v20 = vmov 24  }
   0x5   :  { %v1189_v21 = vmov 14   ;;  %v1190_v23 = vmov 16   ;;  %v1191_v24 = vmov 17   ;;  %v1192_v25 = vmov 19  }
   0x6   :  { %1105 = vset.pattern.permute.xlu0 %v1170_v5  ;;  %v1193_v26 = vmov 20   ;;  %v1194_v27 = vmov 22   ;;  %v1195_v28 = vmov 23   ;;  %v1196_v29 = vmov 25  }
   0x7   :  { %59 = vrot.lane.b32.xlu1 %v1244_v4, %s1169_s22  ;;  %111 = vperm.xlu0 %1105, %v1231_v1   ;;  %v1326_v32 = vand.u32 127, %v21_v30  ;;  %v1342_v43 = vshrl.u32 %v21_v30, 7  ;;  %vm1022_vm10 = vcmask 1043456   ;;  %vm1054_vm11 = vcmask 7168  }
   0x8   :  { %vm1056_vm12 = vcmask 15360   ;;  %vm1058_vm13 = vcmask 23552   ;;  %vm1060_vm14 = vcmask 27648  }
   0x9   :  { %v23_v34 = vadd.s32 128, %v1326_v32  ;;  %v1330_v37 = vand.u32 7, %v1326_v32  ;;  %vm68_vm0 = vcmp.lt.s32.totalorder %v1326_v32, 126  ;;  %vm61_vm1 = vcmp.lt.s32.totalorder %v1326_v32, 2 }
   0xa   :  { %v1355_v49 = vsub.s32 0, %v1342_v43  ;;  %v1358_v50 = vsub.s32 1, %v1342_v43  ;;  %v1371_v59 = vsub.s32 2, %v1342_v43  ;;  %vm79_vm6 = vcmp.lt.s32.totalorder %v1326_v32, 1 }
   0xb   :  { %64 = vrot.lane.b32.xlu1 %v1236_v2, %s1171_s23  ;;  %66 = vrot.lane.b32.xlu0 %v1244_v4, %s1171_s23  ;;  %v1332_v38 = vand.u32 7, %v23_v34  ;;  %vm48_vm2 = vcmp.eq.s32.totalorder %v1330_v37, 0  ;;  %vm50_vm4 = vcmp.eq.s32.totalorder %v1330_v37, 1  ;;  %vm86_vm7 = vcmp.lt.s32.totalorder %v1326_v32, 127 }
   0xc   :  { %1107 = vset.pattern.permute.xlu0 %v1172_v6  ;;  %vm52_vm8 = vcmp.eq.s32.totalorder %v1330_v37, 7 }
   0xd   :  { %vm49_vm3 = vcmp.eq.s32.totalorder %v1332_v38, 0  ;;  %vm51_vm5 = vcmp.eq.s32.totalorder %v1332_v38, 1  ;;  %vm53_vm9 = vcmp.eq.s32.totalorder %v1332_v38, 7 }
   0xf   :  { %127 = vperm.xlu1 %1106, %v1231_v1   ;;  %143 = vperm.xlu0 %1107, %v1231_v1  }
  0x13   :  { %1108 = vset.pattern.permute.xlu1 %v1173_v7  ;;  %75 = vrot.lane.b32.xlu0 %v1236_v2, %s1174_s24 }
  0x14   :  { %159 = vperm.xlu1 %1108, %v1231_v1   ;;  %1110 = vset.pattern.permute.xlu0 %v1175_v8 }
  0x17   :  { %82 = vrot.lane.b32.xlu0 %v1236_v2, %s1176_s25 }
  0x18   :  { %1109 = vset.pattern.permute.xlu1 %v1177_v9 }
  0x19   :  { %175 = vperm.xlu1 %1109, %v1231_v1  }
  0x1b   :  { %191 = vperm.xlu0 %1110, %v1231_v1  }
  0x1d   :  { %77 = vrot.lane.b32.xlu1 %v1244_v4, %s1174_s24 }
  0x1e   :  { %1111 = vset.pattern.permute.xlu1 %v1178_v10 }
  0x1f   :  { %1113 = vset.pattern.permute.xlu0 %v1179_v11 }
  0x20   :  { %249 = vperm.xlu0 %1113, %v1231_v1  }
  0x21   :  { %84 = vrot.lane.b32.xlu1 %v1244_v4, %s1176_s25 }
  0x24   :  { %1116 = vset.pattern.permute.xlu0 %v1180_v12 }
  0x25   :  { %207 = vperm.xlu1 %1111, %v1231_v1   ;;  %327 = vperm.xlu0 %1116, %v1231_v1  }
  0x29   :  { %1112 = vset.pattern.permute.xlu1 %v1181_v13  ;;  %1119 = vset.pattern.permute.xlu0 %v1182_v14 }
  0x2a   :  { %223 = vperm.xlu1 %1112, %v1231_v1   ;;  %375 = vperm.xlu0 %1119, %v1231_v1  }
  0x2e   :  { %1114 = vset.pattern.permute.xlu1 %v1183_v15  ;;  %1122 = vset.pattern.permute.xlu0 %v1184_v16 }
  0x2f   :  { %275 = vperm.xlu1 %1114, %v1231_v1   ;;  %415 = vperm.xlu0 %1122, %v1231_v1  }
  0x33   :  { %1115 = vset.pattern.permute.xlu1 %v1185_v17  ;;  %1125 = vset.pattern.permute.xlu0 %v1186_v18 }
  0x34   :  { %301 = vperm.xlu1 %1115, %v1231_v1   ;;  %463 = vperm.xlu0 %1125, %v1231_v1  }
  0x38   :  { %1117 = vset.pattern.permute.xlu1 %v1187_v19  ;;  %1128 = vset.pattern.permute.xlu0 %v1188_v20 }
  0x39   :  { %343 = vperm.xlu1 %1117, %v1231_v1   ;;  %511 = vperm.xlu0 %1128, %v1231_v1  }
  0x3d   :  { %1118 = vset.pattern.permute.xlu1 %v1189_v21  ;;  %1131 = vset.pattern.permute.xlu0 %v1170_v5  ;;  %v1376_v5 = vsub.s32 3, %v1342_v43 }
  0x3e   :  { %359 = vperm.xlu1 %1118, %v1231_v1   ;;  %592 = vperm.xlu0 %1131, %v1294_v22  }
  0x42   :  { %1120 = vset.pattern.permute.xlu1 %v1190_v23  ;;  %1132 = vset.pattern.permute.xlu0 %v1168_v3 }
  0x43   :  { %391 = vperm.xlu1 %1120, %v1231_v1   ;;  %608 = vperm.xlu0 %1132, %v1294_v22  }
  0x47   :  { %1121 = vset.pattern.permute.xlu1 %v1191_v24  ;;  %1135 = vset.pattern.permute.xlu0 %v1177_v9 }
  0x48   :  { %399 = vperm.xlu1 %1121, %v1231_v1   ;;  %656 = vperm.xlu0 %1135, %v1294_v22  }
  0x4c   :  { %1123 = vset.pattern.permute.xlu1 %v1192_v25  ;;  %1136 = vset.pattern.permute.xlu0 %v1175_v8 }
  0x4d   :  { %431 = vperm.xlu1 %1123, %v1231_v1   ;;  %672 = vperm.xlu0 %1136, %v1294_v22  }
  0x51   :  { %1124 = vset.pattern.permute.xlu1 %v1193_v26  ;;  %1139 = vset.pattern.permute.xlu0 %v1179_v11 }
  0x52   :  { %447 = vperm.xlu1 %1124, %v1231_v1  }
  0x56   :  { %1126 = vset.pattern.permute.xlu1 %v1194_v27 }
  0x57   :  { %479 = vperm.xlu1 %1126, %v1231_v1  }
  0x5b   :  { %1127 = vset.pattern.permute.xlu1 %v1195_v28 }
  0x5c   :  { %495 = vperm.xlu1 %1127, %v1231_v1  }
  0x60   :  { %1129 = vset.pattern.permute.xlu1 %v1196_v29 }
  0x61   :  { %527 = vperm.xlu1 %1129, %v1231_v1  }
  0x65   :  { %1130 = vset.pattern.permute.xlu1 %v1167_v0 }
  0x66   :  { %576 = vperm.xlu1 %1130, %v1294_v22  }
  0x6a   :  { %1133 = vset.pattern.permute.xlu1 %v1172_v6  ;;  %v255_v6 = vrot.slane %v1236_v2, %v1358_v50 }
  0x6b   :  { %624 = vperm.xlu1 %1133, %v1294_v22  }
  0x6c   :  { %v265_v34 = vrot.slane %v255_v6, %v1358_v50 }
  0x6f   :  { %1134 = vset.pattern.permute.xlu1 %v1173_v7  ;;  %v1381_v7 = vsub.s32 5, %v1342_v43 }
  0x70   :  { %640 = vperm.xlu1 %1134, %v1294_v22  }
  0x74   :  { %1137 = vset.pattern.permute.xlu1 %v1178_v10 }
  0x75   :  { %688 = vperm.xlu1 %1137, %v1294_v22   ;;  %v58_v31 = vpop.permute.xlu1 %57 }
  0x79   :  { %1138 = vset.pattern.permute.xlu1 %v1181_v13  ;;  %v60_v35 = vpop.permute.xlu1 %59 }
  0x7a   :  { %704 = vperm.xlu1 %1138, %v1294_v22   ;;  %v62_v44 = vsel %vm61_vm1, %v58_v31, %v60_v35  ;;  %v63_v45 = vsel %vm61_vm1, %v60_v35, %v58_v31 }
  0x7d   :  { %v65_v39 = vpop.permute.xlu1 %64 }
  0x7e   :  { %1140 = vset.pattern.permute.xlu1 %v1183_v15 }
  0x81   :  { %v96_v33 = vpop.permute.xlu0 %95 }
  0x86   :  { %v112_v36 = vpop.permute.xlu0 %111 }
  0x8a   :  { %v67_v40 = vpop.permute.xlu0 %66 }
  0x8b   :  { %v69_v41 = vsel %vm68_vm0, %v65_v39, %v67_v40  ;;  %v70_v42 = vsel %vm68_vm0, %v67_v40, %v65_v39  ;;  %v1391_v40 = vsub.s32 4, %v1342_v43 }
  0x8c   :  { %v71_v46 = vsel %vm48_vm2, %v69_v41, %v63_v45  ;;  %v72_v47 = vsel %vm49_vm3, %v70_v42, %v62_v44  ;;  %v1394_v41 = vsub.s32 6, %v1342_v43 }
  0x8d   :  { %v73_v51 = vsel %vm50_vm4, %v1236_v2, %v71_v46  ;;  %v74_v52 = vsel %vm51_vm5, %v1244_v4, %v72_v47 }
  0x8e   :  { %v128_v48 = vpop.permute.xlu1 %127  ;;  %v144_v53 = vpop.permute.xlu0 %143  ;;  %v101_v55 = vrot.slane %v73_v51, %v1355_v49  ;;  %v105_v56 = vrot.slane %v74_v52, %v1355_v49  ;;  %v117_v57 = vrot.slane %v73_v51, %v1358_v50  ;;  %v121_v58 = vrot.slane %v74_v52, %v1358_v50 }
  0x8f   :  { %v133_v3 = vrot.slane %v73_v51, %v1371_v59  ;;  %v137_v4 = vrot.slane %v74_v52, %v1371_v59  ;;  %v149_v15 = vrot.slane %v73_v51, %v1376_v5  ;;  %v153_v30 = vrot.slane %v74_v52, %v1376_v5 }
  0x90   :  { %v106_v60 = vmul.f32 %v101_v55, %v96_v33  ;;  %v107_v61 = vmul.f32 %v105_v56, %v96_v33  ;;  %v122_v62 = vmul.f32 %v117_v57, %v112_v36  ;;  %v123_v63 = vmul.f32 %v121_v58, %v112_v36 }
  0x91   :  { %v138_v11 = vmul.f32 %v133_v3, %v128_v48  ;;  %v139_v13 = vmul.f32 %v137_v4, %v128_v48  ;;  %v259_v33 = vrot.slane %v1236_v2, %v1381_v7  ;;  %v154_v47 = vmul.f32 %v149_v15, %v144_v53 }
  0x92   :  { %v76_v1 = vpop.permute.xlu0 %75  ;;  %v124_v8 = vadd.f32 %v122_v62, %v106_v60  ;;  %v125_v9 = vadd.f32 %v123_v63, %v107_v61  ;;  %v155_v48 = vmul.f32 %v153_v30, %v144_v53  ;;  %v229_v53 = vrot.slane %v1236_v2, %v1355_v49 }
  0x93   :  { %v160_v54 = vpop.permute.xlu1 %159  ;;  %v233_v63 = vrot.slane %v1236_v2, %v1391_v40 }
  0x94   :  { %v140_v35 = vadd.f32 %v138_v11, %v124_v8  ;;  %v141_v36 = vadd.f32 %v139_v13, %v125_v9  ;;  %v281_v11 = vrot.slane %v1236_v2, %v1371_v59  ;;  %v285_v13 = vrot.slane %v1236_v2, %v1394_v41 }
  0x96   :  { %v83_v31 = vpop.permute.xlu0 %82  ;;  %v156_v60 = vadd.f32 %v154_v47, %v140_v35  ;;  %v157_v61 = vadd.f32 %v155_v48, %v141_v36  ;;  %v239_v36 = vrot.slane %v229_v53, %v1355_v49  ;;  %v1428_v47 = vsub.s32 7, %v1342_v43 }
  0x98   :  { %v176_v0 = vpop.permute.xlu1 %175 }
  0x9c   :  { %v78_v10 = vpop.permute.xlu1 %77 }
  0x9d   :  { %v80_v42 = vsel %vm79_vm6, %v76_v1, %v78_v10  ;;  %v81_v44 = vsel %vm79_vm6, %v78_v10, %v76_v1  ;;  %v192_v1 = vpop.permute.xlu0 %191 }
  0xa0   :  { %v85_v39 = vpop.permute.xlu1 %84 }
  0xa1   :  { %v87_v45 = vsel %vm86_vm7, %v83_v31, %v85_v39  ;;  %v88_v46 = vsel %vm86_vm7, %v85_v39, %v83_v31  ;;  %v243_v39 = vrot.slane %v233_v63, %v1355_v49 }
  0xa2   :  { %v89_v51 = vsel %vm48_vm2, %v87_v45, %v81_v44  ;;  %v90_v52 = vsel %vm49_vm3, %v88_v46, %v80_v42 }
  0xa3   :  { %v165_v55 = vrot.slane %v89_v51, %v1355_v49  ;;  %v169_v56 = vrot.slane %v90_v52, %v1355_v49  ;;  %v181_v57 = vrot.slane %v89_v51, %v1358_v50  ;;  %v185_v58 = vrot.slane %v90_v52, %v1358_v50 }
  0xa4   :  { %v208_v62 = vpop.permute.xlu1 %207  ;;  %v197_v6 = vrot.slane %v89_v51, %v1371_v59  ;;  %v201_v8 = vrot.slane %v90_v52, %v1371_v59  ;;  %v213_v9 = vrot.slane %v89_v51, %v1376_v5  ;;  %v217_v10 = vrot.slane %v90_v52, %v1376_v5 }
  0xa5   :  { %v170_v3 = vmul.f32 %v165_v55, %v160_v54  ;;  %v171_v4 = vmul.f32 %v169_v56, %v160_v54  ;;  %v186_v31 = vmul.f32 %v181_v57, %v176_v0  ;;  %v187_v35 = vmul.f32 %v185_v58, %v176_v0  ;;  %v250_v57 = vpop.permute.xlu0 %249 }
  0xa6   :  { %v269_v54 = vrot.slane %v259_v33, %v1358_v50  ;;  %v202_v52 = vmul.f32 %v197_v6, %v192_v1  ;;  %v203_v55 = vmul.f32 %v201_v8, %v192_v1  ;;  %v291_v0 = vrot.slane %v281_v11, %v1371_v59 }
  0xa7   :  { %v172_v15 = vadd.f32 %v170_v3, %v156_v60  ;;  %v173_v30 = vadd.f32 %v171_v4, %v157_v61  ;;  %v295_v33 = vrot.slane %v285_v13, %v1371_v59  ;;  %v218_v61 = vmul.f32 %v213_v9, %v208_v62 }
  0xa8   :  { %v219_v53 = vmul.f32 %v217_v10, %v208_v62  ;;  %v270_v43 = vmul.f32 %v265_v34, %v250_v57  ;;  %v271_v63 = vmul.f32 %v269_v54, %v250_v57  ;;  %v307_v3 = vrot.slane %v1236_v2, %v1376_v5 }
  0xa9   :  { %v188_v48 = vadd.f32 %v186_v31, %v172_v15  ;;  %v189_v51 = vadd.f32 %v187_v35, %v173_v30  ;;  %v224_v56 = vpop.permute.xlu1 %223  ;;  %v311_v1 = vrot.slane %v1236_v2, %v1428_v47  ;;  %v91_v31 = vsel %vm52_vm8, %v81_v44, %v87_v45  ;;  %v328_v45 = vpop.permute.xlu0 %327 }
  0xaa   :  { %v244_v8 = vmul.f32 %v239_v36, %v224_v56  ;;  %v245_v15 = vmul.f32 %v243_v39, %v224_v56  ;;  %v92_v34 = vsel %vm53_vm9, %v80_v42, %v88_v46  ;;  %v317_v62 = vrot.slane %v307_v3, %v1376_v5 }
  0xab   :  { %v204_v58 = vadd.f32 %v202_v52, %v188_v48  ;;  %v205_v60 = vadd.f32 %v203_v55, %v189_v51  ;;  %v321_v9 = vrot.slane %v311_v1, %v1376_v5  ;;  %v333_v51 = vrot.slane %v91_v31, %v1355_v49 }
  0xac   :  { %v337_v52 = vrot.slane %v92_v34, %v1355_v49  ;;  %v369_v3 = vrot.slane %v92_v34, %v1371_v59 }
  0xad   :  { %v220_v4 = vadd.f32 %v218_v61, %v204_v58  ;;  %v221_v6 = vadd.f32 %v219_v53, %v205_v60  ;;  %v338_v46 = vmul.f32 %v333_v51, %v328_v45  ;;  %v349_v58 = vrot.slane %v91_v31, %v1358_v50  ;;  %v376_v1 = vpop.permute.xlu0 %375 }
  0xae   :  { %v276_v11 = vpop.permute.xlu1 %275  ;;  %v339_v57 = vmul.f32 %v337_v52, %v328_v45  ;;  %v353_v60 = vrot.slane %v92_v34, %v1358_v50 }
  0xaf   :  { %v246_v30 = vadd.f32 %v244_v8, %v220_v4  ;;  %v247_v13 = vadd.f32 %v245_v15, %v221_v6  ;;  %v296_v2 = vmul.f32 %v291_v0, %v276_v11  ;;  %v297_v54 = vmul.f32 %v295_v33, %v276_v11 }
  0xb0   :  { %v381_v4 = vrot.slane %v91_v31, %v1376_v5  ;;  %v385_v6 = vrot.slane %v92_v34, %v1376_v5 }
  0xb1   :  { %v272_v10 = vadd.f32 %v270_v43, %v246_v30  ;;  %v273_v35 = vadd.f32 %v271_v63, %v247_v13  ;;  %v365_v63 = vrot.slane %v91_v31, %v1371_v59 }
  0xb3   :  { %v298_v48 = vadd.f32 %v296_v2, %v272_v10  ;;  %v299_v36 = vadd.f32 %v297_v54, %v273_v35  ;;  %v302_v39 = vpop.permute.xlu1 %301 }
  0xb4   :  { %v322_v55 = vmul.f32 %v317_v62, %v302_v39  ;;  %v323_v44 = vmul.f32 %v321_v9, %v302_v39  ;;  %v386_v62 = vmul.f32 %v381_v4, %v376_v1  ;;  %v387_v9 = vmul.f32 %v385_v6, %v376_v1 }
  0xb6   :  { %v324_v56 = vadd.f32 %v322_v55, %v298_v48  ;;  %v325_v42 = vadd.f32 %v323_v44, %v299_v36 }
  0xb8   :  { %v344_v0 = vpop.permute.xlu1 %343  ;;  %v340_v33 = vadd.f32 %v338_v46, %v324_v56  ;;  %v341_v61 = vadd.f32 %v339_v57, %v325_v42  ;;  %v416_v56 = vpop.permute.xlu0 %415 }
  0xb9   :  { %v354_v53 = vmul.f32 %v349_v58, %v344_v0  ;;  %v355_v43 = vmul.f32 %v353_v60, %v344_v0 }
  0xbb   :  { %v356_v15 = vadd.f32 %v354_v53, %v340_v33  ;;  %v357_v11 = vadd.f32 %v355_v43, %v341_v61 }
  0xbd   :  { %v360_v8 = vpop.permute.xlu1 %359 }
  0xbe   :  { %v370_v30 = vmul.f32 %v365_v63, %v360_v8  ;;  %v371_v13 = vmul.f32 %v369_v3, %v360_v8 }
  0xc0   :  { %v372_v10 = vadd.f32 %v370_v30, %v356_v15  ;;  %v373_v35 = vadd.f32 %v371_v13, %v357_v11 }
  0xc2   :  { %v388_v2 = vadd.f32 %v386_v62, %v372_v10  ;;  %v389_v54 = vadd.f32 %v387_v9, %v373_v35  ;;  %v392_v48 = vpop.permute.xlu1 %391  ;;  %v464_v10 = vpop.permute.xlu0 %463 }
  0xc4   :  { %v394_v36 = vadd.f32 %v392_v48, %v388_v2  ;;  %v395_v39 = vadd.f32 %v392_v48, %v389_v54 }
  0xc6   :  { %v396_v51 = vmax.f32 %v394_v36, 0.0  ;;  %v397_v52 = vmax.f32 %v395_v39, 0.0 }
  0xc7   :  { %v400_v55 = vpop.permute.xlu1 %399 }
  0xc8   :  { %v405_v31 = vrot.slane %v396_v51, %v1355_v49  ;;  %v409_v34 = vrot.slane %v397_v52, %v1355_v49  ;;  %v421_v44 = vrot.slane %v396_v51, %v1358_v50  ;;  %v425_v45 = vrot.slane %v397_v52, %v1358_v50 }
  0xc9   :  { %v437_v60 = vrot.slane %v396_v51, %v1371_v59  ;;  %v441_v0 = vrot.slane %v397_v52, %v1371_v59  ;;  %v453_v3 = vrot.slane %v396_v51, %v1376_v5  ;;  %v457_v1 = vrot.slane %v397_v52, %v1376_v5 }
  0xca   :  { %v410_v42 = vmul.f32 %v405_v31, %v400_v55  ;;  %v411_v46 = vmul.f32 %v409_v34, %v400_v55  ;;  %v426_v57 = vmul.f32 %v421_v44, %v416_v56  ;;  %v427_v58 = vmul.f32 %v425_v45, %v416_v56 }
  0xcb   :  { %v469_v4 = vrot.slane %v396_v51, %v1391_v40  ;;  %v473_v6 = vrot.slane %v397_v52, %v1391_v40  ;;  %v485_v54 = vrot.slane %v396_v51, %v1381_v7  ;;  %v489_v48 = vrot.slane %v397_v52, %v1381_v7 }
  0xcc   :  { %v432_v33 = vpop.permute.xlu1 %431  ;;  %v428_v61 = vadd.f32 %v426_v57, %v410_v42  ;;  %v429_v53 = vadd.f32 %v427_v58, %v411_v46  ;;  %v517_v44 = vrot.slane %v396_v51, %v1428_v47  ;;  %v521_v45 = vrot.slane %v397_v52, %v1428_v47  ;;  %v512_v46 = vpop.permute.xlu0 %511 }
  0xcd   :  { %v442_v43 = vmul.f32 %v437_v60, %v432_v33  ;;  %v443_v63 = vmul.f32 %v441_v0, %v432_v33  ;;  %v474_v35 = vmul.f32 %v469_v4, %v464_v10  ;;  %v475_v2 = vmul.f32 %v473_v6, %v464_v10 }
  0xce   :  { %v501_v56 = vrot.slane %v396_v51, %v1394_v41  ;;  %v505_v42 = vrot.slane %v397_v52, %v1394_v41  ;;  %v17_v52 = vld [vmem:[%s1663_s0] sm:$0xff] }
  0xcf   :  { %v444_v15 = vadd.f32 %v442_v43, %v428_v61  ;;  %v445_v11 = vadd.f32 %v443_v63, %v429_v53  ;;  %v522_v61 = vmul.f32 %v517_v44, %v512_v46  ;;  %v523_v53 = vmul.f32 %v521_v45, %v512_v46 }
  0xd1   :  { %v448_v8 = vpop.permute.xlu1 %447 }
  0xd2   :  { %v458_v30 = vmul.f32 %v453_v3, %v448_v8  ;;  %v459_v13 = vmul.f32 %v457_v1, %v448_v8 }
  0xd4   :  { %v460_v62 = vadd.f32 %v458_v30, %v444_v15  ;;  %v461_v9 = vadd.f32 %v459_v13, %v445_v11 }
  0xd6   :  { %v480_v36 = vpop.permute.xlu1 %479  ;;  %v476_v39 = vadd.f32 %v474_v35, %v460_v62  ;;  %v477_v55 = vadd.f32 %v475_v2, %v461_v9 }
  0xd7   :  { %v490_v31 = vmul.f32 %v485_v54, %v480_v36  ;;  %v491_v34 = vmul.f32 %v489_v48, %v480_v36 }
  0xd9   :  { %v492_v58 = vadd.f32 %v490_v31, %v476_v39  ;;  %v493_v60 = vadd.f32 %v491_v34, %v477_v55 }
  0xdb   :  { %v496_v57 = vpop.permute.xlu1 %495 }
  0xdc   :  { %v506_v0 = vmul.f32 %v501_v56, %v496_v57  ;;  %v507_v33 = vmul.f32 %v505_v42, %v496_v57 }
  0xde   :  { %v508_v43 = vadd.f32 %v506_v0, %v492_v58  ;;  %v509_v63 = vadd.f32 %v507_v33, %v493_v60 }
  0xe0   :  { %v524_v3 = vadd.f32 %v522_v61, %v508_v43  ;;  %v525_v1 = vadd.f32 %v523_v53, %v509_v63  ;;  %v528_v4 = vpop.permute.xlu1 %527 }
  0xe2   :  { %v530_v6 = vadd.f32 %v528_v4, %v524_v3  ;;  %v531_v8 = vadd.f32 %v528_v4, %v525_v1 }
  0xe4   :  { %1158 = vtanh.f32 %v530_v6 }
  0xe5   :  { %1160 = vtanh.f32 %v531_v8 }
  0xee   :  { %v1159_v51 = vpop.eup %1158 }
  0xef   :  { %v1161_v15 = vpop.eup %1160 }
  0xf0   :  { %v536_v11 = vcombine.low %v1159_v51, %v1161_v15 }
  0xf2   :  { %v1471_v30 = vadd.f32 %v536_v11, %v17_v52 }
  0xf4   :  { %1020 = vst [vmem:[%s1664_s3] sm:$0xff] %v1471_v30  ;;  %548 = vrot.lane.b32.xlu0 %v1471_v30, %s1171_s23  ;;  %542 = vrot.lane.b32.xlu1 %v1471_v30, %s1169_s22  ;;  %v1487_v13 = vcombine.high %v1471_v30, %v1471_v30 }
  0xf8   :  { %564 = vrot.lane.b32.xlu0 %v1471_v30, %s1176_s25  ;;  %558 = vrot.lane.b32.xlu1 %v1471_v30, %s1174_s24 }
  0xfc   :  { %730 = vperm.xlu0 %1139, %v1294_v22   ;;  %544 = vrot.lane.b32.xlu1 %v1487_v13, %s1169_s22 }
 0x100   :  { %1142 = vset.pattern.permute.xlu0 %v1180_v12  ;;  %550 = vrot.lane.b32.xlu1 %v1487_v13, %s1171_s23  ;;  %v1028_v12 = vmul.f32 %v1471_v30, %v1471_v30 }
 0x101   :  { %808 = vperm.xlu0 %1142, %v1294_v22  }
 0x104   :  { %560 = vrot.lane.b32.xlu1 %v1487_v13, %s1174_s24 }
 0x105   :  { %1145 = vset.pattern.permute.xlu0 %v1182_v14  ;;  %v1030_v14 = vcombine.high %v1028_v12, %v1028_v12 }
 0x106   :  { %856 = vperm.xlu0 %1145, %v1294_v22  }
 0x108   :  { %566 = vrot.lane.b32.xlu1 %v1487_v13, %s1176_s25 }
 0x10a   :  { %1148 = vset.pattern.permute.xlu0 %v1184_v16  ;;  %v1033_v16 = vsel %vm1022_vm10, %v1030_v14, 0.0 }
 0x10b   :  { %896 = vperm.xlu0 %1148, %v1294_v22  }
 0x10c   :  { %756 = vperm.xlu1 %1140, %v1294_v22  }
 0x10f   :  { %1151 = vset.pattern.permute.xlu0 %v1186_v18 }
 0x110   :  { %944 = vperm.xlu0 %1151, %v1294_v22   ;;  %1141 = vset.pattern.permute.xlu1 %v1185_v17  ;;  %v1032_v17 = vsel %vm1022_vm10, %v1028_v12, 0.0 }
 0x111   :  { %782 = vperm.xlu1 %1141, %v1294_v22   ;;  %v1034_v18 = vadd.f32 %v1033_v16, %v1032_v17 }
 0x114   :  { %1154 = vset.pattern.permute.xlu0 %v1188_v20 }
 0x115   :  { %992 = vperm.xlu0 %1154, %v1294_v22   ;;  %1143 = vset.pattern.permute.xlu1 %v1187_v19  ;;  %v577_v19 = vpop.permute.xlu1 %576 }
 0x116   :  { %824 = vperm.xlu1 %1143, %v1294_v22  }
 0x119   :  { %1156 = vset.pattern.permute.xlu0 %v1196_v29  ;;  %v625_v20 = vpop.permute.xlu1 %624 }
 0x11a   :  { %1144 = vset.pattern.permute.xlu1 %v1189_v21 }
 0x11b   :  { %840 = vperm.xlu1 %1144, %v1294_v22  }
 0x11d   :  { %v641_v21 = vpop.permute.xlu1 %640 }
 0x11f   :  { %1146 = vset.pattern.permute.xlu1 %v1190_v23  ;;  %v593_v23 = vpop.permute.xlu0 %592 }
 0x120   :  { %872 = vperm.xlu1 %1146, %v1294_v22  }
 0x124   :  { %1147 = vset.pattern.permute.xlu1 %v1191_v24  ;;  %v1534_v24 = vpop.permute.xlu1 %688 }
 0x125   :  { %880 = vperm.xlu1 %1147, %v1294_v22  }
 0x128   :  { %v1540_v62 = vpop.permute.xlu1 %704 }
 0x129   :  { %1149 = vset.pattern.permute.xlu1 %v1192_v25  ;;  %v1024_v25 = vsel %vm1022_vm10, %v1487_v13, 0.0 }
 0x12a   :  { %912 = vperm.xlu1 %1149, %v1294_v22  }
 0x12e   :  { %1150 = vset.pattern.permute.xlu1 %v1193_v26  ;;  %v1023_v26 = vsel %vm1022_vm10, %v1471_v30, 0.0 }
 0x12f   :  { %928 = vperm.xlu1 %1150, %v1294_v22  }
 0x133   :  { %1152 = vset.pattern.permute.xlu1 %v1194_v27  ;;  %v609_v27 = vpop.permute.xlu0 %608 }
 0x134   :  { %1035 = vadd.xlane.f32.xlu0 %v1034_v18  ;;  %960 = vperm.xlu1 %1152, %v1294_v22  }
 0x138   :  { %1153 = vset.pattern.permute.xlu1 %v1195_v28  ;;  %v1025_v28 = vadd.f32 %v1024_v25, %v1023_v26 }
 0x139   :  { %976 = vperm.xlu1 %1153, %v1294_v22  }
 0x13d   :  { %1155 = vset.pattern.permute.xlu1 %v1196_v29  ;;  %v657_v29 = vpop.permute.xlu0 %656 }
 0x13e   :  { %1008 = vperm.xlu1 %1155, %v1294_v22  }
 0x141   :  { %v673_v10 = vpop.permute.xlu0 %672 }
 0x162   :  { %1026 = vadd.xlane.f32.xlu1 %v1025_v28 }
 0x166   :  { %v543_v9 = vpop.permute.xlu1 %542  ;;  %v549_v2 = vpop.permute.xlu0 %548 }
 0x16a   :  { %v559_v22 = vpop.permute.xlu1 %558  ;;  %v565_v6 = vpop.permute.xlu0 %564 }
 0x16e   :  { %v545_v35 = vpop.permute.xlu1 %544 }
 0x16f   :  { %v546_v48 = vsel %vm61_vm1, %v543_v9, %v545_v35  ;;  %v547_v36 = vsel %vm61_vm1, %v545_v35, %v543_v9 }
 0x172   :  { %v551_v54 = vpop.permute.xlu1 %550 }
 0x173   :  { %v552_v39 = vsel %vm68_vm0, %v549_v2, %v551_v54  ;;  %v553_v55 = vsel %vm68_vm0, %v551_v54, %v549_v2  ;;  %v710_v54 = vrot.slane %v1471_v30, %v1355_v49 }
 0x174   :  { %v554_v31 = vsel %vm48_vm2, %v552_v39, %v547_v36  ;;  %v555_v34 = vsel %vm49_vm3, %v553_v55, %v546_v48  ;;  %v714_v48 = vrot.slane %v1471_v30, %v1391_v40 }
 0x175   :  { %v556_v44 = vsel %vm50_vm4, %v1471_v30, %v554_v31  ;;  %v557_v45 = vsel %vm51_vm5, %v1487_v13, %v555_v34 }
 0x176   :  { %v582_v56 = vrot.slane %v556_v44, %v1355_v49  ;;  %v586_v42 = vrot.slane %v557_v45, %v1355_v49  ;;  %v598_v46 = vrot.slane %v556_v44, %v1358_v50  ;;  %v602_v57 = vrot.slane %v557_v45, %v1358_v50  ;;  %v561_v58 = vpop.permute.xlu1 %560 }
 0x177   :  { %v614_v60 = vrot.slane %v556_v44, %v1371_v59  ;;  %v618_v0 = vrot.slane %v557_v45, %v1371_v59  ;;  %v630_v33 = vrot.slane %v556_v44, %v1376_v5  ;;  %v634_v61 = vrot.slane %v557_v45, %v1376_v5 }
 0x178   :  { %v587_v53 = vmul.f32 %v582_v56, %v577_v19  ;;  %v588_v43 = vmul.f32 %v586_v42, %v577_v19  ;;  %v603_v63 = vmul.f32 %v598_v46, %v593_v23  ;;  %v604_v3 = vmul.f32 %v602_v57, %v593_v23 }
 0x179   :  { %v619_v1 = vmul.f32 %v614_v60, %v609_v27  ;;  %v620_v4 = vmul.f32 %v618_v0, %v609_v27  ;;  %v635_v15 = vmul.f32 %v630_v33, %v625_v20  ;;  %v636_v52 = vmul.f32 %v634_v61, %v625_v20 }
 0x17a   :  { %v605_v8 = vadd.f32 %v603_v63, %v587_v53  ;;  %v606_v51 = vadd.f32 %v604_v3, %v588_v43  ;;  %v567_v11 = vpop.permute.xlu1 %566  ;;  %v1570_v13 = vsel %vm79_vm6, %v559_v22, %v561_v58  ;;  %v563_v12 = vsel %vm79_vm6, %v561_v58, %v559_v22 }
 0x17b   :  { %v568_v14 = vsel %vm86_vm7, %v565_v6, %v567_v11  ;;  %v569_v16 = vsel %vm86_vm7, %v567_v11, %v565_v6  ;;  %v720_v46 = vrot.slane %v710_v54, %v1355_v49  ;;  %v724_v57 = vrot.slane %v714_v48, %v1355_v49 }
 0x17c   :  { %v621_v17 = vadd.f32 %v619_v1, %v605_v8  ;;  %v622_v18 = vadd.f32 %v620_v4, %v606_v51  ;;  %v570_v19 = vsel %vm48_vm2, %v568_v14, %v563_v12  ;;  %v571_v20 = vsel %vm49_vm3, %v569_v16, %v1570_v13  ;;  %v731_v4 = vpop.permute.xlu0 %730 }
 0x17d   :  { %v646_v23 = vrot.slane %v570_v19, %v1355_v49  ;;  %v650_v25 = vrot.slane %v571_v20, %v1355_v49  ;;  %v662_v28 = vrot.slane %v570_v19, %v1358_v50  ;;  %v666_v32 = vrot.slane %v571_v20, %v1358_v50 }
 0x17e   :  { %v637_v26 = vadd.f32 %v635_v15, %v621_v17  ;;  %v638_v27 = vadd.f32 %v636_v52, %v622_v18  ;;  %v678_v35 = vrot.slane %v570_v19, %v1371_v59  ;;  %v682_v2 = vrot.slane %v571_v20, %v1371_v59 }
 0x17f   :  { %v651_v9 = vmul.f32 %v646_v23, %v641_v21  ;;  %v652_v22 = vmul.f32 %v650_v25, %v641_v21  ;;  %v667_v36 = vmul.f32 %v662_v28, %v657_v29  ;;  %v668_v39 = vmul.f32 %v666_v32, %v657_v29 }
 0x180   :  { %v694_v34 = vrot.slane %v570_v19, %v1376_v5  ;;  %v698_v44 = vrot.slane %v571_v20, %v1376_v5  ;;  %v683_v45 = vmul.f32 %v678_v35, %v673_v10  ;;  %v684_v21 = vmul.f32 %v682_v2, %v673_v10  ;;  %v809_v48 = vpop.permute.xlu0 %808 }
 0x181   :  { %v653_v55 = vadd.f32 %v651_v9, %v637_v26  ;;  %v654_v31 = vadd.f32 %v652_v22, %v638_v27  ;;  %v736_v58 = vrot.slane %v1471_v30, %v1358_v50  ;;  %v740_v29 = vrot.slane %v1471_v30, %v1381_v7 }
 0x182   :  { %v699_v33 = vmul.f32 %v694_v34, %v1534_v24  ;;  %v700_v61 = vmul.f32 %v698_v44, %v1534_v24  ;;  %v762_v10 = vrot.slane %v1471_v30, %v1371_v59  ;;  %v766_v53 = vrot.slane %v1471_v30, %v1394_v41 }
 0x183   :  { %v669_v56 = vadd.f32 %v667_v36, %v653_v55  ;;  %v670_v42 = vadd.f32 %v668_v39, %v654_v31  ;;  %v725_v43 = vmul.f32 %v720_v46, %v1540_v62  ;;  %v726_v63 = vmul.f32 %v724_v57, %v1540_v62 }
 0x184   :  { %v746_v51 = vrot.slane %v736_v58, %v1358_v50  ;;  %v750_v15 = vrot.slane %v740_v29, %v1358_v50  ;;  %v772_v24 = vrot.slane %v762_v10, %v1371_v59  ;;  %v776_v52 = vrot.slane %v766_v53, %v1371_v59 }
 0x185   :  { %v685_v60 = vadd.f32 %v683_v45, %v669_v56  ;;  %v686_v0 = vadd.f32 %v684_v21, %v670_v42  ;;  %v788_v19 = vrot.slane %v1471_v30, %v1376_v5  ;;  %v792_v62 = vrot.slane %v1471_v30, %v1428_v47  ;;  %v857_v42 = vpop.permute.xlu0 %856 }
 0x186   :  { %v751_v11 = vmul.f32 %v746_v51, %v731_v4  ;;  %v752_v17 = vmul.f32 %v750_v15, %v731_v4  ;;  %v572_v32 = vsel %vm52_vm8, %v563_v12, %v568_v14  ;;  %v573_v9 = vsel %vm53_vm9, %v1570_v13, %v569_v16 }
 0x187   :  { %v701_v3 = vadd.f32 %v699_v33, %v685_v60  ;;  %v702_v1 = vadd.f32 %v700_v61, %v686_v0  ;;  %v798_v27 = vrot.slane %v788_v19, %v1376_v5  ;;  %v802_v28 = vrot.slane %v792_v62, %v1376_v5 }
 0x188   :  { %v814_v36 = vrot.slane %v572_v32, %v1355_v49  ;;  %v818_v39 = vrot.slane %v573_v9, %v1355_v49  ;;  %v830_v37 = vrot.slane %v572_v32, %v1358_v50  ;;  %v834_v12 = vrot.slane %v573_v9, %v1358_v50 }
 0x189   :  { %v727_v6 = vadd.f32 %v725_v43, %v701_v3  ;;  %v728_v8 = vadd.f32 %v726_v63, %v702_v1  ;;  %v846_v21 = vrot.slane %v572_v32, %v1371_v59  ;;  %v850_v56 = vrot.slane %v573_v9, %v1371_v59 }
 0x18a   :  { %v819_v34 = vmul.f32 %v814_v36, %v809_v48  ;;  %v820_v44 = vmul.f32 %v818_v39, %v809_v48  ;;  %v862_v46 = vrot.slane %v572_v32, %v1376_v5  ;;  %v866_v57 = vrot.slane %v573_v9, %v1376_v5 }
 0x18b   :  { %v757_v18 = vpop.permute.xlu1 %756  ;;  %v753_v20 = vadd.f32 %v751_v11, %v727_v6  ;;  %v754_v23 = vadd.f32 %v752_v17, %v728_v8 }
 0x18c   :  { %v777_v25 = vmul.f32 %v772_v24, %v757_v18  ;;  %v778_v26 = vmul.f32 %v776_v52, %v757_v18  ;;  %v867_v61 = vmul.f32 %v862_v46, %v857_v42  ;;  %v868_v10 = vmul.f32 %v866_v57, %v857_v42  ;;  %v897_v18 = vpop.permute.xlu0 %896 }
 0x18e   :  { %v779_v35 = vadd.f32 %v777_v25, %v753_v20  ;;  %v780_v2 = vadd.f32 %v778_v26, %v754_v23 }
 0x190   :  { %v783_v22 = vpop.permute.xlu1 %782 }
 0x191   :  { %v803_v54 = vmul.f32 %v798_v27, %v783_v22  ;;  %v804_v30 = vmul.f32 %v802_v28, %v783_v22 }
 0x193   :  { %v805_v55 = vadd.f32 %v803_v54, %v779_v35  ;;  %v806_v31 = vadd.f32 %v804_v30, %v780_v2 }
 0x195   :  { %v825_v38 = vpop.permute.xlu1 %824  ;;  %v821_v13 = vadd.f32 %v819_v34, %v805_v55  ;;  %v822_v14 = vadd.f32 %v820_v44, %v806_v31  ;;  %v945_v31 = vpop.permute.xlu0 %944 }
 0x196   :  { %v835_v16 = vmul.f32 %v830_v37, %v825_v38  ;;  %v836_v45 = vmul.f32 %v834_v12, %v825_v38 }
 0x198   :  { %v837_v29 = vadd.f32 %v835_v16, %v821_v13  ;;  %v838_v60 = vadd.f32 %v836_v45, %v822_v14 }
 0x199   :  { %v993_v42 = vpop.permute.xlu0 %992 }
 0x19a   :  { %v841_v58 = vpop.permute.xlu1 %840 }
 0x19b   :  { %v851_v0 = vmul.f32 %v846_v21, %v841_v58  ;;  %v852_v33 = vmul.f32 %v850_v56, %v841_v58 }
 0x19d   :  { %v853_v53 = vadd.f32 %v851_v0, %v837_v29  ;;  %v854_v43 = vadd.f32 %v852_v33, %v838_v60 }
 0x19f   :  { %v869_v63 = vadd.f32 %v867_v61, %v853_v53  ;;  %v870_v3 = vadd.f32 %v868_v10, %v854_v43  ;;  %v873_v1 = vpop.permute.xlu1 %872 }
 0x1a1   :  { %v875_v4 = vadd.f32 %v873_v1, %v869_v63  ;;  %v876_v6 = vadd.f32 %v873_v1, %v870_v3 }
 0x1a3   :  { %v877_v8 = vmax.f32 %v875_v4, 0.0  ;;  %v878_v51 = vmax.f32 %v876_v6, 0.0  ;;  %v1166_v4 = vld [vmem:[%s1662_s1] sm:$0xff] }
 0x1a4   :  { %v881_v15 = vpop.permute.xlu1 %880 }
 0x1a5   :  { %v886_v24 = vrot.slane %v877_v8, %v1355_v49  ;;  %v890_v52 = vrot.slane %v878_v51, %v1355_v49  ;;  %v902_v11 = vrot.slane %v877_v8, %v1358_v50  ;;  %v906_v17 = vrot.slane %v878_v51, %v1358_v50 }
 0x1a6   :  { %v918_v25 = vrot.slane %v877_v8, %v1371_v59  ;;  %v922_v26 = vrot.slane %v878_v51, %v1371_v59  ;;  %v934_v49 = vrot.slane %v877_v8, %v1376_v5  ;;  %v938_v35 = vrot.slane %v878_v51, %v1376_v5 }
 0x1a7   :  { %v891_v19 = vmul.f32 %v886_v24, %v881_v15  ;;  %v892_v62 = vmul.f32 %v890_v52, %v881_v15  ;;  %v907_v20 = vmul.f32 %v902_v11, %v897_v18  ;;  %v908_v23 = vmul.f32 %v906_v17, %v897_v18 }
 0x1a8   :  { %v950_v50 = vrot.slane %v877_v8, %v1391_v40  ;;  %v954_v2 = vrot.slane %v878_v51, %v1391_v40  ;;  %v966_v37 = vrot.slane %v877_v8, %v1381_v7  ;;  %v970_v12 = vrot.slane %v878_v51, %v1381_v7 }
 0x1a9   :  { %v913_v27 = vpop.permute.xlu1 %912  ;;  %v909_v28 = vadd.f32 %v907_v20, %v891_v19  ;;  %v910_v32 = vadd.f32 %v908_v23, %v892_v62  ;;  %v998_v40 = vrot.slane %v877_v8, %v1428_v47  ;;  %v1002_v45 = vrot.slane %v878_v51, %v1428_v47 }
 0x1aa   :  { %v923_v9 = vmul.f32 %v918_v25, %v913_v27  ;;  %v924_v22 = vmul.f32 %v922_v26, %v913_v27  ;;  %v955_v34 = vmul.f32 %v950_v50, %v945_v31  ;;  %v956_v44 = vmul.f32 %v954_v2, %v945_v31 }
 0x1ab   :  { %v982_v21 = vrot.slane %v877_v8, %v1394_v41  ;;  %v986_v56 = vrot.slane %v878_v51, %v1394_v41  ;;  %v1003_v7 = vmul.f32 %v998_v40, %v993_v42  ;;  %v1004_v0 = vmul.f32 %v1002_v45, %v993_v42 }
 0x1ac   :  { %v925_v30 = vadd.f32 %v923_v9, %v909_v28  ;;  %v926_v48 = vadd.f32 %v924_v22, %v910_v32 }
 0x1ae   :  { %v929_v54 = vpop.permute.xlu1 %928 }
 0x1af   :  { %v939_v36 = vmul.f32 %v934_v49, %v929_v54  ;;  %v940_v39 = vmul.f32 %v938_v35, %v929_v54 }
 0x1b1   :  { %v941_v55 = vadd.f32 %v939_v36, %v925_v30  ;;  %v942_v59 = vadd.f32 %v940_v39, %v926_v48 }
 0x1b3   :  { %v961_v38 = vpop.permute.xlu1 %960  ;;  %v957_v5 = vadd.f32 %v955_v34, %v941_v55  ;;  %v958_v13 = vadd.f32 %v956_v44, %v942_v59 }
 0x1b4   :  { %v971_v14 = vmul.f32 %v966_v37, %v961_v38  ;;  %v972_v16 = vmul.f32 %v970_v12, %v961_v38 }
 0x1b6   :  { %v973_v57 = vadd.f32 %v971_v14, %v957_v5  ;;  %v974_v58 = vadd.f32 %v972_v16, %v958_v13 }
 0x1b8   :  { %v977_v46 = vpop.permute.xlu1 %976 }
 0x1b9   :  { %v987_v29 = vmul.f32 %v982_v21, %v977_v46  ;;  %v988_v60 = vmul.f32 %v986_v56, %v977_v46 }
 0x1bb   :  { %v989_v33 = vadd.f32 %v987_v29, %v973_v57  ;;  %v990_v61 = vadd.f32 %v988_v60, %v974_v58 }
 0x1bd   :  { %v1005_v10 = vadd.f32 %v1003_v7, %v989_v33  ;;  %v1006_v53 = vadd.f32 %v1004_v0, %v990_v61  ;;  %v1009_v43 = vpop.permute.xlu1 %1008 }
 0x1bf   :  { %v1011_v63 = vadd.f32 %v1009_v43, %v1005_v10  ;;  %v1012_v3 = vadd.f32 %v1009_v43, %v1006_v53 }
 0x1c1   :  { %1162 = vtanh.f32 %v1011_v63  ;;  %v1036_v62 = vpop.xlane.xlu0 %1035 }
 0x1c2   :  { %1164 = vtanh.f32 %v1012_v3 }
 0x1cb   :  { %v1163_v47 = vpop.eup %1162 }
 0x1cc   :  { %v1165_v1 = vpop.eup %1164 }
 0x1cd   :  { %v1017_v41 = vcombine.low %v1163_v47, %v1165_v1 }
 0x1cf   :  { %v1019_v6 = vsub.f32 %v1166_v4, %v1017_v41 }
 0x1d1   :  { %v1038_v8 = vcombine.high %v1019_v6, %v1019_v6  ;;  %1021 = vst [vmem:[%s1665_s4] sm:$0xff] %v1019_v6  ;;  %v1045_v51 = vand.u32 2147483647, %v1019_v6  ;;  %v1040_v15 = vsel %vm1022_vm10, %v1019_v6, 0.0 }
 0x1d3   :  { %v1041_v24 = vsel %vm1022_vm10, %v1038_v8, 0.0  ;;  %v1047_v52 = vcombine.high %v1045_v51, %v1045_v51  ;;  %v1049_v17 = vsel %vm1022_vm10, %v1045_v51, 0.0 }
 0x1d4   :  { %v1042_v11 = vadd.f32 %v1041_v24, %v1040_v15 }
 0x1d5   :  { %v1050_v18 = vsel %vm1022_vm10, %v1047_v52, 0.0 }
 0x1d6   :  { %1043 = vadd.xlane.f32.xlu0 %v1042_v11  ;;  %v1051_v19 = vadd.f32 %v1050_v18, %v1049_v17 }
 0x1d8   :  { %1052 = vadd.xlane.f32.xlu1 %v1051_v19 }
 0x1ef   :  { %v1027_v20 = vpop.xlane.xlu1 %1026 }
 0x1f0   :  { %v1055_v23 = vsel %vm1054_vm11, %v1027_v20, %v1036_v62 }
 0x263   :  { %v1044_v25 = vpop.xlane.xlu0 %1043 }
 0x264   :  { %v1057_v26 = vsel %vm1056_vm12, %v1055_v23, %v1044_v25 }
 0x265   :  { %v1053_v27 = vpop.xlane.xlu1 %1052 }
 0x266   :  { %v1059_v28 = vsel %vm1058_vm13, %v1057_v26, %v1053_v27 }
 0x267   :  { %1061 = vst.msk [vmem:[%s1666_s5] sm:$0xf] %vm1060_vm14, %v1059_v28 }

// kernel: level_dawn_forward.4
= control target key start
LH: loop header
LB: loop body
LE: loop exit
PB: predicated region body
PF: predicated region fallthrough
CT: control target
= control target key end

     0   :  { %s1306_s18 = smov 0   ;;  %s1308_s19 = smov 0   ;;  %s1600_s0 = inlined_call_operand.vmem [shape: f32[2,4,128], index: 0, kind: input, shape index: {}]   ;;  %s1601_s1 = inlined_call_operand.vmem [shape: f32[2,4,128], index: 1, kind: input, shape index: {}]   ;;  %s1602_s2 = inlined_call_operand.vmem [shape: f32[2,2,8,26], index: 2, kind: input, shape index: {}]   ;;  %s1603_s3 = inlined_call_operand.vmem [shape: f32[2,4,128], index: 3, kind: output, shape index: {0}]   ;;  %s1604_s4 = inlined_call_operand.vmem [shape: f32[2,4,128], index: 4, kind: output, shape index: {1}]   ;;  %s1605_s5 = inlined_call_operand.vmem [shape: f32[2,1,4,4], index: 5, kind: output, shape index: {2}]  }
   0x1   :  { %s1310_s20 = smov 0  }
   0x2 LB: > { %s28_s21 = sadd.s32 1, %s1240_s19  ;;  %p1101_p0 = scmp.ge.s32.totalorder %s1244_s20, 1  ;;  %s1244_s20 = sphi %s1310_s20, %s16_s20   ;;  %s1240_s19 = sphi %s1308_s19, %s1607_s19   ;;  %s1236_s18 = sphi %s1306_s18, %s1606_s18  }
   0x3   : > { %p30_p1 = scmp.ge.s32.totalorder %s28_s21, 2  ;;  %p238_p2 = scmp.lt.s32.totalorder %s1244_s20, 3 }
   0x5   : > { %s1609_s21 = smov (%p30_p1, %s28_s21), 0  ;;  %p239_p3 = pnand %p1101_p0, %p238_p2 }
   0x6   : > { %p296_p4 = scmp.lt.s32.totalorder (!%p239_p3), %s1236_s18, 1  ;;  %v1246_v0 = vmov (!%p239_p3), 2   ;;  %v1247_v1 = vmov (!%p239_p3), 0   ;;  %v1248_v4 = vmov (!%p239_p3), 1   ;;  %s1249_s30 = smov (!%p239_p3), 2   ;;  %v1250_v5 = vmov (!%p239_p3), 4  }
   0x7   : > { %242 = sbr.rel (%p239_p3) target bundleno = 603 (0x25b), region = 32  ;;  %1168 = vset.pattern.permute.xlu1 (!%p239_p3), %v1246_v0  ;;  %1166 = vset.pattern.permute.xlu0 (!%p239_p3), %v1247_v1  ;;  %s1251_s6 = smov (!%p239_p3), 126   ;;  %v1252_v6 = vmov (!%p239_p3), 3   ;;  %v1254_v7 = vmov (!%p239_p3), 6   ;;  %v1255_v8 = vmov (!%p239_p3), 5   ;;  %v1257_v9 = vmov (!%p239_p3), 9  }
   0x8   : > { %s1253_s7 = smov (!%p239_p3), 1   ;;  %s1256_s8 = smov (!%p239_p3), 127   ;;  %v1258_v10 = vmov (!%p239_p3), 7   ;;  %v1259_v11 = vmov (!%p239_p3), 12   ;;  %v1260_v12 = vmov (!%p239_p3), 8   ;;  %v1261_v13 = vmov (!%p239_p3), 15  }
   0x9   : > { %v1262_v14 = vmov (!%p239_p3), 10   ;;  %v1263_v15 = vmov (!%p239_p3), 18   ;;  %v1264_v16 = vmov (!%p239_p3), 11   ;;  %v1265_v17 = vmov (!%p239_p3), 21  }
   0xa   : > { %v1266_v18 = vmov (!%p239_p3), 13   ;;  %v1267_v19 = vmov (!%p239_p3), 24   ;;  %v1268_v20 = vmov (!%p239_p3), 14   ;;  %v1269_v21 = vmov (!%p239_p3), 16  }
   0xb   : > { %v1270_v22 = vmov (!%p239_p3), 17   ;;  %v1271_v23 = vmov (!%p239_p3), 19   ;;  %v1272_v25 = vmov (!%p239_p3), 20   ;;  %v1273_v26 = vmov (!%p239_p3), 22  }
   0xc   : > { %v1274_v27 = vmov (!%p239_p3), 23   ;;  %v1275_v28 = vmov (!%p239_p3), 25   ;;  %v340_v29 = vlaneseq (!%p239_p3)  ;;  %vm891_vm3 = vcmask (!%p239_p3), 1043456  }
   0xd   : > { %vm906_vm4 = vcmask (!%p239_p3), 7168   ;;  %vm908_vm5 = vcmask (!%p239_p3), 15360   ;;  %vm910_vm6 = vcmask (!%p239_p3), 23552   ;;  %vm912_vm7 = vcmask (!%p239_p3), 27648  }
   0xe   : > { %s1611_s18 = smov (!%p296_p4, %s1236_s18), 1  ;;  %v341_v30 = vand.u32 127, %v340_v29  ;;  %v1417_v34 = vshrl.u32 %v340_v29, 7 }
   0xf   : > { %s1111_s22 = sshll.u32 %s1611_s18, 4  ;;  %s1326_s23 = sshll.u32 %s1611_s18, 2 }
  0x10   : > { %s1331_s26 = scalar_lea.vmem %s1602_s2, %s1111_s22  ;;  %s309_s29 = scalar_lea.vmem %s1601_s1, %s1326_s23  ;;  %v1415_v33 = vand.u32 7, %v341_v30  ;;  %v1422_v36 = vsub.s32 0, %v1417_v34  ;;  %v1425_v37 = vsub.s32 1, %v1417_v34  ;;  %v1433_v42 = vsub.s32 2, %v1417_v34 }
  0x11   : > { %v1338_v2 = vld [vmem:[%s1331_s26] sm:$0xff]  ;;  %v1390_v24 = vld [vmem:[%s1331_s26 + $0x8] sm:$0xff]  ;;  %v1438_v49 = vsub.s32 3, %v1417_v34  ;;  %s302_s11 = scalar_lea.vmem %s1600_s0, %s1326_s23  ;;  %s321_s14 = scalar_lea.vmem %s1603_s3, %s1326_s23 }
  0x12   : > { %391 = vperm.xlu1 %1168, %v1338_v2   ;;  %371 = vperm.xlu0 %1166, %v1338_v2   ;;  %v1342_v3 = vld [vmem:[%s309_s29] sm:$0xf]  ;;  %vm354_vm0 = vcmp.eq.s32.totalorder %v1415_v33, 0  ;;  %vm355_vm1 = vcmp.eq.s32.totalorder %v1415_v33, 1  ;;  %vm356_vm2 = vcmp.eq.s32.totalorder %v1415_v33, 7  ;;  %s328_s17 = scalar_lea.vmem %s1604_s4, %s1326_s23  ;;  %s335_s24 = scalar_lea.vmem %s1605_s5, %s1326_s23 }
  0x16   : > { %1167 = vset.pattern.permute.xlu0 %v1248_v4  ;;  %357 = vrot.lane.b32.xlu1 %v1342_v3, %s1249_s30 }
  0x17   : > { %381 = vperm.xlu0 %1167, %v1338_v2   ;;  %1170 = vset.pattern.permute.xlu1 %v1250_v5 }
  0x1a   : > { %359 = vrot.lane.b32.xlu1 %v1342_v3, %s1251_s6 }
  0x1b   : > { %1169 = vset.pattern.permute.xlu0 %v1252_v6 }
  0x1c   : > { %401 = vperm.xlu0 %1169, %v1338_v2  }
  0x1e   : > { %411 = vperm.xlu1 %1170, %v1338_v2  }
  0x20   : > { %363 = vrot.lane.b32.xlu0 %v1342_v3, %s1253_s7 }
  0x21   : > { %1172 = vset.pattern.permute.xlu0 %v1254_v7 }
  0x22   : > { %1171 = vset.pattern.permute.xlu1 %v1255_v8 }
  0x23   : > { %421 = vperm.xlu1 %1171, %v1338_v2  }
  0x24   : > { %431 = vperm.xlu0 %1172, %v1338_v2  }
  0x27   : > { %365 = vrot.lane.b32.xlu1 %v1342_v3, %s1256_s8 }
  0x28   : > { %1175 = vset.pattern.permute.xlu0 %v1257_v9  ;;  %1173 = vset.pattern.permute.xlu1 %v1258_v10 }
  0x29   : > { %461 = vperm.xlu0 %1175, %v1338_v2  }
  0x2b   : > { %441 = vperm.xlu1 %1173, %v1338_v2  }
  0x2d   : > { %1178 = vset.pattern.permute.xlu0 %v1259_v11 }
  0x2e   : > { %491 = vperm.xlu0 %1178, %v1338_v2  }
  0x2f   : > { %1174 = vset.pattern.permute.xlu1 %v1260_v12 }
  0x30   : > { %451 = vperm.xlu1 %1174, %v1338_v2  }
  0x32   : > { %1181 = vset.pattern.permute.xlu0 %v1261_v13 }
  0x33   : > { %521 = vperm.xlu0 %1181, %v1338_v2  }
  0x34   : > { %1176 = vset.pattern.permute.xlu1 %v1262_v14 }
  0x35   : > { %471 = vperm.xlu1 %1176, %v1338_v2  }
  0x37   : > { %1184 = vset.pattern.permute.xlu0 %v1263_v15 }
  0x38   : > { %547 = vperm.xlu0 %1184, %v1338_v2  }
  0x39   : > { %1177 = vset.pattern.permute.xlu1 %v1264_v16 }
  0x3a   : > { %481 = vperm.xlu1 %1177, %v1338_v2  }
  0x3c   : > { %1187 = vset.pattern.permute.xlu0 %v1265_v17 }
  0x3d   : > { %577 = vperm.xlu0 %1187, %v1338_v2  }
  0x3e   : > { %1179 = vset.pattern.permute.xlu1 %v1266_v18 }
  0x3f   : > { %501 = vperm.xlu1 %1179, %v1338_v2  }
  0x41   : > { %1190 = vset.pattern.permute.xlu0 %v1267_v19 }
  0x42   : > { %607 = vperm.xlu0 %1190, %v1338_v2  }
  0x43   : > { %1180 = vset.pattern.permute.xlu1 %v1268_v20 }
  0x44   : > { %511 = vperm.xlu1 %1180, %v1338_v2  }
  0x46   : > { %1193 = vset.pattern.permute.xlu0 %v1248_v4 }
  0x47   : > { %647 = vperm.xlu0 %1193, %v1390_v24  }
  0x48   : > { %1182 = vset.pattern.permute.xlu1 %v1269_v21 }
  0x49   : > { %531 = vperm.xlu1 %1182, %v1338_v2  }
  0x4b   : > { %1196 = vset.pattern.permute.xlu0 %v1250_v5 }
  0x4c   : > { %677 = vperm.xlu0 %1196, %v1390_v24  }
  0x4d   : > { %1183 = vset.pattern.permute.xlu1 %v1270_v22 }
  0x4e   : > { %537 = vperm.xlu1 %1183, %v1338_v2  }
  0x50   : > { %1199 = vset.pattern.permute.xlu0 %v1258_v10 }
  0x52   : > { %1185 = vset.pattern.permute.xlu1 %v1271_v23 }
  0x53   : > { %557 = vperm.xlu1 %1185, %v1338_v2  }
  0x57   : > { %1186 = vset.pattern.permute.xlu1 %v1272_v25 }
  0x58   : > { %567 = vperm.xlu1 %1186, %v1338_v2  }
  0x5c   : > { %1188 = vset.pattern.permute.xlu1 %v1273_v26 }
  0x5d   : > { %587 = vperm.xlu1 %1188, %v1338_v2  }
  0x61   : > { %1189 = vset.pattern.permute.xlu1 %v1274_v27 }
  0x62   : > { %597 = vperm.xlu1 %1189, %v1338_v2  }
  0x66   : > { %1191 = vset.pattern.permute.xlu1 %v1275_v28 }
  0x67   : > { %617 = vperm.xlu1 %1191, %v1338_v2  }
  0x6b   : > { %1192 = vset.pattern.permute.xlu1 %v1247_v1 }
  0x6c   : > { %637 = vperm.xlu1 %1192, %v1390_v24  }
  0x70   : > { %1194 = vset.pattern.permute.xlu1 %v1246_v0 }
  0x71   : > { %657 = vperm.xlu1 %1194, %v1390_v24  }
  0x75   : > { %1195 = vset.pattern.permute.xlu1 %v1252_v6 }
  0x76   : > { %667 = vperm.xlu1 %1195, %v1390_v24  }
  0x7a   : > { %1197 = vset.pattern.permute.xlu1 %v1255_v8 }
  0x7b   : > { %687 = vperm.xlu1 %1197, %v1390_v24  }
  0x7f   : > { %1198 = vset.pattern.permute.xlu1 %v1254_v7  ;;  %v467_v7 = vrot.slane %v1342_v3, %v1425_v37 }
  0x80   : > { %697 = vperm.xlu1 %1198, %v1390_v24  }
  0x84   : > { %1200 = vset.pattern.permute.xlu1 %v1260_v12  ;;  %v457_v12 = vrot.slane %v1342_v3, %v1422_v36 }
  0x91   : > { %v392_v31 = vpop.permute.xlu1 %391  ;;  %v372_v32 = vpop.permute.xlu0 %371 }
  0x95   : > { %v358_v35 = vpop.permute.xlu1 %357 }
  0x96   : > { %v382_v38 = vpop.permute.xlu0 %381 }
  0x99   : > { %v360_v39 = vpop.permute.xlu1 %359 }
  0x9a   : > { %v361_v40 = vsel %vm354_vm0, %v360_v39, %v358_v35 }
  0x9b   : > { %v362_v41 = vsel %vm355_vm1, %v1342_v3, %v361_v40  ;;  %v402_v48 = vpop.permute.xlu0 %401  ;;  %v477_v40 = vrot.slane %v1342_v3, %v1433_v42 }
  0x9c   : > { %v377_v43 = vrot.slane %v362_v41, %v1422_v36  ;;  %v387_v44 = vrot.slane %v362_v41, %v1425_v37  ;;  %v397_v50 = vrot.slane %v362_v41, %v1433_v42  ;;  %v407_v54 = vrot.slane %v362_v41, %v1438_v49 }
  0x9d   : > { %v412_v45 = vpop.permute.xlu1 %411 }
  0x9e   : > { %v378_v46 = vmul.f32 %v377_v43, %v372_v32  ;;  %v388_v47 = vmul.f32 %v387_v44, %v382_v38  ;;  %v398_v53 = vmul.f32 %v397_v50, %v392_v31  ;;  %v408_v59 = vmul.f32 %v407_v54, %v402_v48 }
  0x9f   : > { %v364_v55 = vpop.permute.xlu0 %363 }
  0xa0   : > { %v389_v51 = vadd.f32 %v388_v47, %v378_v46  ;;  %v487_v46 = vrot.slane %v1342_v3, %v1438_v49 }
  0xa2   : > { %v422_v52 = vpop.permute.xlu1 %421  ;;  %v399_v56 = vadd.f32 %v398_v53, %v389_v51 }
  0xa3   : > { %v432_v2 = vpop.permute.xlu0 %431 }
  0xa4   : > { %v409_v62 = vadd.f32 %v408_v59, %v399_v56 }
  0xa6   : > { %v366_v57 = vpop.permute.xlu1 %365 }
  0xa7   : > { %v367_v58 = vsel %vm354_vm0, %v366_v57, %v364_v55  ;;  %v368_v47 = vsel %vm356_vm2, %v364_v55, %v366_v57 }
  0xa8   : > { %v417_v60 = vrot.slane %v367_v58, %v1422_v36  ;;  %v427_v61 = vrot.slane %v367_v58, %v1425_v37  ;;  %v437_v0 = vrot.slane %v367_v58, %v1433_v42  ;;  %v447_v6 = vrot.slane %v367_v58, %v1438_v49  ;;  %v462_v32 = vpop.permute.xlu0 %461 }
  0xa9   : > { %v468_v35 = vmul.f32 %v467_v7, %v462_v32  ;;  %v497_v53 = vrot.slane %v368_v47, %v1422_v36  ;;  %v507_v58 = vrot.slane %v368_v47, %v1425_v37 }
  0xaa   : > { %v418_v63 = vmul.f32 %v417_v60, %v412_v45  ;;  %v442_v1 = vpop.permute.xlu1 %441  ;;  %v428_v4 = vmul.f32 %v427_v61, %v422_v52  ;;  %v438_v10 = vmul.f32 %v437_v0, %v432_v2 }
  0xab   : > { %v448_v31 = vmul.f32 %v447_v6, %v442_v1  ;;  %v527_v1 = vrot.slane %v368_v47, %v1438_v49 }
  0xac   : > { %v419_v5 = vadd.f32 %v418_v63, %v409_v62  ;;  %v517_v62 = vrot.slane %v368_v47, %v1433_v42 }
  0xad   : > { %v492_v52 = vpop.permute.xlu0 %491 }
  0xae   : > { %v429_v8 = vadd.f32 %v428_v4, %v419_v5  ;;  %v498_v56 = vmul.f32 %v497_v53, %v492_v52  ;;  %v612_v53 = vsub.s32 7, %v1417_v34 }
  0xaf   : > { %v452_v29 = vpop.permute.xlu1 %451 }
  0xb0   : > { %v439_v30 = vadd.f32 %v438_v10, %v429_v8  ;;  %v458_v39 = vmul.f32 %v457_v12, %v452_v29 }
  0xb2   : > { %v449_v38 = vadd.f32 %v448_v31, %v439_v30  ;;  %v522_v63 = vpop.permute.xlu0 %521 }
  0xb3   : > { %v528_v2 = vmul.f32 %v527_v1, %v522_v63 }
  0xb4   : > { %v459_v41 = vadd.f32 %v458_v39, %v449_v38  ;;  %v472_v43 = vpop.permute.xlu1 %471  ;;  %v582_v39 = vsub.s32 4, %v1417_v34 }
  0xb5   : > { %v478_v45 = vmul.f32 %v477_v40, %v472_v43 }
  0xb6   : > { %v469_v44 = vadd.f32 %v468_v35, %v459_v41 }
  0xb7   : > { %v548_v30 = vpop.permute.xlu0 %547 }
  0xb8   : > { %v479_v50 = vadd.f32 %v478_v45, %v469_v44 }
  0xb9   : > { %v482_v48 = vpop.permute.xlu1 %481 }
  0xba   : > { %v488_v51 = vmul.f32 %v487_v46, %v482_v48  ;;  %v592_v48 = vsub.s32 5, %v1417_v34 }
  0xbc   : > { %v489_v54 = vadd.f32 %v488_v51, %v479_v50  ;;  %v578_v51 = vpop.permute.xlu0 %577 }
  0xbe   : > { %v502_v59 = vpop.permute.xlu1 %501  ;;  %v499_v60 = vadd.f32 %v498_v56, %v489_v54 }
  0xbf   : > { %v508_v61 = vmul.f32 %v507_v58, %v502_v59  ;;  %v602_v58 = vsub.s32 6, %v1417_v34 }
  0xc1   : > { %v509_v55 = vadd.f32 %v508_v61, %v499_v60  ;;  %v608_v63 = vpop.permute.xlu0 %607 }
  0xc3   : > { %v512_v0 = vpop.permute.xlu1 %511 }
  0xc4   : > { %v518_v57 = vmul.f32 %v517_v62, %v512_v0 }
  0xc6   : > { %v519_v4 = vadd.f32 %v518_v57, %v509_v55 }
  0xc8   : > { %v532_v5 = vpop.permute.xlu1 %531  ;;  %v529_v6 = vadd.f32 %v528_v2, %v519_v4 }
  0xca   : > { %v534_v7 = vadd.f32 %v532_v5, %v529_v6 }
  0xcc   : > { %v535_v8 = vmax.f32 %v534_v7, 0.0  ;;  %v336_v7 = vld [vmem:[%s302_s11] sm:$0xf] }
  0xcd   : > { %v538_v10 = vpop.permute.xlu1 %537 }
  0xce   : > { %v543_v12 = vrot.slane %v535_v8, %v1422_v36  ;;  %v553_v29 = vrot.slane %v535_v8, %v1425_v37  ;;  %v563_v38 = vrot.slane %v535_v8, %v1433_v42  ;;  %v573_v43 = vrot.slane %v535_v8, %v1438_v49 }
  0xcf   : > { %v583_v45 = vrot.slane %v535_v8, %v582_v39  ;;  %v593_v56 = vrot.slane %v535_v8, %v592_v48  ;;  %v613_v61 = vrot.slane %v535_v8, %v612_v53  ;;  %v603_v62 = vrot.slane %v535_v8, %v602_v58 }
  0xd0   : > { %v544_v31 = vmul.f32 %v543_v12, %v538_v10  ;;  %v554_v32 = vmul.f32 %v553_v29, %v548_v30 }
  0xd1   : > { %v584_v52 = vmul.f32 %v583_v45, %v578_v51  ;;  %v614_v57 = vmul.f32 %v613_v61, %v608_v63 }
  0xd2   : > { %v558_v35 = vpop.permute.xlu1 %557  ;;  %v555_v40 = vadd.f32 %v554_v32, %v544_v31 }
  0xd3   : > { %v564_v41 = vmul.f32 %v563_v38, %v558_v35 }
  0xd5   : > { %v565_v46 = vadd.f32 %v564_v41, %v555_v40 }
  0xd7   : > { %v568_v44 = vpop.permute.xlu1 %567 }
  0xd8   : > { %v574_v47 = vmul.f32 %v573_v43, %v568_v44 }
  0xda   : > { %v575_v50 = vadd.f32 %v574_v47, %v565_v46 }
  0xdc   : > { %v588_v54 = vpop.permute.xlu1 %587  ;;  %v585_v59 = vadd.f32 %v584_v52, %v575_v50 }
  0xdd   : > { %v594_v60 = vmul.f32 %v593_v56, %v588_v54 }
  0xdf   : > { %v595_v1 = vadd.f32 %v594_v60, %v585_v59 }
  0xe1   : > { %v598_v0 = vpop.permute.xlu1 %597 }
  0xe2   : > { %v604_v55 = vmul.f32 %v603_v62, %v598_v0 }
  0xe4   : > { %v605_v2 = vadd.f32 %v604_v55, %v595_v1 }
  0xe6   : > { %v618_v4 = vpop.permute.xlu1 %617  ;;  %v615_v5 = vadd.f32 %v614_v57, %v605_v2 }
  0xe8   : > { %v620_v6 = vadd.f32 %v618_v4, %v615_v5 }
  0xea   : > { %1218 = vtanh.f32 %v620_v6 }
  0xf4   : > { %v1219_v10 = vpop.eup %1218 }
  0xf5   : > { %v1487_v8 = vadd.f32 %v1219_v10, %v336_v7 }
  0xf7   : > { %889 = vst [vmem:[%s321_s14] sm:$0xf] %v1487_v8  ;;  %625 = vrot.lane.b32.xlu0 %v1487_v8, %s1251_s6  ;;  %623 = vrot.lane.b32.xlu1 %v1487_v8, %s1249_s30  ;;  %v723_v0 = vrot.slane %v1487_v8, %v1422_v36  ;;  %v733_v2 = vrot.slane %v1487_v8, %v1425_v37 }
  0xf8   : > { %v743_v7 = vrot.slane %v1487_v8, %v1433_v42 }
  0xfb   : > { %707 = vperm.xlu0 %1199, %v1390_v24   ;;  %717 = vperm.xlu1 %1200, %v1390_v24  }
  0xff   : > { %631 = vrot.lane.b32.xlu0 %v1487_v8, %s1256_s8  ;;  %1201 = vset.pattern.permute.xlu1 %v1257_v9  ;;  %v895_v9 = vmul.f32 %v1487_v8, %v1487_v8 }
 0x100   : > { %727 = vperm.xlu1 %1201, %v1390_v24   ;;  %1202 = vset.pattern.permute.xlu0 %v1262_v14 }
 0x103   : > { %737 = vperm.xlu0 %1202, %v1390_v24  }
 0x104   : > { %629 = vrot.lane.b32.xlu1 %v1487_v8, %s1253_s7 }
 0x105   : > { %1203 = vset.pattern.permute.xlu1 %v1264_v16 }
 0x107   : > { %1205 = vset.pattern.permute.xlu0 %v1266_v18 }
 0x108   : > { %767 = vperm.xlu0 %1205, %v1390_v24   ;;  %747 = vperm.xlu1 %1203, %v1390_v24  }
 0x10c   : > { %1208 = vset.pattern.permute.xlu0 %v1269_v21  ;;  %1204 = vset.pattern.permute.xlu1 %v1259_v11  ;;  %v896_v11 = vsel %vm891_vm3, %v895_v9, 0.0 }
 0x10d   : > { %797 = vperm.xlu0 %1208, %v1390_v24   ;;  %757 = vperm.xlu1 %1204, %v1390_v24  }
 0x111   : > { %1211 = vset.pattern.permute.xlu0 %v1271_v23  ;;  %1206 = vset.pattern.permute.xlu1 %v1268_v20 }
 0x112   : > { %823 = vperm.xlu0 %1211, %v1390_v24   ;;  %777 = vperm.xlu1 %1206, %v1390_v24  }
 0x116   : > { %1214 = vset.pattern.permute.xlu0 %v1273_v26  ;;  %1207 = vset.pattern.permute.xlu1 %v1261_v13  ;;  %v638_v13 = vpop.permute.xlu1 %637 }
 0x117   : > { %853 = vperm.xlu0 %1214, %v1390_v24   ;;  %787 = vperm.xlu1 %1207, %v1390_v24  }
 0x11a   : > { %v658_v14 = vpop.permute.xlu1 %657 }
 0x11b   : > { %1217 = vset.pattern.permute.xlu0 %v1275_v28  ;;  %1209 = vset.pattern.permute.xlu1 %v1270_v22 }
 0x11c   : > { %883 = vperm.xlu0 %1217, %v1390_v24   ;;  %803 = vperm.xlu1 %1209, %v1390_v24  }
 0x11e   : > { %v668_v16 = vpop.permute.xlu1 %667 }
 0x120   : > { %1210 = vset.pattern.permute.xlu1 %v1263_v15  ;;  %v892_v15 = vsel %vm891_vm3, %v1487_v8, 0.0 }
 0x121   : > { %813 = vperm.xlu1 %1210, %v1390_v24  }
 0x122   : > { %v688_v18 = vpop.permute.xlu1 %687 }
 0x125   : > { %1212 = vset.pattern.permute.xlu1 %v1272_v25 }
 0x126   : > { %833 = vperm.xlu1 %1212, %v1390_v24  }
 0x12a   : > { %1213 = vset.pattern.permute.xlu1 %v1265_v17  ;;  %v648_v17 = vpop.permute.xlu0 %647 }
 0x12b   : > { %843 = vperm.xlu1 %1213, %v1390_v24  }
 0x12e   : > { %v678_v20 = vpop.permute.xlu0 %677 }
 0x12f   : > { %1215 = vset.pattern.permute.xlu1 %v1274_v27 }
 0x130   : > { %863 = vperm.xlu1 %1215, %v1390_v24  }
 0x134   : > { %1216 = vset.pattern.permute.xlu1 %v1267_v19  ;;  %v698_v19 = vpop.permute.xlu1 %697 }
 0x135   : > { %873 = vperm.xlu1 %1216, %v1390_v24  }
 0x13b   : > { %897 = vadd.xlane.f32.xlu0 %v896_v11 }
 0x159   : > { %893 = vadd.xlane.f32.xlu1 %v892_v15  ;;  %v753_v15 = vrot.slane %v1487_v8, %v1438_v49 }
 0x169   : > { %v626_v21 = vpop.permute.xlu0 %625  ;;  %v624_v22 = vpop.permute.xlu1 %623 }
 0x16a   : > { %v627_v23 = vsel %vm354_vm0, %v626_v21, %v624_v22 }
 0x16b   : > { %v628_v24 = vsel %vm355_vm1, %v1487_v8, %v627_v23 }
 0x16c   : > { %v643_v25 = vrot.slane %v628_v24, %v1422_v36  ;;  %v653_v26 = vrot.slane %v628_v24, %v1425_v37  ;;  %v663_v29 = vrot.slane %v628_v24, %v1433_v42  ;;  %v673_v38 = vrot.slane %v628_v24, %v1438_v49 }
 0x16e   : > { %v644_v28 = vmul.f32 %v643_v25, %v638_v13  ;;  %v654_v12 = vmul.f32 %v653_v26, %v648_v17  ;;  %v664_v35 = vmul.f32 %v663_v29, %v658_v14  ;;  %v674_v45 = vmul.f32 %v673_v38, %v668_v16 }
 0x170   : > { %v655_v31 = vadd.f32 %v654_v12, %v644_v28 }
 0x172   : > { %v665_v40 = vadd.f32 %v664_v35, %v655_v31 }
 0x174   : > { %v675_v50 = vadd.f32 %v674_v45, %v665_v40 }
 0x17a   : > { %v718_v27 = vpop.permute.xlu1 %717  ;;  %v708_v30 = vpop.permute.xlu0 %707 }
 0x17b   : > { %v724_v57 = vmul.f32 %v723_v0, %v718_v27 }
 0x17e   : > { %v632_v41 = vpop.permute.xlu0 %631 }
 0x17f   : > { %v728_v32 = vpop.permute.xlu1 %727 }
 0x180   : > { %v734_v6 = vmul.f32 %v733_v2, %v728_v32 }
 0x182   : > { %v738_v5 = vpop.permute.xlu0 %737 }
 0x183   : > { %v630_v43 = vpop.permute.xlu1 %629  ;;  %v744_v13 = vmul.f32 %v743_v7, %v738_v5 }
 0x184   : > { %v633_v44 = vsel %vm354_vm0, %v632_v41, %v630_v43  ;;  %v634_v11 = vsel %vm356_vm2, %v630_v43, %v632_v41 }
 0x185   : > { %v683_v46 = vrot.slane %v633_v44, %v1422_v36  ;;  %v693_v47 = vrot.slane %v633_v44, %v1425_v37  ;;  %v703_v52 = vrot.slane %v633_v44, %v1433_v42  ;;  %v713_v60 = vrot.slane %v633_v44, %v1438_v49 }
 0x186   : > { %v773_v16 = vrot.slane %v634_v11, %v1425_v37  ;;  %v783_v33 = vrot.slane %v634_v11, %v1433_v42  ;;  %v793_v28 = vrot.slane %v634_v11, %v1438_v49 }
 0x187   : > { %v684_v51 = vmul.f32 %v683_v46, %v678_v20  ;;  %v748_v54 = vpop.permute.xlu1 %747  ;;  %v694_v59 = vmul.f32 %v693_v47, %v688_v18  ;;  %v704_v62 = vmul.f32 %v703_v52, %v698_v19  ;;  %v714_v55 = vmul.f32 %v713_v60, %v708_v30  ;;  %v768_v19 = vpop.permute.xlu0 %767 }
 0x188   : > { %v754_v18 = vmul.f32 %v753_v15, %v748_v54  ;;  %v763_v20 = vrot.slane %v634_v11, %v1422_v36  ;;  %v774_v24 = vmul.f32 %v773_v16, %v768_v19 }
 0x189   : > { %v685_v56 = vadd.f32 %v684_v51, %v675_v50 }
 0x18b   : > { %v695_v61 = vadd.f32 %v694_v59, %v685_v56 }
 0x18c   : > { %v758_v63 = vpop.permute.xlu1 %757  ;;  %v798_v31 = vpop.permute.xlu0 %797 }
 0x18d   : > { %v705_v1 = vadd.f32 %v704_v62, %v695_v61  ;;  %v764_v23 = vmul.f32 %v763_v20, %v758_v63 }
 0x18f   : > { %v715_v4 = vadd.f32 %v714_v55, %v705_v1 }
 0x191   : > { %v725_v10 = vadd.f32 %v724_v57, %v715_v4  ;;  %v778_v9 = vpop.permute.xlu1 %777  ;;  %v824_v45 = vpop.permute.xlu0 %823 }
 0x192   : > { %v784_v27 = vmul.f32 %v783_v33, %v778_v9 }
 0x193   : > { %v735_v14 = vadd.f32 %v734_v6, %v725_v10 }
 0x195   : > { %v745_v17 = vadd.f32 %v744_v13, %v735_v14 }
 0x196   : > { %v788_v21 = vpop.permute.xlu1 %787 }
 0x197   : > { %v755_v22 = vadd.f32 %v754_v18, %v745_v17  ;;  %v794_v29 = vmul.f32 %v793_v28, %v788_v21 }
 0x199   : > { %v765_v25 = vadd.f32 %v764_v23, %v755_v22 }
 0x19b   : > { %v775_v26 = vadd.f32 %v774_v24, %v765_v25  ;;  %v804_v12 = vpop.permute.xlu1 %803 }
 0x19d   : > { %v785_v8 = vadd.f32 %v784_v27, %v775_v26 }
 0x19f   : > { %v795_v30 = vadd.f32 %v794_v29, %v785_v8 }
 0x1a0   : > { %v814_v32 = vpop.permute.xlu1 %813 }
 0x1a1   : > { %v800_v35 = vadd.f32 %v798_v31, %v795_v30 }
 0x1a3   : > { %v801_v38 = vmax.f32 %v800_v35, 0.0 }
 0x1a5   : > { %v809_v40 = vrot.slane %v801_v38, %v1422_v36  ;;  %v819_v41 = vrot.slane %v801_v38, %v1425_v37  ;;  %v829_v43 = vrot.slane %v801_v38, %v1433_v42  ;;  %v834_v44 = vpop.permute.xlu1 %833  ;;  %v839_v50 = vrot.slane %v801_v38, %v1438_v49  ;;  %v854_v37 = vpop.permute.xlu0 %853 }
 0x1a6   : > { %v859_v60 = vrot.slane %v801_v38, %v592_v48  ;;  %v849_v36 = vrot.slane %v801_v38, %v582_v39  ;;  %v869_v49 = vrot.slane %v801_v38, %v602_v58  ;;  %v879_v57 = vrot.slane %v801_v38, %v612_v53 }
 0x1a7   : > { %v810_v46 = vmul.f32 %v809_v40, %v804_v12  ;;  %v820_v47 = vmul.f32 %v819_v41, %v814_v32  ;;  %v830_v52 = vmul.f32 %v829_v43, %v824_v45  ;;  %v840_v59 = vmul.f32 %v839_v50, %v834_v44 }
 0x1a8   : > { %v860_v62 = vmul.f32 %v859_v60, %v854_v37 }
 0x1a9   : > { %v821_v51 = vadd.f32 %v820_v47, %v810_v46  ;;  %v884_v5 = vpop.permute.xlu0 %883 }
 0x1aa   : > { %v844_v54 = vpop.permute.xlu1 %843 }
 0x1ab   : > { %v831_v56 = vadd.f32 %v830_v52, %v821_v51  ;;  %v850_v42 = vmul.f32 %v849_v36, %v844_v54 }
 0x1ad   : > { %v841_v61 = vadd.f32 %v840_v59, %v831_v56 }
 0x1af   : > { %v851_v63 = vadd.f32 %v850_v42, %v841_v61  ;;  %v864_v0 = vpop.permute.xlu1 %863 }
 0x1b0   : > { %v870_v55 = vmul.f32 %v869_v49, %v864_v0 }
 0x1b1   : > { %v861_v1 = vadd.f32 %v860_v62, %v851_v63 }
 0x1b3   : > { %v871_v48 = vadd.f32 %v870_v55, %v861_v1 }
 0x1b4   : > { %v874_v2 = vpop.permute.xlu1 %873 }
 0x1b5   : > { %v880_v4 = vmul.f32 %v879_v57, %v874_v2 }
 0x1b7   : > { %v881_v39 = vadd.f32 %v880_v4, %v871_v48 }
 0x1b9   : > { %v886_v6 = vadd.f32 %v884_v5, %v881_v39 }
 0x1bb   : > { %1220 = vtanh.f32 %v886_v6 }
 0x1c5   : > { %v1221_v7 = vpop.eup %1220 }
 0x1c6   : > { %v888_v58 = vsub.f32 %v1342_v3, %v1221_v7 }
 0x1c8   : > { %v899_v10 = vsel %vm891_vm3, %v888_v58, 0.0  ;;  %890 = vst [vmem:[%s328_s17] sm:$0xf] %v888_v58  ;;  %v902_v34 = vand.u32 2147483647, %v888_v58  ;;  %v898_v11 = vpop.xlane.xlu0 %897 }
 0x1c9   : > { %900 = vadd.xlane.f32.xlu1 %v899_v10 }
 0x1ca   : > { %v903_v53 = vsel %vm891_vm3, %v902_v34, 0.0 }
 0x1cb   : > { %904 = vadd.xlane.f32.xlu0 %v903_v53 }
 0x1e6   : > { %v894_v9 = vpop.xlane.xlu1 %893 }
 0x1e7   : > { %v907_v13 = vsel %vm906_vm4, %v894_v9, %v898_v11 }
 0x256   : > { %v901_v14 = vpop.xlane.xlu1 %900 }
 0x257   : > { %v909_v15 = vsel %vm908_vm5, %v907_v13, %v901_v14 }
 0x258   : > { %v905_v3 = vpop.xlane.xlu0 %904 }
 0x259   : > { %v911_v16 = vsel %vm910_vm6, %v909_v15, %v905_v3 }
 0x25a   : > { %913 = vst.msk [vmem:[%s335_s24] sm:$0xf] %vm912_vm7, %v911_v16 }
 0x25b PF: > { %s16_s20 = sadd.s32 1, %s1244_s20   ;;  %s1606_s18 = smov %s1240_s19 }
 0x25c   : > { %p13_p5 = scmp.ge.s32.totalorder %s16_s20, 4   ;;  %s1607_s19 = smov %s1609_s21 }
 0x25e   :  { %15 = sbr.rel (!%p13_p5) target bundleno = 2 (0x2), region = 92 }

</bundles_post_ra>
